<compile_context>
chip_gen: v7x
topology: tpu7x:2x2x1
jax: 0.10.0
libtpu: 0.0.40
codegen_flags: <defaults>
</compile_context>

<pallas_src>
import functools

import jax
import jax.numpy as jnp
from jax.experimental import pallas as pl
from jax.experimental.pallas import tpu as pltpu

BN_EPS = 1e-5


# ------------------------------ Pallas kernel --------------------------------

def _conv_bn_kernel(x_ref, w_ref, b_ref, out_ref, *scratch, H, W, Hout, Wout,
                    KH, KW, dh, dw, ph, pw, Cin, Cin_pad, Cout, nb, pack_w):
    """Fused conv(stride=1, dilated) + folded BatchNorm for `nb` images.

    x_ref   : (nb, H, W, Cin)            bf16  unpadded input block
    w_ref   : (K, Cout)                  bf16  BN-folded weight (im2col layout,
                                               channel-padded to Cin_pad per tap)
    b_ref   : (1, Cout)                  f32   BN-folded bias
    out_ref : (nb, Hout, Wout*Cout) or (nb, Hout, Wout, Cout)   f32
    scratch : [] for the 1x1/no-pad fast path, else
              xpad_ref (Hp, Wp, Cin_pad)           bf16
              col_ref  (nb, Hout, Wout, KH*KW*Cin_pad) bf16
    """
    fast_1x1 = (KH == 1 and KW == 1 and ph == 0 and pw == 0)

    if fast_1x1:
        # im2col is the identity: feed the input block straight to the MXU.
        lhs = x_ref[...].reshape(nb * H * W, Cin)
    else:
        xpad_ref, col_ref = scratch
        Hp, Wp = H + 2 * ph, W + 2 * pw

        # Zero only the halo strips (scratch is uninitialized; the interior is
        # fully rewritten below). Done every step so it is correct even when
        # the parallel grid axis is sharded across TensorCores.
        if ph > 0:
            xpad_ref[:ph, :, :] = jnp.zeros((ph, Wp, Cin_pad), xpad_ref.dtype)
            xpad_ref[ph + H:, :, :] = jnp.zeros((ph, Wp, Cin_pad), xpad_ref.dtype)
        if pw > 0:
            xpad_ref[ph:ph + H, :pw, :] = jnp.zeros((H, pw, Cin_pad), xpad_ref.dtype)
            xpad_ref[ph:ph + H, pw + W:, :] = jnp.zeros((H, pw, Cin_pad), xpad_ref.dtype)

        for i in range(nb):
            xi = x_ref[i]                                    # (H, W, Cin) bf16
            if Cin_pad > Cin:
                # Lane-pad channels so the interior store and every tap are
                # full-128-lane dense (no masked lane writes, no rotates).
                xi = jnp.concatenate(
                    [xi, jnp.zeros((H, W, Cin_pad - Cin), xi.dtype)], axis=-1)
            xpad_ref[ph:ph + H, pw:pw + W, :] = xi

            # im2col: each kernel tap is a static shifted window of the padded
            # tile, stored 3-D (no reshape) at a lane-aligned channel offset.
            for kh in range(KH):
                for kw in range(KW):
                    tap = xpad_ref[kh * dh:kh * dh + Hout,
                                   kw * dw:kw * dw + Wout, :]
                    c0 = (kh * KW + kw) * Cin_pad
                    col_ref[i, :, :, c0:c0 + Cin_pad] = tap

        # Merging leading dims with the (lane-aligned) trailing dim unchanged
        # is a layout-preserving reshape.
        lhs = col_ref[...].reshape(nb * Hout * Wout, KH * KW * Cin_pad)

    # Single MXU matmul, f32 accumulation, f32 bias add.
    acc = jnp.dot(lhs, w_ref[...], preferred_element_type=jnp.float32)
    acc = acc + b_ref[...]                     # (1, Cout) broadcasts over rows

    if pack_w:
        # Lane-dense output slab (Wout*Cout lanes) -> unmasked dense stores.
        out_ref[...] = acc.reshape(nb, Hout, Wout * Cout).astype(out_ref.dtype)
    else:
        out_ref[...] = acc.reshape(nb, Hout, Wout, Cout).astype(out_ref.dtype)


def conv_bn_nhwc(x, w_folded, b_folded, *, padding, dilation,
                 out_dtype=jnp.float32):
    """stride-1 conv + folded BN. x:(N,H,W,Cin) bf16, w:(KH,KW,Cin,Cout) f32."""
    N, H, W, Cin = x.shape
    KH, KW, _, Cout = w_folded.shape
    ph, pw = padding
    dh, dw = dilation
    Hout = H + 2 * ph - dh * (KH - 1)
    Wout = W + 2 * pw - dw * (KW - 1)

    fast_1x1 = (KH == 1 and KW == 1 and ph == 0 and pw == 0)
    # Lane-align the per-tap channel block (only needed on the im2col path).
    Cin_pad = Cin if fast_1x1 else (-(-Cin // 128) * 128)
    K = Cin if fast_1x1 else KH * KW * Cin_pad
    pack_w = (Cout % 128) != 0

    # Images per grid step: batch when possible (bigger M per MXU pass,
    # amortized per-step overhead) but keep >= 2 grid steps for dual-TC chips.
    nb = N // 2 if (N % 2 == 0 and N > 2) else 1
    grid = (N // nb,)

    # bf16 MXU operands; bias stays f32.
    if fast_1x1:
        w2 = w_folded.reshape(Cin, Cout).astype(jnp.bfloat16)
    else:
        wp = jnp.pad(w_folded, ((0, 0), (0, 0), (0, Cin_pad - Cin), (0, 0)))
        w2 = wp.reshape(K, Cout).astype(jnp.bfloat16)
    b2 = b_folded.reshape(1, Cout).astype(jnp.float32)

    if pack_w:
        out_shape = jax.ShapeDtypeStruct((N, Hout, Wout * Cout), out_dtype)
        out_spec = pl.BlockSpec((nb, Hout, Wout * Cout), lambda n: (n, 0, 0))
    else:
        out_shape = jax.ShapeDtypeStruct((N, Hout, Wout, Cout), out_dtype)
        out_spec = pl.BlockSpec((nb, Hout, Wout, Cout), lambda n: (n, 0, 0, 0))

    scratch_shapes = []
    if not fast_1x1:
        scratch_shapes = [
            pltpu.VMEM((H + 2 * ph, W + 2 * pw, Cin_pad), jnp.bfloat16),
            pltpu.VMEM((nb, Hout, Wout, K), jnp.bfloat16),
        ]

    kern = functools.partial(
        _conv_bn_kernel, H=H, W=W, Hout=Hout, Wout=Wout, KH=KH, KW=KW,
        dh=dh, dw=dw, ph=ph, pw=pw, Cin=Cin, Cin_pad=Cin_pad, Cout=Cout,
        nb=nb, pack_w=pack_w)

    y = pl.pallas_call(
        kern,
        out_shape=out_shape,
        grid_spec=pltpu.PrefetchScalarGridSpec(
            num_scalar_prefetch=0,
            grid=grid,
            in_specs=[
                pl.BlockSpec((nb, H, W, Cin), lambda n: (n, 0, 0, 0)),
                pl.BlockSpec((K, Cout), lambda n: (0, 0)),
                pl.BlockSpec((1, Cout), lambda n: (0, 0)),
            ],
            out_specs=out_spec,
            scratch_shapes=scratch_shapes,
        ),
        compiler_params=pltpu.CompilerParams(
            dimension_semantics=("parallel",)),
    )(x, w2, b2)

    if pack_w:
        y = y.reshape(N, Hout, Wout, Cout)   # contiguous in NHWC -> free
    return y


# ------------------------------ module wrapper --------------------------------

@functools.partial(jax.jit, static_argnames=("stride", "padding", "dilation"))
def basic_conv2d(x_nchw, params, *, stride=(1, 1), padding=(0, 0),
                 dilation=(1, 1)):
    """BasicConv2d.forward: conv(bias=False) -> BatchNorm2d (eval, running stats).

    The ReLU member of the PyTorch module is unused in forward(), so it is
    intentionally omitted. BN is folded into the conv weight/bias (exact
    rewrite in eval mode), so the whole forward is one Pallas kernel.
    """
    if stride != (1, 1):
        # TODO(synk): stride > 1 path not implemented; fail loudly.
        raise NotImplementedError("BasicConv2d Pallas kernel only supports stride=1")

    # NCHW -> NHWC + bf16 cast (one fused HBM pass under jit); channels on lanes.
    x = jnp.transpose(x_nchw, (0, 2, 3, 1)).astype(jnp.bfloat16)
    # Fold eval-mode BatchNorm into weight + bias.
    scale = params["bn_gamma"] * jax.lax.rsqrt(params["bn_var"] + BN_EPS)
    w = jnp.transpose(params["conv_w"], (2, 3, 1, 0))       # OIHW -> HWIO
    w_folded = w * scale[None, None, None, :]
    b_folded = params["bn_beta"] - params["bn_mean"] * scale
    y = conv_bn_nhwc(x, w_folded, b_folded, padding=padding, dilation=dilation,
                     out_dtype=jnp.float32)
    return jnp.transpose(y, (0, 3, 1, 2))                    # back to NCHW, f32


def basic_conv2d_reference(x_nchw, params, *, padding, dilation):
    """Pure-XLA reference using the same bf16 operands / f32 accumulation."""
    scale = params["bn_gamma"] / jnp.sqrt(params["bn_var"] + BN_EPS)
    w = jnp.transpose(params["conv_w"], (2, 3, 1, 0)) * scale[None, None, None, :]
    b = params["bn_beta"] - params["bn_mean"] * scale
    x = jnp.transpose(x_nchw, (0, 2, 3, 1)).astype(jnp.bfloat16)
    y = jax.lax.conv_general_dilated(
        x, w.astype(jnp.bfloat16),
        window_strides=(1, 1),
        padding=[(padding[0], padding[0]), (padding[1], padding[1])],
        rhs_dilation=dilation,
        dimension_numbers=("NHWC", "HWIO", "NHWC"),
        preferred_element_type=jnp.float32) + b
    return jnp.transpose(y, (0, 3, 1, 2)).astype(x_nchw.dtype)


def init_basic_conv2d(key, cin, cout, kh, kw):
    """Random parameters in PyTorch-native layouts (OIHW conv weight)."""
    k_w, k_g, k_b, k_m, k_v = jax.random.split(key, 5)
    return {
        "conv_w": 0.1 * jax.random.normal(k_w, (cout, cin, kh, kw), jnp.float32),
        "bn_gamma": 1.0 + 0.1 * jax.random.normal(k_g, (cout,), jnp.float32),
        "bn_beta": 0.1 * jax.random.normal(k_b, (cout,), jnp.float32),
        "bn_mean": 0.1 * jax.random.normal(k_m, (cout,), jnp.float32),
        "bn_var": 0.5 + jax.random.uniform(k_v, (cout,), jnp.float32),
    }


# ------------------------------------ main ------------------------------------

if __name__ == "__main__":
    key = jax.random.PRNGKey(0)
    kx, kp = jax.random.split(key)

    N, Cin, H, W = 2, 32, 16, 16
    x = jax.random.normal(kx, (N, Cin, H, W), jnp.float32)   # NCHW like PyTorch

    # (Cout, kernel, padding, dilation): the shapes BasicConv2d is used with
    # in SANet (same-padded 3x3, 1x1, dilated 3x3). Cout=128 exercises the
    # already-lane-dense output path; 32/64 exercise the packed-output path.
    configs = [
        (128, (3, 3), (1, 1), (1, 1)),
        (32,  (1, 1), (0, 0), (1, 1)),
        (64,  (3, 3), (3, 3), (3, 3)),
    ]

    for i, (cout, ksz, pad, dil) in enumerate(configs):
        params = init_basic_conv2d(jax.random.fold_in(kp, i), Cin, cout, *ksz)
        out = jax.block_until_ready(
            basic_conv2d(x, params, padding=pad, dilation=dil))
        ref = jax.block_until_ready(
            basic_conv2d_reference(x, params, padding=pad, dilation=dil))
        assert out.shape == ref.shape == (N, cout, H, W), (out.shape, ref.shape)
        assert out.dtype == jnp.float32, out.dtype
        assert bool(jnp.isfinite(out).all())
        max_err = float(jnp.max(jnp.abs(out - ref)))
        assert bool(jnp.allclose(out, ref, atol=3e-2, rtol=2e-2)), (
            f"config {i}: max abs err {max_err}")

    print("KERNEL_OK")
</pallas_src>

<mosaic_0001>
module attributes {stable_mosaic.version = 11 : i64} {
  func.func @_conv_bn_kernel(%arg0: i32, %arg1: memref<1x16x16x32xbf16, #tpu.memory_space<vmem>>, %arg2: memref<1152x128xbf16, #tpu.memory_space<vmem>>, %arg3: memref<1x128xf32, #tpu.memory_space<vmem>>, %arg4: memref<1x16x16x128xf32, #tpu.memory_space<vmem>>, %arg5: memref<18x18x128xbf16, #tpu.memory_space<vmem>>, %arg6: memref<1x16x16x1152xbf16, #tpu.memory_space<vmem>>) attributes {dimension_semantics = [#tpu.dimension_semantics<parallel>], iteration_bounds = array<i64: 2>, scalar_prefetch = 0 : i64, scratch_operands = 2 : i64, tpu.core_type = #tpu.core_type<tc>, window_params = [{transform_indices = @transform_0, window_bounds = array<i64: 1, 16, 16, 32>}, {pipeline_mode = #tpu.pipeline_mode<synchronous>, transform_indices = @transform_1, window_bounds = array<i64: 1152, 128>}, {pipeline_mode = #tpu.pipeline_mode<synchronous>, transform_indices = @transform_2, window_bounds = array<i64: 1, 128>}, {transform_indices = @transform_3, window_bounds = array<i64: 1, 16, 16, 128>}]} {
    %cst = arith.constant 0.000000e+00 : bf16
    %0 = vector.broadcast %cst : bf16 to vector<1x18x128xbf16>
    %c0 = arith.constant 0 : index
    %c0_0 = arith.constant 0 : index
    %c0_1 = arith.constant 0 : index
    %1 = vector.load %arg5[%c0, %c0_0, %c0_1] : memref<18x18x128xbf16, #tpu.memory_space<vmem>>, vector<1x18x128xbf16>
    tpu.vector_store %arg5[%c0, %c0_0, %c0_1], %0 {strides = array<i32>} : memref<18x18x128xbf16, #tpu.memory_space<vmem>>, vector<1x18x128xbf16>,
    %cst_2 = arith.constant 0.000000e+00 : bf16
    %2 = vector.broadcast %cst_2 : bf16 to vector<1x18x128xbf16>
    %c17 = arith.constant 17 : index
    %c0_3 = arith.constant 0 : index
    %c0_4 = arith.constant 0 : index
    %3 = vector.load %arg5[%c17, %c0_3, %c0_4] : memref<18x18x128xbf16, #tpu.memory_space<vmem>>, vector<1x18x128xbf16>
    tpu.vector_store %arg5[%c17, %c0_3, %c0_4], %2 {strides = array<i32>} : memref<18x18x128xbf16, #tpu.memory_space<vmem>>, vector<1x18x128xbf16>,
    %cst_5 = arith.constant 0.000000e+00 : bf16
    %4 = vector.broadcast %cst_5 : bf16 to vector<16x1x128xbf16>
    %c1 = arith.constant 1 : index
    %c0_6 = arith.constant 0 : index
    %c0_7 = arith.constant 0 : index
    %5 = vector.load %arg5[%c1, %c0_6, %c0_7] : memref<18x18x128xbf16, #tpu.memory_space<vmem>>, vector<16x1x128xbf16>
    tpu.vector_store %arg5[%c1, %c0_6, %c0_7], %4 {strides = array<i32>} : memref<18x18x128xbf16, #tpu.memory_space<vmem>>, vector<16x1x128xbf16>,
    %cst_8 = arith.constant 0.000000e+00 : bf16
    %6 = vector.broadcast %cst_8 : bf16 to vector<16x1x128xbf16>
    %c1_9 = arith.constant 1 : index
    %c17_10 = arith.constant 17 : index
    %c0_11 = arith.constant 0 : index
    %7 = vector.load %arg5[%c1_9, %c17_10, %c0_11] : memref<18x18x128xbf16, #tpu.memory_space<vmem>>, vector<16x1x128xbf16>
    tpu.vector_store %arg5[%c1_9, %c17_10, %c0_11], %6 {strides = array<i32>} : memref<18x18x128xbf16, #tpu.memory_space<vmem>>, vector<16x1x128xbf16>,
    %c0_12 = arith.constant 0 : index
    %c0_13 = arith.constant 0 : index
    %c0_14 = arith.constant 0 : index
    %c0_15 = arith.constant 0 : index
    %8 = vector.load %arg1[%c0_12, %c0_13, %c0_14, %c0_15] : memref<1x16x16x32xbf16, #tpu.memory_space<vmem>>, vector<1x16x16x32xbf16>
    %9 = vector.shape_cast %8 : vector<1x16x16x32xbf16> to vector<16x16x32xbf16>
    %cst_16 = arith.constant 0.000000e+00 : bf16
    %10 = vector.broadcast %cst_16 : bf16 to vector<16x16x96xbf16>
    %11 = tpu.concatenate %9, %10 in 2 : vector<16x16x32xbf16>, vector<16x16x96xbf16> -> vector<16x16x128xbf16>
    %c1_17 = arith.constant 1 : index
    %c1_18 = arith.constant 1 : index
    %c0_19 = arith.constant 0 : index
    %12 = vector.load %arg5[%c1_17, %c1_18, %c0_19] : memref<18x18x128xbf16, #tpu.memory_space<vmem>>, vector<16x16x128xbf16>
    tpu.vector_store %arg5[%c1_17, %c1_18, %c0_19], %11 {strides = array<i32>} : memref<18x18x128xbf16, #tpu.memory_space<vmem>>, vector<16x16x128xbf16>,
    %c0_20 = arith.constant 0 : index
    %c0_21 = arith.constant 0 : index
    %c0_22 = arith.constant 0 : index
    %13 = vector.load %arg5[%c0_20, %c0_21, %c0_22] : memref<18x18x128xbf16, #tpu.memory_space<vmem>>, vector<16x16x128xbf16>
    %c0_23 = arith.constant 0 : index
    %c0_24 = arith.constant 0 : index
    %c0_25 = arith.constant 0 : index
    %c0_26 = arith.constant 0 : index
    %14 = vector.load %arg6[%c0_23, %c0_24, %c0_25, %c0_26] : memref<1x16x16x1152xbf16, #tpu.memory_space<vmem>>, vector<1x16x16x128xbf16>
    %15 = vector.shape_cast %14 : vector<1x16x16x128xbf16> to vector<16x16x128xbf16>
    %16 = vector.shape_cast %13 : vector<16x16x128xbf16> to vector<1x16x16x128xbf16>
    tpu.vector_store %arg6[%c0_23, %c0_24, %c0_25, %c0_26], %16 {strides = array<i32>} : memref<1x16x16x1152xbf16, #tpu.memory_space<vmem>>, vector<1x16x16x128xbf16>,
    %c0_27 = arith.constant 0 : index
    %c1_28 = arith.constant 1 : index
    %c0_29 = arith.constant 0 : index
    %17 = vector.load %arg5[%c0_27, %c1_28, %c0_29] : memref<18x18x128xbf16, #tpu.memory_space<vmem>>, vector<16x16x128xbf16>
    %c0_30 = arith.constant 0 : index
    %c0_31 = arith.constant 0 : index
    %c0_32 = arith.constant 0 : index
    %c128 = arith.constant 128 : index
    %18 = vector.load %arg6[%c0_30, %c0_31, %c0_32, %c128] : memref<1x16x16x1152xbf16, #tpu.memory_space<vmem>>, vector<1x16x16x128xbf16>
    %19 = vector.shape_cast %18 : vector<1x16x16x128xbf16> to vector<16x16x128xbf16>
    %20 = vector.shape_cast %17 : vector<16x16x128xbf16> to vector<1x16x16x128xbf16>
    tpu.vector_store %arg6[%c0_30, %c0_31, %c0_32, %c128], %20 {strides = array<i32>} : memref<1x16x16x1152xbf16, #tpu.memory_space<vmem>>, vector<1x16x16x128xbf16>,
    %c0_33 = arith.constant 0 : index
    %c2 = arith.constant 2 : index
    %c0_34 = arith.constant 0 : index
    %21 = vector.load %arg5[%c0_33, %c2, %c0_34] : memref<18x18x128xbf16, #tpu.memory_space<vmem>>, vector<16x16x128xbf16>
    %c0_35 = arith.constant 0 : index
    %c0_36 = arith.constant 0 : index
    %c0_37 = arith.constant 0 : index
    %c256 = arith.constant 256 : index
    %22 = vector.load %arg6[%c0_35, %c0_36, %c0_37, %c256] : memref<1x16x16x1152xbf16, #tpu.memory_space<vmem>>, vector<1x16x16x128xbf16>
    %23 = vector.shape_cast %22 : vector<1x16x16x128xbf16> to vector<16x16x128xbf16>
    %24 = vector.shape_cast %21 : vector<16x16x128xbf16> to vector<1x16x16x128xbf16>
    tpu.vector_store %arg6[%c0_35, %c0_36, %c0_37, %c256], %24 {strides = array<i32>} : memref<1x16x16x1152xbf16, #tpu.memory_space<vmem>>, vector<1x16x16x128xbf16>,
    %c1_38 = arith.constant 1 : index
    %c0_39 = arith.constant 0 : index
    %c0_40 = arith.constant 0 : index
    %25 = vector.load %arg5[%c1_38, %c0_39, %c0_40] : memref<18x18x128xbf16, #tpu.memory_space<vmem>>, vector<16x16x128xbf16>
    %c0_41 = arith.constant 0 : index
    %c0_42 = arith.constant 0 : index
    %c0_43 = arith.constant 0 : index
    %c384 = arith.constant 384 : index
    %26 = vector.load %arg6[%c0_41, %c0_42, %c0_43, %c384] : memref<1x16x16x1152xbf16, #tpu.memory_space<vmem>>, vector<1x16x16x128xbf16>
    %27 = vector.shape_cast %26 : vector<1x16x16x128xbf16> to vector<16x16x128xbf16>
    %28 = vector.shape_cast %25 : vector<16x16x128xbf16> to vector<1x16x16x128xbf16>
    tpu.vector_store %arg6[%c0_41, %c0_42, %c0_43, %c384], %28 {strides = array<i32>} : memref<1x16x16x1152xbf16, #tpu.memory_space<vmem>>, vector<1x16x16x128xbf16>,
    %c1_44 = arith.constant 1 : index
    %c1_45 = arith.constant 1 : index
    %c0_46 = arith.constant 0 : index
    %29 = vector.load %arg5[%c1_44, %c1_45, %c0_46] : memref<18x18x128xbf16, #tpu.memory_space<vmem>>, vector<16x16x128xbf16>
    %c0_47 = arith.constant 0 : index
    %c0_48 = arith.constant 0 : index
    %c0_49 = arith.constant 0 : index
    %c512 = arith.constant 512 : index
    %30 = vector.load %arg6[%c0_47, %c0_48, %c0_49, %c512] : memref<1x16x16x1152xbf16, #tpu.memory_space<vmem>>, vector<1x16x16x128xbf16>
    %31 = vector.shape_cast %30 : vector<1x16x16x128xbf16> to vector<16x16x128xbf16>
    %32 = vector.shape_cast %29 : vector<16x16x128xbf16> to vector<1x16x16x128xbf16>
    tpu.vector_store %arg6[%c0_47, %c0_48, %c0_49, %c512], %32 {strides = array<i32>} : memref<1x16x16x1152xbf16, #tpu.memory_space<vmem>>, vector<1x16x16x128xbf16>,
    %c1_50 = arith.constant 1 : index
    %c2_51 = arith.constant 2 : index
    %c0_52 = arith.constant 0 : index
    %33 = vector.load %arg5[%c1_50, %c2_51, %c0_52] : memref<18x18x128xbf16, #tpu.memory_space<vmem>>, vector<16x16x128xbf16>
    %c0_53 = arith.constant 0 : index
    %c0_54 = arith.constant 0 : index
    %c0_55 = arith.constant 0 : index
    %c640 = arith.constant 640 : index
    %34 = vector.load %arg6[%c0_53, %c0_54, %c0_55, %c640] : memref<1x16x16x1152xbf16, #tpu.memory_space<vmem>>, vector<1x16x16x128xbf16>
    %35 = vector.shape_cast %34 : vector<1x16x16x128xbf16> to vector<16x16x128xbf16>
    %36 = vector.shape_cast %33 : vector<16x16x128xbf16> to vector<1x16x16x128xbf16>
    tpu.vector_store %arg6[%c0_53, %c0_54, %c0_55, %c640], %36 {strides = array<i32>} : memref<1x16x16x1152xbf16, #tpu.memory_space<vmem>>, vector<1x16x16x128xbf16>,
    %c2_56 = arith.constant 2 : index
    %c0_57 = arith.constant 0 : index
    %c0_58 = arith.constant 0 : index
    %37 = vector.load %arg5[%c2_56, %c0_57, %c0_58] : memref<18x18x128xbf16, #tpu.memory_space<vmem>>, vector<16x16x128xbf16>
    %c0_59 = arith.constant 0 : index
    %c0_60 = arith.constant 0 : index
    %c0_61 = arith.constant 0 : index
    %c768 = arith.constant 768 : index
    %38 = vector.load %arg6[%c0_59, %c0_60, %c0_61, %c768] : memref<1x16x16x1152xbf16, #tpu.memory_space<vmem>>, vector<1x16x16x128xbf16>
    %39 = vector.shape_cast %38 : vector<1x16x16x128xbf16> to vector<16x16x128xbf16>
    %40 = vector.shape_cast %37 : vector<16x16x128xbf16> to vector<1x16x16x128xbf16>
    tpu.vector_store %arg6[%c0_59, %c0_60, %c0_61, %c768], %40 {strides = array<i32>} : memref<1x16x16x1152xbf16, #tpu.memory_space<vmem>>, vector<1x16x16x128xbf16>,
    %c2_62 = arith.constant 2 : index
    %c1_63 = arith.constant 1 : index
    %c0_64 = arith.constant 0 : index
    %41 = vector.load %arg5[%c2_62, %c1_63, %c0_64] : memref<18x18x128xbf16, #tpu.memory_space<vmem>>, vector<16x16x128xbf16>
    %c0_65 = arith.constant 0 : index
    %c0_66 = arith.constant 0 : index
    %c0_67 = arith.constant 0 : index
    %c896 = arith.constant 896 : index
    %42 = vector.load %arg6[%c0_65, %c0_66, %c0_67, %c896] : memref<1x16x16x1152xbf16, #tpu.memory_space<vmem>>, vector<1x16x16x128xbf16>
    %43 = vector.shape_cast %42 : vector<1x16x16x128xbf16> to vector<16x16x128xbf16>
    %44 = vector.shape_cast %41 : vector<16x16x128xbf16> to vector<1x16x16x128xbf16>
    tpu.vector_store %arg6[%c0_65, %c0_66, %c0_67, %c896], %44 {strides = array<i32>} : memref<1x16x16x1152xbf16, #tpu.memory_space<vmem>>, vector<1x16x16x128xbf16>,
    %c2_68 = arith.constant 2 : index
    %c2_69 = arith.constant 2 : index
    %c0_70 = arith.constant 0 : index
    %45 = vector.load %arg5[%c2_68, %c2_69, %c0_70] : memref<18x18x128xbf16, #tpu.memory_space<vmem>>, vector<16x16x128xbf16>
    %c0_71 = arith.constant 0 : index
    %c0_72 = arith.constant 0 : index
    %c0_73 = arith.constant 0 : index
    %c1024 = arith.constant 1024 : index
    %46 = vector.load %arg6[%c0_71, %c0_72, %c0_73, %c1024] : memref<1x16x16x1152xbf16, #tpu.memory_space<vmem>>, vector<1x16x16x128xbf16>
    %47 = vector.shape_cast %46 : vector<1x16x16x128xbf16> to vector<16x16x128xbf16>
    %48 = vector.shape_cast %45 : vector<16x16x128xbf16> to vector<1x16x16x128xbf16>
    tpu.vector_store %arg6[%c0_71, %c0_72, %c0_73, %c1024], %48 {strides = array<i32>} : memref<1x16x16x1152xbf16, #tpu.memory_space<vmem>>, vector<1x16x16x128xbf16>,
    %c0_74 = arith.constant 0 : index
    %c0_75 = arith.constant 0 : index
    %c0_76 = arith.constant 0 : index
    %c0_77 = arith.constant 0 : index
    %49 = vector.load %arg6[%c0_74, %c0_75, %c0_76, %c0_77] : memref<1x16x16x1152xbf16, #tpu.memory_space<vmem>>, vector<1x16x16x1152xbf16>
    %50 = vector.shape_cast %49 : vector<1x16x16x1152xbf16> to vector<256x1152xbf16>
    %c0_78 = arith.constant 0 : index
    %c0_79 = arith.constant 0 : index
    %51 = vector.load %arg2[%c0_78, %c0_79] : memref<1152x128xbf16, #tpu.memory_space<vmem>>, vector<1152x128xbf16>
    %cst_80 = arith.constant dense<0.000000e+00> : vector<256x128xf32>
    %52 = tpu.matmul %50, %51, %cst_80 {dimension_numbers = #tpu.dot_dimension_numbers<[1], [0], [0], [1], [0, 0, 1, 1], [], []>} : vector<256x1152xbf16>, vector<1152x128xbf16>, vector<256x128xf32> -> vector<256x128xf32>
    %c0_81 = arith.constant 0 : index
    %c0_82 = arith.constant 0 : index
    %53 = vector.load %arg3[%c0_81, %c0_82] : memref<1x128xf32, #tpu.memory_space<vmem>>, vector<1x128xf32>
    %54 = vector.broadcast %53 : vector<1x128xf32> to vector<256x128xf32>
    %55 = arith.addf %52, %54 : vector<256x128xf32>
    %56 = vector.shape_cast %55 : vector<256x128xf32> to vector<1x16x16x128xf32>
    %c0_83 = arith.constant 0 : index
    %c0_84 = arith.constant 0 : index
    %c0_85 = arith.constant 0 : index
    %c0_86 = arith.constant 0 : index
    %57 = vector.load %arg4[%c0_83, %c0_84, %c0_85, %c0_86] : memref<1x16x16x128xf32, #tpu.memory_space<vmem>>, vector<1x16x16x128xf32>
    tpu.vector_store %arg4[%c0_83, %c0_84, %c0_85, %c0_86], %56 {strides = array<i32>} : memref<1x16x16x128xf32, #tpu.memory_space<vmem>>, vector<1x16x16x128xf32>,
    return
  }
  func.func @transform_0(%arg0: i32) -> (i32, i32, i32, i32) {
    %c0_i32 = arith.constant 0 : i32
    %c0_i32_0 = arith.constant 0 : i32
    %c0_i32_1 = arith.constant 0 : i32
    %c0_i32_2 = arith.constant 0 : i32
    return %arg0, %c0_i32, %c0_i32_0, %c0_i32_1 : i32, i32, i32, i32
  }
  func.func @transform_1(%arg0: i32) -> (i32, i32) {
    %c0_i32 = arith.constant 0 : i32
    %c0_i32_0 = arith.constant 0 : i32
    %c0_i32_1 = arith.constant 0 : i32
    return %c0_i32, %c0_i32_0 : i32, i32
  }
  func.func @transform_2(%arg0: i32) -> (i32, i32) {
    %c0_i32 = arith.constant 0 : i32
    %c0_i32_0 = arith.constant 0 : i32
    %c0_i32_1 = arith.constant 0 : i32
    return %c0_i32, %c0_i32_0 : i32, i32
  }
  func.func @transform_3(%arg0: i32) -> (i32, i32, i32, i32) {
    %c0_i32 = arith.constant 0 : i32
    %c0_i32_0 = arith.constant 0 : i32
    %c0_i32_1 = arith.constant 0 : i32
    %c0_i32_2 = arith.constant 0 : i32
    return %arg0, %c0_i32, %c0_i32_0, %c0_i32_1 : i32, i32, i32, i32
  }
}

</mosaic_0001>

<bundles_post_ra>
// kernel: basic_conv2d.1
= control target key start
LH: loop header
LB: loop body
LE: loop exit
PB: predicated region body
PF: predicated region fallthrough
CT: control target
= control target key end

     0   :  { %8 = vsyncpa [#allocation5], 0  ;;  %s7424_s0 = inlined_call_operand.vmem [shape: bf16[2,16,16,32], index: 0, kind: input, shape index: {}]   ;;  %s7425_s1 = inlined_call_operand.vmem [shape: bf16[1152,128], index: 1, kind: input, shape index: {}]   ;;  %s7426_s2 = inlined_call_operand.vmem [shape: f32[1,128], index: 2, kind: input, shape index: {}]   ;;  %s7427_s3 = inlined_call_operand.hbm [shape: f32[2,16,16,128], index: 3, kind: output, shape index: {}]  }
   0x1   :  { %10 = vsyncpa [#allocation5 + $0x1], 0  ;;  %s6353_s12 = smov 0   ;;  %s6355_s13 = smov 0  }
   0x2   :  { %s6357_s14 = smov 0   ;;  %s6359_s15 = smov 0  }
   0x3 LB: > { %s6374_s16 = sadd.s32 4294967295, %s6327_s15   ;;  %s4984_s17 = sadd.s32 4294967294, %s6327_s15   ;;  %s6327_s15 = sphi %s6359_s15, %s7441_s15   ;;  %s6323_s14 = sphi %s6357_s14, %s7440_s14   ;;  %s6319_s13 = sphi %s6355_s13, %s7439_s13   ;;  %s6315_s12 = sphi %s6353_s12, %s7438_s12  }
   0x4   : > { %s6378_s18 = sadd.s32 1, %s6327_s15   ;;  %s91_s19 = sadd.s32 1, %s6323_s14 }
   0x5   : > { %s88_s20 = ssub.s32 %s6327_s15, %s6378_s18  ;;  %p101_p0 = scmp.ne.s32.totalorder %s6323_s14, %s6319_s13 }
   0x6   : > { %p89_p1 = scmp.eq.s32.totalorder %s88_s20, 0  ;;  %p102_p2 = scmp.eq.s32.totalorder %s6374_s16, 1 }
   0x7   : > { %p107_p3 = scmp.ne.s32.totalorder %s6319_s13, %s6315_s12  ;;  %p108_p4 = scmp.eq.s32.totalorder %s4984_s17, 1 }
   0x8   : > { %s6389_s21 = scalar_select %p89_p1, %s6323_s14, %s91_s19  }
   0x9   : > { %p6391_p5 = por %p102_p2, %p101_p0  ;;  %p6395_p6 = por %p108_p4, %p107_p3 }
   0xa   : > { %p4987_p7 = scmp.ge.s32.totalorder %s6327_s15, 1  ;;  %p140_p8 = scmp.lt.s32.totalorder %s6327_s15, 3 }
   0xc   : > { %p141_p9 = pnand %p4987_p7, %p140_p8 }
   0xd   : > { %v5937_v0 = vld [vmem:[%s7425_s1 + $0x40] sm:$0xff] (!%p141_p9)   ;;  %v6329_v2 = vmov (!%p141_p9), 0   ;;  %v5939_v3 = vld [vmem:[%s7425_s1 + $0x48] sm:$0xff] (!%p141_p9)   ;;  %v5941_v5 = vld [vmem:[%s7425_s1 + $0x50] sm:$0xff] (!%p141_p9)   ;;  %p164_p10 = scmp.lt.s32.totalorder (!%p141_p9), %s6374_s16, 1  ;;  %vm178_vm0 = vcmask (!%p141_p9), 1040384  }
   0xe   : > { %144 = sbr.rel (%p141_p9) target bundleno = 599 (0x257), region = 32  ;;  %v5938_v1 = vld [vmem:[%s7425_s1] sm:$0xff] (!%p141_p9)   ;;  %170 = vst [vmem:[#allocation2] sm:$0xf] (!%p141_p9), %v6329_v2  ;;  %171 = vst [vmem:[#allocation2 + $0x4] sm:$0xf] (!%p141_p9), %v6329_v2  ;;  %5359 = vmatprep.subr.bf16.mxu0 (!%p141_p9), %v5937_v0  ;;  %5879 = vmatprep.subr.bf16.mxu1 (!%p141_p9), %v5937_v0 }
   0xf   : > { %172 = vst [vmem:[#allocation2 + $0x8] sm:$0x1] (!%p141_p9), %v6329_v2  ;;  %174 = vst [vmem:[#allocation2 + $0xcc] sm:$0xf] (!%p141_p9), %v6329_v2  ;;  %5360 = vmatpush3.bf16.msra.mxu0 (!%p141_p9), %v5938_v1  ;;  %5887 = vmatpush3.bf16.msra.mxu1 (!%p141_p9), %v5938_v1  ;;  %v5940_v4 = vld [vmem:[%s7425_s1 + $0x8] sm:$0xff] (!%p141_p9)   ;;  %v5942_v6 = vld [vmem:[%s7425_s1 + $0x10] sm:$0xff] (!%p141_p9)  }
  0x10   : > { %175 = vst [vmem:[#allocation2 + $0xd0] sm:$0xf] (!%p141_p9), %v6329_v2  ;;  %176 = vst [vmem:[#allocation2 + $0xd4] sm:$0x1] (!%p141_p9), %v6329_v2  ;;  %5361 = vmatprep.subr.bf16.mxu0 (!%p141_p9), %v5939_v3  ;;  %5880 = vmatprep.subr.bf16.mxu1 (!%p141_p9), %v5939_v3  ;;  %v5943_v7 = vld [vmem:[%s7425_s1 + $0x58] sm:$0xff] (!%p141_p9)   ;;  %v5945_v9 = vld [vmem:[%s7425_s1 + $0x60] sm:$0xff] (!%p141_p9)  }
  0x11   : > { %v5944_v8 = vld [vmem:[%s7425_s1 + $0x18] sm:$0xff] (!%p141_p9)   ;;  %v5946_v10 = vld [vmem:[%s7425_s1 + $0x20] sm:$0xff] (!%p141_p9)   ;;  %v5947_v11 = vld [vmem:[%s7425_s1 + $0x68] sm:$0xff] (!%p141_p9)   ;;  %vm391_vm1 = vcmask (!%p141_p9), 261120   ;;  %vm827_vm2 = vcmask (!%p141_p9), 1043456   ;;  %vm1662_vm11 = vcmask (!%p141_p9), 1046528  }
  0x12   : > { %v5948_v12 = vld [vmem:[%s7425_s1 + $0x28] sm:$0xff] (!%p141_p9)   ;;  %v5949_v15 = vld [vmem:[%s7425_s1 + $0x70] sm:$0xff] (!%p141_p9)   ;;  %vm179_vm3 = vsmask.f32 (!%p141_p9), 256  ;;  %vm229_vm5 = vsmask.f32 (!%p141_p9), 7938 }
  0x13   : > { %5362 = vmatpush3.bf16.msra.mxu0 (!%p141_p9), %v5940_v4  ;;  %5888 = vmatpush3.bf16.msra.mxu1 (!%p141_p9), %v5940_v4  ;;  %vm6450_vm4 = vmand (!%p141_p9), %vm178_vm0, %vm179_vm3  ;;  %v214_v21 = vld [vmem:[#allocation2 + $0x90] sm:$0x1] (!%p141_p9)  ;;  %v264_v22 = vld [vmem:[#allocation2 + $0x98] sm:$0x1] (!%p141_p9)  ;;  %vm1261_vm7 = vsmask.f32 (!%p141_p9), 7424 }
  0x14   : > { %5363 = vmatprep.subr.bf16.mxu0 (!%p141_p9), %v5941_v5  ;;  %5881 = vmatprep.subr.bf16.mxu1 (!%p141_p9), %v5941_v5  ;;  %v5950_v23 = vld [vmem:[%s7425_s1 + $0x30] sm:$0xff] (!%p141_p9)   ;;  %v215_v26 = vsel (!%p141_p9), %vm6450_vm4, 0, %v214_v21  ;;  %vm6461_vm6 = vmand (!%p141_p9), %vm178_vm0, %vm229_vm5  ;;  %v5951_v29 = vld [vmem:[%s7425_s1 + $0x78] sm:$0xff] (!%p141_p9)   ;;  %vm505_vm8 = vsmask.f32 (!%p141_p9), 4368  ;;  %s161_s10 = sand.u32 (!%p141_p9), 1, %s6319_s13  }
  0x15   : > { %s165_s11 = scalar_select %p164_p10, %s6374_s16, 1  ;;  %v5953_v13 = vld [vmem:[#allocation2] sm:$0xff]   ;;  %216 = vst [vmem:[#allocation2 + $0x90] sm:$0x1] %v215_v26  ;;  %v265_v30 = vsel %vm6461_vm6, 0, %v264_v22  ;;  %vm6474_vm9 = vmand %vm827_vm2, %vm229_vm5  ;;  %v5952_v40 = vld [vmem:[%s7425_s1 + $0x38] sm:$0xff]  }
  0x16   : > { %v5954_v14 = vld [vmem:[#allocation2 + $0x8] ss:$0 sps:$4 sm:$0x11]   ;;  %v1263_v16 = vshrl.u32 %v5953_v13, 16  ;;  %v1265_v17 = vshll.u32 %v5953_v13, 16  ;;  %vm6482_vm10 = vmor %vm179_vm3, %vm505_vm8  ;;  %v5955_v44 = vld [vmem:[#allocation2] sm:$0xff]  }
  0x17   : > { %5364 = vmatpush3.bf16.msra.mxu0 %v5942_v6  ;;  %5889 = vmatpush3.bf16.msra.mxu1 %v5942_v6  ;;  %s5357_s25 = sshll.u32 %s165_s11, 7  ;;  %v1270_v18 = vshll.u32 %v5954_v14, 16  ;;  %266 = vst [vmem:[#allocation2 + $0x98] sm:$0x1] %v265_v30  ;;  %v5959_v49 = vld [vmem:[%s7425_s1 + $0xc0] sm:$0xff]   ;;  %s4988_s11 = sshll.u32 %s161_s10, 8 }
  0x18   : > { %5365 = vmatprep.subr.bf16.mxu0 %v5943_v7  ;;  %5882 = vmatprep.subr.bf16.mxu1 %v5943_v7  ;;  %s6439_s5 = scalar_lea.vmem %s7424_s0, %s5357_s25  ;;  %v1267_v24 = vrot.slane %v1265_v17, 1  ;;  %v5963_v50 = vld [vmem:[%s7425_s1 + $0x140] sm:$0xff]   ;;  %v181_v56 = vld [vmem:[#allocation2 + $0xc] sm:$0x1]  ;;  %v231_v57 = vld [vmem:[#allocation2 + $0x14] sm:$0x1] }
  0x19   : > { %v5956_v19 = vld [vmem:[%s6439_s5 + $0x58] sm:$0xff]   ;;  %v1272_v25 = vrot.slane %v1270_v18, 1  ;;  %v5965_v52 = vld [vmem:[%s7425_s1 + $0x100] sm:$0xff]   ;;  %v182_v59 = vsel %vm6450_vm4, 0, %v181_v56  ;;  %v232_v60 = vsel %vm6461_vm6, 0, %v231_v57  ;;  %s7299_s17 = scalar_lea.vmem [#allocation4], %s4988_s11 }
  0x1a   : > { %v416_v28 = vsel %vm391_vm1, %v5956_v19, 0  ;;  %v1268_v33 = vor.u32 %v1267_v24, %v1263_v16  ;;  %183 = vst [vmem:[#allocation2 + $0xc] sm:$0x1] %v182_v59  ;;  %233 = vst [vmem:[#allocation2 + $0x14] sm:$0x1] %v232_v60  ;;  %v5966_v61 = vld [vmem:[%s6439_s5] sm:$0xff]  }
  0x1b   : > { %5366 = vmatpush3.bf16.msra.mxu0 %v5944_v8  ;;  %5890 = vmatpush3.bf16.msra.mxu1 %v5944_v8  ;;  %v5029_v31 = vcombine.low %v416_v28, %v416_v28  ;;  %v5030_v32 = vcombine.high %v416_v28, %v416_v28  ;;  %v217_v62 = vld [vmem:[#allocation2 + $0x9c] sm:$0x1]  ;;  %v267_v63 = vld [vmem:[#allocation2 + $0xa4] sm:$0x1]  ;;  %v394_v2 = vsel %vm391_vm1, %v5966_v61, 0  ;;  %v5982_v59 = vld [vmem:[%s6439_s5 + $0x68] sm:$0xff]  }
  0x1c   : > { %5367 = vmatprep.subr.bf16.mxu0 %v5945_v9  ;;  %5883 = vmatprep.subr.bf16.mxu1 %v5945_v9  ;;  %v1273_v38 = vsel %vm1261_vm7, %v1268_v33, %v1272_v25  ;;  %v906_v51 = vld [vmem:[#allocation2 + $0x90] sm:$0xf]  ;;  %v218_v0 = vsel %vm6450_vm4, 0, %v217_v62  ;;  %v268_v1 = vsel %vm6461_vm6, 0, %v267_v63  ;;  %v5970_v3 = vld [vmem:[%s6439_s5 + $0x60] sm:$0xff]   ;;  %v5007_v4 = vcombine.low %v394_v2, %v394_v2  ;;  %s5358_s19 = sshll.u32 %s6374_s16, 12 }
  0x1d   : > { %v695_v34 = vshrl.u32 %v5029_v31, 16  ;;  %v698_v35 = vshll.u32 %v5029_v31, 16  ;;  %v703_v36 = vshrl.u32 %v5030_v32, 16  ;;  %v706_v37 = vshll.u32 %v5030_v32, 16  ;;  %4103 = vmatprep.mubr.bf16.mxu0 %v1273_v38  ;;  %219 = vst [vmem:[#allocation2 + $0x9c] sm:$0x1] %v218_v0  ;;  %s7374_s26 = scalar_lea.hbm %s7427_s3, %s5358_s19 }
  0x1e   : > { %v910_v55 = vld [vmem:[#allocation2 + $0x98] sm:$0x1]  ;;  %269 = vst [vmem:[#allocation2 + $0xa4] sm:$0x1] %v268_v1  ;;  %v5008_v5 = vcombine.high %v394_v2, %v394_v2  ;;  %v418_v6 = vsel %vm391_vm1, %v5970_v3, 0  ;;  %v508_v7 = vshrl.u32 %v5007_v4, 16 }
  0x1f   : > { %5368 = vmatpush3.bf16.msra.mxu0 %v5946_v10  ;;  %5891 = vmatpush3.bf16.msra.mxu1 %v5946_v10  ;;  %v697_v42 = vrot.slane %v695_v34, 7  ;;  %v705_v43 = vrot.slane %v703_v36, 7  ;;  %v511_v10 = vshll.u32 %v5007_v4, 16  ;;  %v5961_v30 = vld [vmem:[%s7425_s1 + $0x80] sm:$0xff]   ;;  %v270_v63 = vld [vmem:[#allocation2 + $0xb0] sm:$0x1] }
  0x20   : > { %5369 = vmatprep.subr.bf16.mxu0 %v5947_v11  ;;  %5884 = vmatprep.subr.bf16.mxu1 %v5947_v11  ;;  %v516_v8 = vshrl.u32 %v5008_v5, 16  ;;  %v5031_v11 = vcombine.low %v418_v6, %v418_v6  ;;  %v519_v14 = vshll.u32 %v5008_v5, 16  ;;  %v510_v18 = vrot.slane %v508_v7, 7  ;;  %v5973_v4 = vld [vmem:[%s7425_s1 + $0xd0] sm:$0xff]   ;;  %s4922_s20 = sshll.u32 %s7299_s17, 4  ;;  %s7383_s16 = scalar_lea.sflag [#allocation5], %s161_s10  ;;  %s7376_s20 = int_to_ptr.vmem [resolvable:$true] %s4922_s20 }
  0x21   : > { %v700_v45 = vor.u32 %v698_v35, %v697_v42  ;;  %v701_v46 = vrot.slane %v697_v42, 4  ;;  %v708_v47 = vor.u32 %v706_v37, %v705_v43  ;;  %v710_v48 = vrot.slane %v705_v43, 4  ;;  %v829_v24 = vld [vmem:[#allocation2 + $0xc] sm:$0xf]  ;;  %v833_v34 = vld [vmem:[#allocation2 + $0x14] sm:$0x1] }
  0x22   : > { %v518_v19 = vrot.slane %v516_v8, 7  ;;  %v712_v21 = vshrl.u32 %v5031_v11, 16  ;;  %v715_v25 = vshll.u32 %v5031_v11, 16  ;;  %v513_v31 = vor.u32 %v511_v10, %v510_v18  ;;  %v5978_v43 = vld [vmem:[%s6439_s5 + $0x8] sm:$0xff]   ;;  %s6330_s27 = smov [#allocation4]  }
  0x23   : > { %5370 = vmatpush3.bf16.msra.mxu0 %v5948_v12  ;;  %5892 = vmatpush3.bf16.msra.mxu1 %v5948_v12  ;;  %v709_v53 = vsel %vm6482_vm10, %v701_v46, %v708_v47  ;;  %v907_v54 = vsel %vm6474_vm9, %v700_v45, %v906_v51  ;;  %v911_v58 = vsel %vm6450_vm4, %v710_v48, %v910_v55  ;;  %v514_v32 = vrot.slane %v510_v18, 4  ;;  %v184_v46 = vld [vmem:[#allocation2 + $0x18] sm:$0x1]  ;;  %v234_v47 = vld [vmem:[#allocation2 + $0x20] sm:$0x1]  ;;  %v5986_v11 = vld [vmem:[%s7425_s1 + $0x148] sm:$0xff]  }
  0x24   : > { %5371 = vmatprep.subr.bf16.mxu0 %v5949_v15  ;;  %5885 = vmatprep.subr.bf16.mxu1 %v5949_v15  ;;  %908 = vst [vmem:[#allocation2 + $0x90] sm:$0xf] %v907_v54  ;;  %909 = vst [vmem:[#allocation2 + $0x94] sm:$0xf] %v709_v53  ;;  %v5032_v12 = vcombine.high %v418_v6, %v418_v6  ;;  %v521_v33 = vor.u32 %v519_v14, %v518_v19  ;;  %v913_v35 = vld [vmem:[#allocation2 + $0x9c] sm:$0xf] }
  0x25   : > { %912 = vst [vmem:[#allocation2 + $0x98] sm:$0x1] %v911_v58  ;;  %v523_v37 = vrot.slane %v518_v19, 4  ;;  %v714_v38 = vrot.slane %v712_v21, 7  ;;  %v917_v42 = vld [vmem:[#allocation2 + $0xa4] sm:$0x1]  ;;  %v830_v45 = vsel %vm6474_vm9, %v513_v31, %v829_v24 }
  0x26   : > { %v720_v26 = vshrl.u32 %v5032_v12, 16  ;;  %v723_v28 = vshll.u32 %v5032_v12, 16  ;;  %831 = vst [vmem:[#allocation2 + $0xc] sm:$0xf] %v830_v45  ;;  %v5964_v53 = vld [vmem:[%s7425_s1 + $0x88] sm:$0xff]   ;;  %v185_v56 = vsel %vm6450_vm4, 0, %v184_v46 }
  0x27   : > { %5372 = vmatpush3.bf16.msra.mxu0 %v5950_v23  ;;  %5893 = vmatpush3.bf16.msra.mxu1 %v5950_v23  ;;  %v717_v51 = vor.u32 %v715_v25, %v714_v38  ;;  %v235_v57 = vsel %vm6461_vm6, 0, %v234_v47  ;;  %v220_v58 = vld [vmem:[#allocation2 + $0xa8] sm:$0x1]  ;;  %186 = vst [vmem:[#allocation2 + $0x18] sm:$0x1] %v185_v56  ;;  %v396_v61 = vsel %vm391_vm1, %v5978_v43, 0 }
  0x28   : > { %5373 = vmatprep.subr.bf16.mxu0 %v5951_v29  ;;  %5886 = vmatprep.subr.bf16.mxu1 %v5951_v29  ;;  %236 = vst [vmem:[#allocation2 + $0x20] sm:$0x1] %v235_v57  ;;  %v221_v62 = vsel %vm6450_vm4, 0, %v220_v58  ;;  %v5009_v2 = vcombine.low %v396_v61, %v396_v61  ;;  %v5010_v3 = vcombine.high %v396_v61, %v396_v61  ;;  %v271_v5 = vsel %vm6461_vm6, 0, %v270_v63  ;;  %v5975_v6 = vld [vmem:[%s7425_s1 + $0x90] sm:$0xff]   ;;  %v5976_v12 = vld [vmem:[%s7425_s1 + $0xd8] sm:$0xff]  }
  0x29   : > { %v914_v60 = vsel %vm6474_vm9, %v717_v51, %v913_v35  ;;  %222 = vst [vmem:[#allocation2 + $0xa8] sm:$0x1] %v221_v62  ;;  %272 = vst [vmem:[#allocation2 + $0xb0] sm:$0x1] %v271_v5  ;;  %v420_v10 = vsel %vm391_vm1, %v5982_v59, 0  ;;  %v5977_v19 = vld [vmem:[%s7425_s1 + $0x98] sm:$0xff]  }
  0x2a   : > { %915 = vst [vmem:[#allocation2 + $0x9c] sm:$0xf] %v914_v60  ;;  %v525_v7 = vshrl.u32 %v5009_v2, 16  ;;  %v528_v8 = vshll.u32 %v5009_v2, 16  ;;  %v5033_v24 = vcombine.low %v420_v10, %v420_v10  ;;  %v5985_v25 = vld [vmem:[%s7425_s1 + $0xe0] sm:$0xff]   ;;  %v5034_v31 = vcombine.high %v420_v10, %v420_v10  ;;  %v5989_v45 = vld [vmem:[%s7425_s1 + $0x108] sm:$0xff]  }
  0x2b   : > { %5374 = vmatpush3.bf16.msra.mxu0 %v5952_v40  ;;  %5894 = vmatpush3.bf16.msra.mxu1 %v5952_v40  ;;  %v5957_v9 = vld [vmem:[#allocation2 + $0x90] sm:$0xff]   ;;  %v722_v40 = vrot.slane %v720_v26, 7  ;;  %v5990_v61 = vld [vmem:[%s7425_s1 + $0xe8] sm:$0xff]   ;;  %s6269_s28 = sshll.u32 %s6330_s27, 4  ;;  %s6270_s28 = int_to_ptr.vmem [resolvable:$false] %s6269_s28 }
  0x2c   : > { %5471 = vmatprep.subr.bf16.mxu1 %v5959_v49  ;;  %5583 = vmatprep.subr.bf16.mxu0 %v5963_v50  ;;  %v5958_v13 = vld [vmem:[#allocation2 + $0x98] ss:$0 sps:$4 sm:$0x11]   ;;  %v1407_v15 = vshrl.u32 %v5957_v9, 16  ;;  %v1409_v16 = vshll.u32 %v5957_v9, 16  ;;  %v5960_v23 = vld [vmem:[#allocation2 + $0x90] sm:$0xff]   ;;  %v834_v50 = vsel %vm6450_vm4, %v523_v37, %v833_v34  ;;  %p6272_p0 = scmp.lt.s32.totalorder %s7376_s20, %s6270_s28 }
  0x2d   : > { %v1414_v17 = vshll.u32 %v5958_v13, 16  ;;  %v5962_v49 = vld [vmem:[%s7425_s1 + $0xc8] sm:$0xff]   ;;  %835 = vst [vmem:[#allocation2 + $0x14] sm:$0x1] %v834_v50  ;;  %v725_v54 = vor.u32 %v723_v28, %v722_v40  ;;  %v727_v55 = vrot.slane %v722_v40, 4  ;;  %v533_v9 = vshrl.u32 %v5010_v3, 16 }
  0x2e   : > { %4104 = vmatmul.mubr.bf16.vlgmr.msra.gmra.mrb[0].mxu0 %v5955_v44  ;;  %v1411_v22 = vrot.slane %v1409_v16, 1  ;;  %v522_v44 = vsel %vm6482_vm10, %v514_v32, %v521_v33  ;;  %v527_v14 = vrot.slane %v525_v7, 7  ;;  %v536_v16 = vshll.u32 %v5010_v3, 16  ;;  %v836_v37 = vld [vmem:[#allocation2 + $0x18] sm:$0xf]  ;;  %v5991_v2 = vld [vmem:[%s7425_s1 + $0xa8] sm:$0xff]  }
  0x2f   : > { %5584 = vmatpush3.bf16.msra.mxu0 %v5965_v52  ;;  %v1416_v29 = vrot.slane %v1414_v17, 1  ;;  %832 = vst [vmem:[#allocation2 + $0x10] sm:$0xf] %v522_v44  ;;  %v718_v52 = vrot.slane %v714_v38, 4  ;;  %v918_v1 = vsel %vm6450_vm4, %v727_v55, %v917_v42  ;;  %v840_v42 = vld [vmem:[#allocation2 + $0x20] sm:$0x1] }
  0x30   : > { %v1412_v36 = vor.u32 %v1411_v22, %v1407_v15  ;;  %919 = vst [vmem:[#allocation2 + $0xa4] sm:$0x1] %v918_v1  ;;  %5585 = vmatprep.subr.bf16.mxu0 %v5986_v11  ;;  %v530_v22 = vor.u32 %v528_v8, %v527_v14  ;;  %v729_v43 = vshrl.u32 %v5033_v24, 16  ;;  %v732_v44 = vshll.u32 %v5033_v24, 16  ;;  %v920_v51 = vld [vmem:[#allocation2 + $0xa8] sm:$0xf] }
  0x31   : > { %v726_v0 = vsel %vm6482_vm10, %v718_v52, %v725_v54  ;;  %v5988_v52 = vld [vmem:[%s7425_s1 + $0xa0] sm:$0xff]   ;;  %v737_v55 = vshrl.u32 %v5034_v31, 16  ;;  %v740_v56 = vshll.u32 %v5034_v31, 16  ;;  %v924_v60 = vld [vmem:[#allocation2 + $0xb0] sm:$0x1]  ;;  %s6271_s29 = scalar_lea.vmem %s6270_s28, 8192 }
  0x32   : > { %v1417_v48 = vsel %vm1261_vm7, %v1412_v36, %v1416_v29  ;;  %916 = vst [vmem:[#allocation2 + $0xa0] sm:$0xf] %v726_v0  ;;  %v535_v36 = vrot.slane %v533_v9, 7  ;;  %v837_v40 = vsel %vm6474_vm9, %v530_v22, %v836_v37  ;;  %v731_v54 = vrot.slane %v729_v43, 7  ;;  %v187_v3 = vld [vmem:[#allocation2 + $0x24] sm:$0x1] }
  0x33   : > { %4199 = vmatprep.mubr.bf16.mxu1 %v1417_v48  ;;  %838 = vst [vmem:[#allocation2 + $0x18] sm:$0xf] %v837_v40  ;;  %v739_v0 = vrot.slane %v737_v55, 7  ;;  %5586 = vmatpush3.bf16.msra.mxu0 %v5989_v45  ;;  %v188_v8 = vsel %vm6450_vm4, 0, %v187_v3  ;;  %v5992_v10 = vld [vmem:[%s6439_s5 + $0x10] sm:$0xff]  }
  0x34   : > { %4200 = vmatmul.mubr.bf16.vlgmr.msra.gmra.mrb[0].mxu1 %v5960_v23  ;;  %v5968_v15 = vld [vmem:[#allocation2 + $0x14] ss:$0 sps:$4 sm:$0x11]   ;;  %v531_v23 = vrot.slane %v527_v14, 4  ;;  %v540_v50 = vrot.slane %v535_v36, 4  ;;  %v734_v62 = vor.u32 %v732_v44, %v731_v54  ;;  %v735_v63 = vrot.slane %v731_v54, 4 }
  0x35   : > { %5472 = vmatpush3.bf16.msra.mxu1 %v5961_v30  ;;  %v1282_v21 = vshll.u32 %v5968_v15, 16  ;;  %v742_v5 = vor.u32 %v740_v56, %v739_v0  ;;  %189 = vst [vmem:[#allocation2 + $0x24] sm:$0x1] %v188_v8  ;;  %v223_v11 = vld [vmem:[#allocation2 + $0xb4] sm:$0x1] }
  0x36   : > { %5473 = vmatprep.subr.bf16.mxu1 %v5962_v49  ;;  %v5967_v13 = vld [vmem:[#allocation2 + $0xc] sm:$0xff]   ;;  %v538_v49 = vor.u32 %v536_v16, %v535_v36  ;;  %v841_v59 = vsel %vm6450_vm4, %v540_v50, %v840_v42  ;;  %v921_v7 = vsel %vm6474_vm9, %v734_v62, %v920_v51  ;;  %v224_v15 = vsel %vm6450_vm4, 0, %v223_v11 }
  0x37   : > { %v1275_v17 = vshrl.u32 %v5967_v13, 16  ;;  %v1277_v18 = vshll.u32 %v5967_v13, 16  ;;  %v1284_v29 = vrot.slane %v1282_v21, 1  ;;  %v5972_v30 = vld [vmem:[#allocation2 + $0xa4] ss:$0 sps:$4 sm:$0x11]   ;;  %v743_v13 = vsel %vm6482_vm10, %v735_v63, %v742_v5 }
  0x38   : > { %v5969_v33 = vld [vmem:[#allocation2 + $0xc] sm:$0xff]   ;;  %v1426_v38 = vshll.u32 %v5972_v30, 16  ;;  %v539_v58 = vsel %vm6482_vm10, %v531_v23, %v538_v49  ;;  %842 = vst [vmem:[#allocation2 + $0x20] sm:$0x1] %v841_v59  ;;  %922 = vst [vmem:[#allocation2 + $0xa8] sm:$0xf] %v921_v7 }
  0x39   : > { %5474 = vmatpush3.bf16.msra.mxu1 %v5964_v53  ;;  %v1279_v26 = vrot.slane %v1277_v18, 1  ;;  %v5971_v28 = vld [vmem:[#allocation2 + $0x9c] sm:$0xff]   ;;  %839 = vst [vmem:[#allocation2 + $0x1c] sm:$0xf] %v539_v58  ;;  %923 = vst [vmem:[#allocation2 + $0xac] sm:$0xf] %v743_v13 }
  0x3a   : > { %5475 = vmatprep.subr.bf16.mxu1 %v5973_v4  ;;  %v1419_v34 = vshrl.u32 %v5971_v28, 16  ;;  %v1421_v35 = vshll.u32 %v5971_v28, 16  ;;  %v5974_v48 = vld [vmem:[#allocation2 + $0x9c] sm:$0xff]   ;;  %v1428_v53 = vrot.slane %v1426_v38, 1  ;;  %v237_v4 = vld [vmem:[#allocation2 + $0x2c] sm:$0x1] }
  0x3b   : > { %v1280_v32 = vor.u32 %v1279_v26, %v1275_v17  ;;  %v238_v9 = vsel %vm6461_vm6, 0, %v237_v4  ;;  %v398_v17 = vsel %vm391_vm1, %v5992_v10, 0  ;;  %225 = vst [vmem:[#allocation2 + $0xb4] sm:$0x1] %v224_v15  ;;  %v5996_v18 = vld [vmem:[%s6439_s5 + $0x70] sm:$0xff]  }
  0x3c   : > { %v1423_v47 = vrot.slane %v1421_v35, 1  ;;  %239 = vst [vmem:[#allocation2 + $0x2c] sm:$0x1] %v238_v9  ;;  %v5012_v21 = vcombine.high %v398_v17, %v398_v17  ;;  %v5999_v22 = vld [vmem:[%s7425_s1 + $0xf0] sm:$0xff]   ;;  %v422_v24 = vsel %vm391_vm1, %v5996_v18, 0  ;;  %v6002_v9 = vld [vmem:[%s7425_s1 + $0xf8] sm:$0xff]  }
  0x3d   : > { %5476 = vmatpush3.bf16.msra.mxu1 %v5975_v6  ;;  %v1285_v46 = vsel %vm1261_vm7, %v1280_v32, %v1284_v29  ;;  %v744_v6 = vrot.slane %v739_v0, 4  ;;  %v5035_v26 = vcombine.low %v422_v24, %v422_v24  ;;  %v843_v37 = vld [vmem:[#allocation2 + $0x24] sm:$0xf]  ;;  %v6001_v63 = vld [vmem:[%s7425_s1 + $0xb0] sm:$0xff]  }
  0x3e   : > { %5477 = vmatprep.subr.bf16.mxu1 %v5976_v12  ;;  %4111 = vmatprep.mubr.bf16.mxu0 %v1285_v46  ;;  %v1424_v57 = vor.u32 %v1423_v47, %v1419_v34  ;;  %v273_v12 = vld [vmem:[#allocation2 + $0xbc] sm:$0x1]  ;;  %v553_v36 = vshll.u32 %v5012_v21, 16  ;;  %v5036_v47 = vcombine.high %v422_v24, %v422_v24  ;;  %v6003_v11 = vld [vmem:[%s7425_s1 + $0x150] sm:$0xff]  }
  0x3f   : > { %4112 = vmatmul.mubr.bf16.gmra.mrb[4].mxu0 %v5969_v33  ;;  %v925_v14 = vsel %vm6450_vm4, %v744_v6, %v924_v60  ;;  %v274_v16 = vsel %vm6461_vm6, 0, %v273_v12  ;;  %v550_v33 = vshrl.u32 %v5012_v21, 16  ;;  %v746_v38 = vshrl.u32 %v5035_v26, 16  ;;  %5587 = vmatprep.subr.bf16.mxu0 %v6003_v11  ;;  %v190_v18 = vld [vmem:[#allocation2 + $0x30] sm:$0x1] }
  0x40   : > { %v1429_v1 = vsel %vm1261_vm7, %v1424_v57, %v1428_v53  ;;  %926 = vst [vmem:[#allocation2 + $0xb0] sm:$0x1] %v925_v14  ;;  %275 = vst [vmem:[#allocation2 + $0xbc] sm:$0x1] %v274_v16  ;;  %v5979_v23 = vld [vmem:[#allocation2 + $0x18] sm:$0xff]   ;;  %v5983_v42 = vld [vmem:[#allocation2 + $0xa8] sm:$0xff]  }
  0x41   : > { %5478 = vmatpush3.bf16.msra.mxu1 %v5977_v19  ;;  %4207 = vmatprep.mubr.bf16.mxu1 %v1429_v1  ;;  %v5011_v19 = vcombine.low %v398_v17, %v398_v17  ;;  %v1287_v28 = vshrl.u32 %v5979_v23, 16  ;;  %v1289_v29 = vshll.u32 %v5979_v23, 16  ;;  %v5981_v44 = vld [vmem:[#allocation2 + $0x18] sm:$0xff]   ;;  %v1433_v49 = vshll.u32 %v5983_v42, 16  ;;  %v5987_v59 = vld [vmem:[#allocation2 + $0xa8] sm:$0xff]   ;;  %v6005_v17 = vld [vmem:[%s7425_s1 + $0x110] sm:$0xff]  }
  0x42   : > { %5479 = vmatprep.subr.bf16.mxu1 %v5985_v25  ;;  %4208 = vmatmul.mubr.bf16.gmra.mrb[4].mxu1 %v5974_v48  ;;  %v5980_v25 = vld [vmem:[#allocation2 + $0x20] ss:$0 sps:$4 sm:$0x11]   ;;  %v1431_v48 = vshrl.u32 %v5983_v42, 16  ;;  %v552_v51 = vrot.slane %v550_v33, 7  ;;  %v748_v56 = vrot.slane %v746_v38, 7 }
  0x43   : > { %v542_v30 = vshrl.u32 %v5011_v19, 16  ;;  %v545_v31 = vshll.u32 %v5011_v19, 16  ;;  %v1294_v32 = vshll.u32 %v5980_v25, 16  ;;  %v1291_v34 = vrot.slane %v1289_v29, 1  ;;  %v847_v55 = vld [vmem:[#allocation2 + $0x2c] sm:$0x1]  ;;  %5588 = vmatpush3.bf16.msra.mxu0 %v6005_v17 }
  0x44   : > { %v927_v57 = vld [vmem:[#allocation2 + $0xb4] sm:$0xf]  ;;  %v1435_v58 = vrot.slane %v1433_v49, 1  ;;  %v555_v60 = vor.u32 %v553_v36, %v552_v51  ;;  %v749_v62 = vshll.u32 %v5035_v26, 16  ;;  %v752_v1 = vrot.slane %v748_v56, 4  ;;  %v6004_v14 = vld [vmem:[%s7425_s1 + $0xb8] sm:$0xff]  }
  0x45   : > { %5480 = vmatpush3.bf16.msra.mxu1 %v5988_v52  ;;  %v544_v35 = vrot.slane %v542_v30, 7  ;;  %v1296_v40 = vrot.slane %v1294_v32, 1  ;;  %v1292_v43 = vor.u32 %v1291_v34, %v1287_v28  ;;  %v757_v3 = vshll.u32 %v5036_v47, 16  ;;  %v240_v21 = vld [vmem:[#allocation2 + $0x38] sm:$0x1]  ;;  %v6011_v28 = vld [vmem:[%s7425_s1 + $0x1c0] sm:$0xff]  }
  0x46   : > { %5481 = vmatprep.subr.bf16.mxu1 %v5990_v61  ;;  %v557_v61 = vrot.slane %v552_v51, 4  ;;  %v1436_v4 = vor.u32 %v1435_v58, %v1431_v48  ;;  %v751_v7 = vor.u32 %v749_v62, %v748_v56  ;;  %v191_v19 = vsel %vm6450_vm4, 0, %v190_v18  ;;  %v6012_v56 = vld [vmem:[#allocation2] sm:$0xfe]   ;;  %v6023_v17 = vld [vmem:[%s7425_s1 + $0x118] sm:$0xff]  }
  0x47   : > { %v5984_v45 = vld [vmem:[#allocation2 + $0xb0] ss:$0 sps:$4 sm:$0x11]   ;;  %v547_v46 = vor.u32 %v545_v31, %v544_v35  ;;  %v548_v50 = vrot.slane %v544_v35, 4  ;;  %v1297_v52 = vsel %vm1261_vm7, %v1292_v43, %v1296_v40  ;;  %v931_v8 = vld [vmem:[#allocation2 + $0xbc] sm:$0x1] }
  0x48   : > { %v1438_v53 = vshll.u32 %v5984_v45, 16  ;;  %4119 = vmatprep.mubr.bf16.mxu0 %v1297_v52  ;;  %v848_v6 = vsel %vm6450_vm4, %v557_v61, %v847_v55  ;;  %v928_v13 = vsel %vm6474_vm9, %v751_v7, %v927_v57  ;;  %192 = vst [vmem:[#allocation2 + $0x30] sm:$0x1] %v191_v19  ;;  %v241_v25 = vsel %vm6461_vm6, 0, %v240_v21  ;;  %v6015_v62 = vld [vmem:[%s6439_s5 + $0x20] sm:$0xff]  }
  0x49   : > { %5482 = vmatpush3.bf16.msra.mxu1 %v5991_v2  ;;  %v844_v54 = vsel %vm6474_vm9, %v547_v46, %v843_v37  ;;  %4120 = vmatmul.mubr.bf16.gmra.mrb[8].mxu0 %v5981_v44  ;;  %v754_v2 = vshrl.u32 %v5036_v47, 16  ;;  %v556_v5 = vsel %vm6482_vm10, %v548_v50, %v555_v60  ;;  %849 = vst [vmem:[#allocation2 + $0x2c] sm:$0x1] %v848_v6  ;;  %929 = vst [vmem:[#allocation2 + $0xb4] sm:$0xf] %v928_v13 }
  0x4a   : > { %5483 = vmatprep.subr.bf16.mxu1 %v5999_v22  ;;  %845 = vst [vmem:[#allocation2 + $0x24] sm:$0xf] %v844_v54  ;;  %v1440_v0 = vrot.slane %v1438_v53, 1  ;;  %846 = vst [vmem:[#allocation2 + $0x28] sm:$0xf] %v556_v5  ;;  %v6006_v22 = vld [vmem:[%s6439_s5 + $0x18] sm:$0xff]  }
  0x4b   : > { %v756_v10 = vrot.slane %v754_v2, 7  ;;  %242 = vst [vmem:[#allocation2 + $0x38] sm:$0x1] %v241_v25  ;;  %v400_v26 = vsel %vm391_vm1, %v6006_v22, 0  ;;  %v6010_v2 = vld [vmem:[#allocation2 + $0xc] sm:$0xff]   ;;  %v402_v13 = vsel %vm391_vm1, %v6015_v62, 0 }
  0x4c   : > { %v1441_v12 = vsel %vm1261_vm7, %v1436_v4, %v1440_v0  ;;  %v5013_v29 = vcombine.low %v400_v26, %v400_v26  ;;  %v5014_v30 = vcombine.high %v400_v26, %v400_v26  ;;  %v6013_v61 = vld [vmem:[#allocation2 + $0x8] ss:$0 sps:$4 sm:$0x11]   ;;  %v5016_v18 = vcombine.high %v402_v13, %v402_v13  ;;  %v6022_v26 = vld [vmem:[#allocation2 + $0x14] ss:$0 sps:$4 sm:$0x11]  }
  0x4d   : > { %5484 = vmatpush3.bf16.msra.mxu1 %v6001_v63  ;;  %4215 = vmatprep.mubr.bf16.mxu1 %v1441_v12  ;;  %v759_v15 = vor.u32 %v757_v3, %v756_v10  ;;  %v761_v16 = vrot.slane %v756_v10, 4  ;;  %v1663_v3 = vrot.slane %v6012_v56, 1  ;;  %v1664_v7 = vrot.slane %v6013_v61, 1  ;;  %v243_v12 = vld [vmem:[#allocation2 + $0x44] sm:$0x1] }
  0x4e   : > { %5485 = vmatprep.subr.bf16.mxu1 %v6002_v9  ;;  %4216 = vmatmul.mubr.bf16.gmra.mrb[8].mxu1 %v5987_v59  ;;  %v559_v36 = vshrl.u32 %v5013_v29, 16  ;;  %v567_v37 = vshrl.u32 %v5014_v30, 16  ;;  %v562_v40 = vshll.u32 %v5013_v29, 16  ;;  %v570_v42 = vshll.u32 %v5014_v30, 16  ;;  %v6020_v9 = vld [vmem:[%s7425_s1 + $0x158] sm:$0xff]  }
  0x4f   : > { %v760_v23 = vsel %vm6482_vm10, %v752_v1, %v759_v15  ;;  %v932_v24 = vsel %vm6450_vm4, %v761_v16, %v931_v8  ;;  %v850_v48 = vld [vmem:[#allocation2 + $0x30] sm:$0xf]  ;;  %v193_v8 = vld [vmem:[#allocation2 + $0x3c] sm:$0x1]  ;;  %v244_v15 = vsel %vm6461_vm6, 0, %v243_v12  ;;  %v5015_v16 = vcombine.low %v402_v13, %v402_v13  ;;  %5589 = vmatprep.subr.bf16.mxu0 %v6020_v9 }
  0x50   : > { %930 = vst [vmem:[#allocation2 + $0xb8] sm:$0xf] %v760_v23  ;;  %933 = vst [vmem:[#allocation2 + $0xbc] sm:$0x1] %v932_v24  ;;  %v561_v51 = vrot.slane %v559_v36, 7  ;;  %v569_v52 = vrot.slane %v567_v37, 7  ;;  %5590 = vmatpush3.bf16.msra.mxu0 %v6023_v17  ;;  %v1665_v36 = vsel %vm1662_vm11, %v1663_v3, %v1664_v7 }
  0x51   : > { %5486 = vmatpush3.bf16.msra.mxu1 %v6004_v14  ;;  %v5993_v31 = vld [vmem:[#allocation2 + $0x24] sm:$0xff]   ;;  %v5994_v32 = vld [vmem:[#allocation2 + $0x2c] ss:$0 sps:$4 sm:$0x11]   ;;  %v194_v11 = vsel %vm6450_vm4, 0, %v193_v8  ;;  %v576_v19 = vshrl.u32 %v5015_v16, 16 }
  0x52   : > { %5695 = vmatprep.subr.bf16.mxu1 %v6011_v28  ;;  %v1299_v33 = vshrl.u32 %v5993_v31, 16  ;;  %v1301_v34 = vshll.u32 %v5993_v31, 16  ;;  %v1306_v35 = vshll.u32 %v5994_v32, 16  ;;  %v5995_v46 = vld [vmem:[#allocation2 + $0x24] sm:$0xff]   ;;  %v854_v53 = vld [vmem:[#allocation2 + $0x38] sm:$0x1]  ;;  %v564_v58 = vor.u32 %v562_v40, %v561_v51 }
  0x53   : > { %v565_v59 = vrot.slane %v561_v51, 4  ;;  %v572_v60 = vor.u32 %v570_v42, %v569_v52  ;;  %v574_v1 = vrot.slane %v569_v52, 4  ;;  %195 = vst [vmem:[#allocation2 + $0x3c] sm:$0x1] %v194_v11  ;;  %245 = vst [vmem:[#allocation2 + $0x44] sm:$0x1] %v244_v15 }
  0x54   : > { %v1303_v38 = vrot.slane %v1301_v34, 1  ;;  %v1308_v43 = vrot.slane %v1306_v35, 1  ;;  %v851_v6 = vsel %vm6474_vm9, %v564_v58, %v850_v48  ;;  %v579_v21 = vshll.u32 %v5015_v16, 16  ;;  %v6021_v24 = vld [vmem:[#allocation2 + $0xc] sm:$0xfe]   ;;  %v6014_v28 = vld [vmem:[%s7425_s1 + $0x180] sm:$0xff]  }
  0x55   : > { %v573_v5 = vsel %vm6482_vm10, %v565_v59, %v572_v60  ;;  %852 = vst [vmem:[#allocation2 + $0x30] sm:$0xf] %v851_v6  ;;  %v855_v10 = vsel %vm6450_vm4, %v574_v1, %v854_v53  ;;  %v584_v22 = vshrl.u32 %v5016_v18, 16  ;;  %v587_v23 = vshll.u32 %v5016_v18, 16  ;;  %v6019_v30 = vld [vmem:[#allocation2 + $0x18] sm:$0xff]   ;;  %v6024_v53 = vld [vmem:[%s6439_s5 + $0x28] sm:$0xff]  }
  0x56   : > { %v1304_v45 = vor.u32 %v1303_v38, %v1299_v33  ;;  %853 = vst [vmem:[#allocation2 + $0x34] sm:$0xf] %v573_v5  ;;  %856 = vst [vmem:[#allocation2 + $0x38] sm:$0x1] %v855_v10  ;;  %v578_v25 = vrot.slane %v576_v19, 7  ;;  %v1666_v38 = vrot.slane %v6021_v24, 1 }
  0x57   : > { %v5997_v44 = vld [vmem:[#allocation2 + $0xb4] sm:$0xff]   ;;  %v5998_v47 = vld [vmem:[#allocation2 + $0xbc] ss:$0 sps:$4 sm:$0x11]   ;;  %v586_v29 = vrot.slane %v584_v22, 7  ;;  %v404_v59 = vsel %vm391_vm1, %v6024_v53, 0 }
  0x58   : > { %v1443_v49 = vshrl.u32 %v5997_v44, 16  ;;  %v1445_v50 = vshll.u32 %v5997_v44, 16  ;;  %v1309_v54 = vsel %vm1261_vm7, %v1304_v45, %v1308_v43  ;;  %v1450_v55 = vshll.u32 %v5998_v47, 16  ;;  %v6000_v0 = vld [vmem:[#allocation2 + $0xb4] sm:$0xff]   ;;  %v196_v31 = vld [vmem:[#allocation2 + $0x48] sm:$0x1] }
  0x59   : > { %4127 = vmatprep.mubr.bf16.mxu0 %v1309_v54  ;;  %v581_v33 = vor.u32 %v579_v21, %v578_v25  ;;  %v582_v34 = vrot.slane %v578_v25, 4  ;;  %v589_v37 = vor.u32 %v587_v23, %v586_v29  ;;  %v591_v45 = vrot.slane %v586_v29, 4  ;;  %v246_v52 = vld [vmem:[#allocation2 + $0x50] sm:$0x1]  ;;  %v6028_v62 = vld [vmem:[#allocation2 + $0x24] sm:$0xff]  }
  0x5a   : > { %v1447_v57 = vrot.slane %v1445_v50, 1  ;;  %4128 = vmatmul.mubr.bf16.gmra.mrb[12].mxu0 %v5995_v46  ;;  %v1452_v63 = vrot.slane %v1450_v55, 1  ;;  %v857_v46 = vld [vmem:[#allocation2 + $0x3c] sm:$0xf]  ;;  %v861_v47 = vld [vmem:[#allocation2 + $0x44] sm:$0x1]  ;;  %v5017_v60 = vcombine.low %v404_v59, %v404_v59  ;;  %v5018_v61 = vcombine.high %v404_v59, %v404_v59 }
  0x5b   : > { %v590_v44 = vsel %vm6482_vm10, %v582_v34, %v589_v37  ;;  %v1667_v50 = vrot.slane %v6022_v26, 1  ;;  %v197_v51 = vsel %vm6450_vm4, 0, %v196_v31  ;;  %v862_v55 = vsel %vm6450_vm4, %v591_v45, %v861_v47  ;;  %v6030_v6 = vld [vmem:[#allocation2 + $0x18] sm:$0xfe]   ;;  %v6032_v8 = vld [vmem:[%s7425_s1 + $0x188] sm:$0xff]   ;;  %v6033_v31 = vld [vmem:[%s7425_s1 + $0x160] sm:$0xff]  }
  0x5c   : > { %v1448_v4 = vor.u32 %v1447_v57, %v1443_v49  ;;  %v858_v49 = vsel %vm6474_vm9, %v581_v33, %v857_v46  ;;  %860 = vst [vmem:[#allocation2 + $0x40] sm:$0xf] %v590_v44  ;;  %198 = vst [vmem:[#allocation2 + $0x48] sm:$0x1] %v197_v51  ;;  %v247_v56 = vsel %vm6461_vm6, 0, %v246_v52  ;;  %v596_v3 = vshll.u32 %v5017_v60, 16  ;;  %5591 = vmatprep.subr.bf16.mxu0 %v6033_v31 }
  0x5d   : > { %v6007_v32 = vld [vmem:[#allocation2 + $0x30] sm:$0xff]   ;;  %v6008_v35 = vld [vmem:[#allocation2 + $0x38] ss:$0 sps:$4 sm:$0x11]   ;;  %859 = vst [vmem:[#allocation2 + $0x3c] sm:$0xf] %v858_v49  ;;  %v1668_v1 = vsel %vm1662_vm11, %v1666_v38, %v1667_v50 }
  0x5e   : > { %v1453_v14 = vsel %vm1261_vm7, %v1448_v4, %v1452_v63  ;;  %v1311_v40 = vshrl.u32 %v6007_v32, 16  ;;  %v1313_v42 = vshll.u32 %v6007_v32, 16  ;;  %v1318_v43 = vshll.u32 %v6008_v35, 16  ;;  %v6009_v58 = vld [vmem:[#allocation2 + $0x30] sm:$0xff]   ;;  %863 = vst [vmem:[#allocation2 + $0x44] sm:$0x1] %v862_v55 }
  0x5f   : > { %4223 = vmatprep.mubr.bf16.mxu1 %v1453_v14  ;;  %248 = vst [vmem:[#allocation2 + $0x50] sm:$0x1] %v247_v56  ;;  %v6029_v63 = vld [vmem:[%s7425_s1 + $0x1c8] sm:$0xff]   ;;  %v601_v4 = vshrl.u32 %v5018_v61, 16  ;;  %v604_v5 = vshll.u32 %v5018_v61, 16  ;;  %v1669_v15 = vrot.slane %v6030_v6, 1 }
  0x60   : > { %4224 = vmatmul.mubr.bf16.gmra.mrb[12].mxu1 %v6000_v0  ;;  %v1315_v48 = vrot.slane %v1313_v42, 1  ;;  %v1320_v54 = vrot.slane %v1318_v43, 1  ;;  %v6031_v7 = vld [vmem:[#allocation2 + $0x20] ss:$0 sps:$4 sm:$0x11]   ;;  %v6035_v42 = vld [vmem:[%s6439_s5 + $0x30] sm:$0xff]  }
  0x61   : > { %4264 = vmatprep.mubr.bf16.mxu1 %v6010_v2  ;;  %v593_v2 = vshrl.u32 %v5017_v60, 16  ;;  %v603_v10 = vrot.slane %v601_v4, 7  ;;  %v1670_v25 = vrot.slane %v6031_v7, 1  ;;  %v6034_v34 = vld [vmem:[%s7425_s1 + $0x120] sm:$0xff]   ;;  %v249_v37 = vld [vmem:[#allocation2 + $0x5c] sm:$0x1] }
  0x62   : > { %v1316_v57 = vor.u32 %v1315_v48, %v1311_v40  ;;  %5592 = vmatpush3.bf16.msra.mxu0 %v6034_v34  ;;  %v250_v40 = vsel %vm6461_vm6, 0, %v249_v37  ;;  %v6039_v43 = vld [vmem:[#allocation2 + $0x30] sm:$0xff]   ;;  %v406_v45 = vsel %vm391_vm1, %v6035_v42, 0  ;;  %v6041_v47 = vld [vmem:[#allocation2 + $0x2c] ss:$0 sps:$4 sm:$0x11]  }
  0x63   : > { %v595_v9 = vrot.slane %v593_v2, 7  ;;  %v606_v14 = vor.u32 %v604_v5, %v603_v10  ;;  %v608_v19 = vrot.slane %v603_v10, 4  ;;  %v864_v21 = vld [vmem:[#allocation2 + $0x48] sm:$0xf]  ;;  %v1671_v33 = vsel %vm1662_vm11, %v1669_v15, %v1670_v25  ;;  %251 = vst [vmem:[#allocation2 + $0x5c] sm:$0x1] %v250_v40 }
  0x64   : > { %v1321_v0 = vsel %vm1261_vm7, %v1316_v57, %v1320_v54  ;;  %v6016_v11 = vld [vmem:[#allocation2 + $0x3c] sm:$0xff]   ;;  %v5019_v46 = vcombine.low %v406_v45, %v406_v45  ;;  %v5020_v48 = vcombine.high %v406_v45, %v406_v45  ;;  %v6040_v49 = vld [vmem:[#allocation2 + $0x24] sm:$0xfe]   ;;  %v1673_v7 = vrot.slane %v6041_v47, 1 }
  0x65   : > { %4135 = vmatprep.mubr.bf16.mxu0 %v1321_v0  ;;  %v6017_v12 = vld [vmem:[#allocation2 + $0x44] ss:$0 sps:$4 sm:$0x11]   ;;  %v598_v13 = vor.u32 %v596_v3, %v595_v9  ;;  %v1323_v16 = vshrl.u32 %v6016_v11, 16  ;;  %v1325_v17 = vshll.u32 %v6016_v11, 16  ;;  %v599_v18 = vrot.slane %v595_v9, 4 }
  0x66   : > { %4136 = vmatmul.mubr.bf16.gmra.mrb[16].mxu0 %v6009_v58  ;;  %v1330_v22 = vshll.u32 %v6017_v12, 16  ;;  %v868_v24 = vld [vmem:[#allocation2 + $0x50] sm:$0x1]  ;;  %v610_v51 = vshrl.u32 %v5019_v46, 16  ;;  %v202_v52 = vld [vmem:[#allocation2 + $0x60] sm:$0x1] }
  0x67   : > { %v865_v23 = vsel %vm6474_vm9, %v598_v13, %v864_v21  ;;  %v1327_v26 = vrot.slane %v1325_v17, 1  ;;  %v607_v29 = vsel %vm6482_vm10, %v599_v18, %v606_v14  ;;  %v6042_v54 = vld [vmem:[%s6439_s5 + $0x38] sm:$0xff]   ;;  %v613_v58 = vshll.u32 %v5019_v46, 16  ;;  %v252_v59 = vld [vmem:[#allocation2 + $0x68] sm:$0x1]  ;;  %v6048_v17 = vld [vmem:[%s7425_s1 + $0x1d0] sm:$0xff]  }
  0x68   : > { %4265 = vmatmul.mubr.bf16.vlgmr.msra.gmra.mrb[16].mxu1 %v1665_v36  ;;  %866 = vst [vmem:[#allocation2 + $0x48] sm:$0xf] %v865_v23  ;;  %v1332_v32 = vrot.slane %v1330_v22, 1  ;;  %867 = vst [vmem:[#allocation2 + $0x4c] sm:$0xf] %v607_v29  ;;  %v612_v57 = vrot.slane %v610_v51, 7 }
  0x69   : > { %5696 = vmatpush3.bf16.msra.mxu1 %v6014_v28  ;;  %4272 = vmatprep.mubr.bf16.mxu1 %v6019_v30  ;;  %v6018_v28 = vld [vmem:[#allocation2 + $0x3c] sm:$0xff]   ;;  %v869_v30 = vsel %vm6450_vm4, %v608_v19, %v868_v24  ;;  %v1328_v35 = vor.u32 %v1327_v26, %v1323_v16  ;;  %v199_v36 = vld [vmem:[#allocation2 + $0x54] sm:$0x1]  ;;  %v203_v11 = vsel %vm6450_vm4, 0, %v202_v52  ;;  %v253_v12 = vsel %vm6461_vm6, 0, %v252_v59  ;;  %v6051_v23 = vld [vmem:[%s7425_s1 + $0x128] sm:$0xff]  }
  0x6a   : > { %5697 = vmatprep.subr.bf16.mxu1 %v6029_v63  ;;  %870 = vst [vmem:[#allocation2 + $0x50] sm:$0x1] %v869_v30  ;;  %v200_v38 = vsel %vm6450_vm4, 0, %v199_v36  ;;  %v6046_v60 = vld [vmem:[#allocation2 + $0x3c] sm:$0xff]   ;;  %v621_v63 = vshll.u32 %v5020_v48, 16  ;;  %v615_v4 = vor.u32 %v613_v58, %v612_v57  ;;  %v616_v5 = vrot.slane %v612_v57, 4 }
  0x6b   : > { %v1333_v44 = vsel %vm1261_vm7, %v1328_v35, %v1332_v32  ;;  %201 = vst [vmem:[#allocation2 + $0x54] sm:$0x1] %v200_v38  ;;  %v875_v6 = vld [vmem:[#allocation2 + $0x5c] sm:$0x1]  ;;  %204 = vst [vmem:[#allocation2 + $0x60] sm:$0x1] %v203_v11 }
  0x6c   : > { %4143 = vmatprep.mubr.bf16.mxu0 %v1333_v44  ;;  %254 = vst [vmem:[#allocation2 + $0x68] sm:$0x1] %v253_v12  ;;  %v408_v16 = vsel %vm391_vm1, %v6042_v54, 0  ;;  %v6049_v32 = vld [vmem:[#allocation2 + $0x30] sm:$0xfe]   ;;  %v6053_v59 = vld [vmem:[%s6439_s5 + $0x40] sm:$0xff]  }
  0x6d   : > { %5698 = vmatpush3.bf16.msra.mxu1 %v6032_v8  ;;  %v6047_v8 = vld [vmem:[%s7425_s1 + $0x168] sm:$0xff]   ;;  %v5021_v21 = vcombine.low %v408_v16, %v408_v16  ;;  %v5022_v22 = vcombine.high %v408_v16, %v408_v16  ;;  %v6050_v34 = vld [vmem:[#allocation2 + $0x38] ss:$0 sps:$4 sm:$0x11]   ;;  %v1675_v36 = vrot.slane %v6049_v32, 1  ;;  %v6052_v46 = vld [vmem:[%s7425_s1 + $0x190] sm:$0xff]  }
  0x6e   : > { %4144 = vmatmul.mubr.bf16.gmra.mrb[20].mxu0 %v6018_v28  ;;  %5593 = vmatprep.subr.bf16.mxu0 %v6047_v8 }
  0x6f   : > { %v6025_v50 = vld [vmem:[#allocation2 + $0x48] sm:$0xff]   ;;  %5699 = vmatprep.subr.bf16.mxu1 %v6048_v17  ;;  %v627_v28 = vshrl.u32 %v5021_v21, 16  ;;  %v630_v29 = vshll.u32 %v5021_v21, 16  ;;  %5594 = vmatpush3.bf16.msra.mxu0 %v6051_v23  ;;  %v635_v30 = vshrl.u32 %v5022_v22, 16  ;;  %v638_v31 = vshll.u32 %v5022_v22, 16 }
  0x70   : > { %4273 = vmatmul.mubr.bf16.gmra.mrb[20].mxu1 %v1668_v1  ;;  %v1335_v55 = vshrl.u32 %v6025_v50, 16  ;;  %v1337_v56 = vshll.u32 %v6025_v50, 16  ;;  %v1672_v1 = vrot.slane %v6040_v49, 1  ;;  %v6027_v3 = vld [vmem:[#allocation2 + $0x48] sm:$0xff]   ;;  %v255_v50 = vld [vmem:[#allocation2 + $0x74] sm:$0x1] }
  0x71   : > { %4280 = vmatprep.mubr.bf16.mxu1 %v6028_v62  ;;  %v6026_v53 = vld [vmem:[#allocation2 + $0x50] ss:$0 sps:$4 sm:$0x11]   ;;  %v618_v62 = vshrl.u32 %v5020_v48, 16  ;;  %v637_v35 = vrot.slane %v635_v30, 7  ;;  %v256_v54 = vsel %vm6461_vm6, 0, %v255_v50  ;;  %5700 = vmatpush3.bf16.msra.mxu1 %v6052_v46 }
  0x72   : > { %v1342_v61 = vshll.u32 %v6026_v53, 16  ;;  %v871_v0 = vld [vmem:[#allocation2 + $0x54] sm:$0xf]  ;;  %v1339_v2 = vrot.slane %v1337_v56, 1  ;;  %v1674_v15 = vsel %vm1662_vm11, %v1672_v1, %v1673_v7  ;;  %v878_v40 = vld [vmem:[#allocation2 + $0x60] sm:$0xf] }
  0x73   : > { %v620_v10 = vrot.slane %v618_v62, 7  ;;  %v872_v14 = vsel %vm6474_vm9, %v615_v4, %v871_v0  ;;  %v882_v42 = vld [vmem:[#allocation2 + $0x68] sm:$0x1]  ;;  %v640_v44 = vor.u32 %v638_v31, %v637_v35  ;;  %v642_v45 = vrot.slane %v637_v35, 4  ;;  %v205_v49 = vld [vmem:[#allocation2 + $0x6c] sm:$0x1] }
  0x74   : > { %v1344_v9 = vrot.slane %v1342_v61, 1  ;;  %v1340_v13 = vor.u32 %v1339_v2, %v1335_v55  ;;  %873 = vst [vmem:[#allocation2 + $0x54] sm:$0xf] %v872_v14  ;;  %v206_v53 = vsel %vm6450_vm4, 0, %v205_v49  ;;  %257 = vst [vmem:[#allocation2 + $0x74] sm:$0x1] %v256_v54 }
  0x75   : > { %v623_v18 = vor.u32 %v621_v63, %v620_v10  ;;  %v625_v19 = vrot.slane %v620_v10, 4  ;;  %v883_v52 = vsel %vm6450_vm4, %v642_v45, %v882_v42  ;;  %207 = vst [vmem:[#allocation2 + $0x6c] sm:$0x1] %v206_v53  ;;  %v6060_v62 = vld [vmem:[%s7425_s1 + $0x170] sm:$0xff]   ;;  %v410_v1 = vsel %vm391_vm1, %v6053_v59, 0  ;;  %v6067_v49 = vld [vmem:[%s7425_s1 + $0x1d8] sm:$0xff]  }
  0x76   : > { %v1345_v24 = vsel %vm1261_vm7, %v1340_v13, %v1344_v9  ;;  %884 = vst [vmem:[#allocation2 + $0x68] sm:$0x1] %v883_v52  ;;  %v6058_v4 = vld [vmem:[#allocation2 + $0x3c] sm:$0xfe]   ;;  %5595 = vmatprep.subr.bf16.mxu0 %v6060_v62  ;;  %v5024_v7 = vcombine.high %v410_v1, %v410_v1  ;;  %v208_v35 = vld [vmem:[#allocation2 + $0x78] sm:$0x1]  ;;  %5701 = vmatprep.subr.bf16.mxu1 %v6067_v49 }
  0x77   : > { %4151 = vmatprep.mubr.bf16.mxu0 %v1345_v24  ;;  %v624_v25 = vsel %vm6482_vm10, %v616_v5, %v623_v18  ;;  %v876_v26 = vsel %vm6450_vm4, %v625_v19, %v875_v6  ;;  %v6059_v5 = vld [vmem:[#allocation2 + $0x44] ss:$0 sps:$4 sm:$0x11]   ;;  %v1678_v21 = vrot.slane %v6058_v4, 1  ;;  %v6068_v52 = vld [vmem:[#allocation2 + $0x48] sm:$0xfe]  }
  0x78   : > { %4281 = vmatmul.mubr.bf16.gmra.mrb[24].mxu1 %v1671_v33  ;;  %4152 = vmatmul.mubr.bf16.gmra.mrb[24].mxu0 %v6027_v3  ;;  %874 = vst [vmem:[#allocation2 + $0x58] sm:$0xf] %v624_v25  ;;  %877 = vst [vmem:[#allocation2 + $0x5c] sm:$0x1] %v876_v26  ;;  %v629_v33 = vrot.slane %v627_v28, 7  ;;  %v5023_v3 = vcombine.low %v410_v1, %v410_v1  ;;  %v652_v17 = vshrl.u32 %v5024_v7, 16 }
  0x79   : > { %4288 = vmatprep.mubr.bf16.mxu1 %v6039_v43  ;;  %v1676_v43 = vrot.slane %v6050_v34, 1  ;;  %v655_v18 = vshll.u32 %v5024_v7, 16  ;;  %v1679_v26 = vrot.slane %v6059_v5, 1  ;;  %v6061_v28 = vld [vmem:[%s7425_s1 + $0x130] sm:$0xff]   ;;  %v6070_v54 = vld [vmem:[%s7425_s1 + $0x198] sm:$0xff]   ;;  %v1681_v59 = vrot.slane %v6068_v52, 1 }
  0x7a   : > { %v632_v37 = vor.u32 %v630_v29, %v629_v33  ;;  %v633_v38 = vrot.slane %v629_v33, 4  ;;  %v644_v9 = vshrl.u32 %v5023_v3, 16  ;;  %v654_v31 = vrot.slane %v652_v17, 7  ;;  %5596 = vmatpush3.bf16.msra.mxu0 %v6061_v28  ;;  %v6069_v53 = vld [vmem:[#allocation2 + $0x50] ss:$0 sps:$4 sm:$0x11]   ;;  %5702 = vmatpush3.bf16.msra.mxu1 %v6070_v54 }
  0x7b   : > { %v1677_v48 = vsel %vm1662_vm11, %v1675_v36, %v1676_v43  ;;  %v889_v25 = vld [vmem:[#allocation2 + $0x74] sm:$0x1]  ;;  %v1680_v34 = vsel %vm1662_vm11, %v1678_v21, %v1679_v26  ;;  %v258_v36 = vld [vmem:[#allocation2 + $0x80] sm:$0x1]  ;;  %v6062_v43 = vld [vmem:[%s6439_s5 + $0x48] sm:$0xff]  }
  0x7c   : > { %v879_v47 = vsel %vm6474_vm9, %v632_v37, %v878_v40  ;;  %v641_v51 = vsel %vm6482_vm10, %v633_v38, %v640_v44  ;;  %v646_v14 = vrot.slane %v644_v9, 7  ;;  %v885_v19 = vld [vmem:[#allocation2 + $0x6c] sm:$0xf]  ;;  %v657_v37 = vor.u32 %v655_v18, %v654_v31  ;;  %v6071_v4 = vld [vmem:[%s6439_s5 + $0x50] sm:$0xff]   ;;  %v6079_v26 = vld [vmem:[%s7425_s1 + $0x138] sm:$0xff]  }
  0x7d   : > { %880 = vst [vmem:[#allocation2 + $0x60] sm:$0xf] %v879_v47  ;;  %881 = vst [vmem:[#allocation2 + $0x64] sm:$0xf] %v641_v51  ;;  %v659_v38 = vrot.slane %v654_v31, 4  ;;  %v209_v40 = vsel %vm6450_vm4, 0, %v208_v35 }
  0x7e   : > { %v6044_v11 = vld [vmem:[#allocation2 + $0x68] ss:$0 sps:$4 sm:$0x11]   ;;  %v650_v24 = vrot.slane %v646_v14, 4  ;;  %v259_v42 = vsel %vm6461_vm6, 0, %v258_v36  ;;  %v414_v18 = vsel %vm391_vm1, %v6071_v4, 0 }
  0x7f   : > { %v6036_v55 = vld [vmem:[#allocation2 + $0x54] sm:$0xff]   ;;  %v6037_v56 = vld [vmem:[#allocation2 + $0x5c] ss:$0 sps:$4 sm:$0x11]   ;;  %v1366_v16 = vshll.u32 %v6044_v11, 16  ;;  %v890_v47 = vsel %vm6450_vm4, %v659_v38, %v889_v25  ;;  %v6796_v52 = vld [vmem:[#allocation2 + $0xc] sm:$0xff]  }
  0x80   : > { %4289 = vmatmul.mubr.bf16.gmra.mrb[28].mxu1 %v1674_v15  ;;  %v1347_v57 = vshrl.u32 %v6036_v55, 16  ;;  %v1349_v58 = vshll.u32 %v6036_v55, 16  ;;  %v1354_v61 = vshll.u32 %v6037_v56, 16  ;;  %v6038_v0 = vld [vmem:[#allocation2 + $0x54] sm:$0xff]   ;;  %v647_v15 = vshll.u32 %v5023_v3, 16 }
  0x81   : > { %4296 = vmatprep.mubr.bf16.mxu1 %v6046_v60  ;;  %v6057_v60 = vld [vmem:[#allocation2 + $0x48] sm:$0xff]   ;;  %v1368_v29 = vrot.slane %v1366_v16, 1  ;;  %210 = vst [vmem:[#allocation2 + $0x78] sm:$0x1] %v209_v40  ;;  %260 = vst [vmem:[#allocation2 + $0x80] sm:$0x1] %v259_v42  ;;  %v658_v46 = vsel %vm6482_vm10, %v650_v24, %v657_v37 }
  0x82   : > { %v1351_v63 = vrot.slane %v1349_v58, 1  ;;  %v1356_v2 = vrot.slane %v1354_v61, 1  ;;  %v649_v23 = vor.u32 %v647_v15, %v646_v14  ;;  %v6066_v45 = vld [vmem:[#allocation2 + $0x54] sm:$0xff]   ;;  %888 = vst [vmem:[#allocation2 + $0x70] sm:$0xf] %v658_v46  ;;  %v2064_v4 = vshrl.u32 %v6796_v52, 16 }
  0x83   : > { %891 = vst [vmem:[#allocation2 + $0x74] sm:$0x1] %v890_v47  ;;  %v211_v61 = vld [vmem:[#allocation2 + $0x84] sm:$0x1]  ;;  %v261_v9 = vld [vmem:[#allocation2 + $0x8c] sm:$0x1] }
  0x84   : > { %v1352_v6 = vor.u32 %v1351_v63, %v1347_v57  ;;  %v6043_v8 = vld [vmem:[#allocation2 + $0x60] sm:$0xff]   ;;  %v886_v33 = vsel %vm6474_vm9, %v649_v23, %v885_v19  ;;  %v212_v3 = vsel %vm6450_vm4, 0, %v211_v61  ;;  %v262_v11 = vsel %vm6461_vm6, 0, %v261_v9  ;;  %v6076_v24 = vld [vmem:[%s7425_s1 + $0x178] sm:$0xff]  }
  0x85   : > { %v1359_v12 = vshrl.u32 %v6043_v8, 16  ;;  %v1361_v13 = vshll.u32 %v6043_v8, 16  ;;  %v6045_v30 = vld [vmem:[#allocation2 + $0x60] sm:$0xff]   ;;  %887 = vst [vmem:[#allocation2 + $0x6c] sm:$0xf] %v886_v33  ;;  %v5028_v23 = vcombine.high %v414_v18, %v414_v18  ;;  %5597 = vmatprep.subr.bf16.mxu0 %v6076_v24 }
  0x86   : > { %v1357_v10 = vsel %vm1261_vm7, %v1352_v6, %v1356_v2  ;;  %213 = vst [vmem:[#allocation2 + $0x84] sm:$0x1] %v212_v3  ;;  %263 = vst [vmem:[#allocation2 + $0x8c] sm:$0x1] %v262_v11  ;;  %v6075_v19 = vld [vmem:[#allocation2 + $0x60] sm:$0xff]   ;;  %5598 = vmatpush3.bf16.msra.mxu0 %v6079_v26  ;;  %v6092_v26 = vld [vmem:[#allocation2 + $0x18] sm:$0xff]  }
  0x87   : > { %4159 = vmatprep.mubr.bf16.mxu0 %v1357_v10  ;;  %v1363_v22 = vrot.slane %v1361_v13, 1  ;;  %v686_v31 = vshrl.u32 %v5028_v23, 16  ;;  %v6077_v38 = vld [vmem:[#allocation2 + $0x54] sm:$0xfe]   ;;  %v6088_v9 = vld [vmem:[%s7425_s1 + $0x1a0] sm:$0xff]  }
  0x88   : > { %4297 = vmatmul.mubr.bf16.gmra.mrb[32].mxu1 %v1677_v48  ;;  %4160 = vmatmul.mubr.bf16.gmra.mrb[28].mxu0 %v6038_v0  ;;  %v412_v48 = vsel %vm391_vm1, %v6062_v43, 0  ;;  %v892_v0 = vld [vmem:[#allocation2 + $0x78] sm:$0xf]  ;;  %v896_v1 = vld [vmem:[#allocation2 + $0x80] sm:$0x1] }
  0x89   : > { %4304 = vmatprep.mubr.bf16.mxu1 %v6057_v60  ;;  %v1364_v32 = vor.u32 %v1363_v22, %v1359_v12  ;;  %v5025_v50 = vcombine.low %v412_v48, %v412_v48  ;;  %v5026_v51 = vcombine.high %v412_v48, %v412_v48  ;;  %v1682_v60 = vrot.slane %v6069_v53, 1  ;;  %v6078_v43 = vld [vmem:[#allocation2 + $0x5c] ss:$0 sps:$4 sm:$0x11]  }
  0x8a   : > { %v6055_v12 = vld [vmem:[#allocation2 + $0x74] ss:$0 sps:$4 sm:$0x11]   ;;  %v5027_v22 = vcombine.low %v414_v18, %v414_v18  ;;  %v688_v37 = vrot.slane %v686_v31, 7  ;;  %v6090_v31 = vld [vmem:[#allocation2 + $0x18] sm:$0xfe]  }
  0x8b   : > { %v1369_v44 = vsel %vm1261_vm7, %v1364_v32, %v1368_v29  ;;  %v661_v55 = vshrl.u32 %v5025_v50, 16  ;;  %v664_v56 = vshll.u32 %v5025_v50, 16  ;;  %v669_v57 = vshrl.u32 %v5026_v51, 16  ;;  %v6083_v3 = vld [vmem:[#allocation2 + $0x14] ss:$0 sps:$4 sm:$0x11]  }
  0x8c   : > { %4167 = vmatprep.mubr.bf16.mxu0 %v1369_v44  ;;  %v672_v58 = vshll.u32 %v5026_v51, 16  ;;  %v1683_v2 = vsel %vm1662_vm11, %v1681_v59, %v1682_v60  ;;  %v6054_v10 = vld [vmem:[#allocation2 + $0x6c] sm:$0xff]   ;;  %v1378_v21 = vshll.u32 %v6055_v12, 16  ;;  %v678_v29 = vshrl.u32 %v5027_v22, 16 }
  0x8d   : > { %v663_v62 = vrot.slane %v661_v55, 7  ;;  %v671_v63 = vrot.slane %v669_v57, 7  ;;  %v1371_v16 = vshrl.u32 %v6054_v10, 16  ;;  %v1373_v17 = vshll.u32 %v6054_v10, 16  ;;  %v6056_v33 = vld [vmem:[#allocation2 + $0x6c] sm:$0xff]  }
  0x8e   : > { %v1380_v28 = vrot.slane %v1378_v21, 1  ;;  %v899_v35 = vld [vmem:[#allocation2 + $0x84] sm:$0xf]  ;;  %v680_v36 = vrot.slane %v678_v29, 7  ;;  %v903_v42 = vld [vmem:[#allocation2 + $0x8c] sm:$0x1] }
  0x8f   : > { %v666_v5 = vor.u32 %v664_v56, %v663_v62  ;;  %v667_v6 = vrot.slane %v663_v62, 4  ;;  %v674_v7 = vor.u32 %v672_v58, %v671_v63  ;;  %v676_v8 = vrot.slane %v671_v63, 4  ;;  %v6080_v62 = vld [vmem:[#allocation2 + $0xc] sm:$0xfe]  }
  0x90   : > { %4305 = vmatmul.mubr.bf16.gmra.mrb[36].mxu1 %v1680_v34  ;;  %4168 = vmatmul.mubr.bf16.gmra.mrb[32].mxu0 %v6045_v30  ;;  %v1375_v25 = vrot.slane %v1373_v17, 1  ;;  %v681_v30 = vshll.u32 %v5027_v22, 16  ;;  %v689_v34 = vshll.u32 %v5028_v23, 16  ;;  %v684_v48 = vrot.slane %v680_v36, 4 }
  0x91   : > { %4312 = vmatprep.mubr.bf16.mxu1 %v6066_v45  ;;  %v675_v13 = vsel %vm6482_vm10, %v667_v6, %v674_v7  ;;  %v893_v14 = vsel %vm6474_vm9, %v666_v5, %v892_v0  ;;  %v897_v15 = vsel %vm6450_vm4, %v676_v8, %v896_v1  ;;  %v693_v49 = vrot.slane %v688_v37, 4  ;;  %v6081_v0 = vld [vmem:[#allocation2 + $0x14] ss:$0 sps:$4 sm:$0x11]   ;;  %v6085_v6 = vld [vmem:[%s7425_s1 + $0x1e0] sm:$0xff]  }
  0x92   : > { %894 = vst [vmem:[#allocation2 + $0x78] sm:$0xf] %v893_v14  ;;  %895 = vst [vmem:[#allocation2 + $0x7c] sm:$0xf] %v675_v13  ;;  %v1376_v32 = vor.u32 %v1375_v25, %v1371_v16  ;;  %v683_v44 = vor.u32 %v681_v30, %v680_v36  ;;  %v691_v45 = vor.u32 %v689_v34, %v688_v37  ;;  %v1684_v51 = vrot.slane %v6077_v38, 1  ;;  %v6089_v25 = vld [vmem:[%s7425_s1 + $0x200] sm:$0xff]  }
  0x93   : > { %898 = vst [vmem:[#allocation2 + $0x80] sm:$0x1] %v897_v15  ;;  %v1685_v56 = vrot.slane %v6078_v43, 1  ;;  %v904_v58 = vsel %vm6450_vm4, %v693_v49, %v903_v42  ;;  %v2066_v5 = vshll.u32 %v6796_v52, 16  ;;  %v2463_v8 = vrot.slane %v6080_v62, 1  ;;  %5703 = vmatprep.subr.bf16.mxu1 %v6085_v6  ;;  %5831 = vmatprep.subr.bf16.mxu0 %v6089_v25 }
  0x94   : > { %v1381_v40 = vsel %vm1261_vm7, %v1376_v32, %v1380_v28  ;;  %v900_v50 = vsel %vm6474_vm9, %v683_v44, %v899_v35  ;;  %v692_v57 = vsel %vm6482_vm10, %v684_v48, %v691_v45  ;;  %905 = vst [vmem:[#allocation2 + $0x8c] sm:$0x1] %v904_v58  ;;  %v2464_v11 = vrot.slane %v6081_v0, 1  ;;  %5704 = vmatpush3.bf16.msra.mxu1 %v6088_v9  ;;  %v6086_v16 = vld [vmem:[#allocation2 + $0x60] sm:$0xfe]  }
  0x95   : > { %4175 = vmatprep.mubr.bf16.mxu0 %v1381_v40  ;;  %901 = vst [vmem:[#allocation2 + $0x84] sm:$0xf] %v900_v50  ;;  %902 = vst [vmem:[#allocation2 + $0x88] sm:$0xf] %v692_v57  ;;  %v1686_v61 = vsel %vm1662_vm11, %v1684_v51, %v1685_v56  ;;  %v2071_v13 = vshll.u32 %v6083_v3, 16  ;;  %v1687_v22 = vrot.slane %v6086_v16, 1 }
  0x96   : > { %v6087_v18 = vld [vmem:[#allocation2 + $0x68] ss:$0 sps:$4 sm:$0x11]   ;;  %v2068_v29 = vrot.slane %v2066_v5, 1  ;;  %v2465_v34 = vsel %vm1662_vm11, %v2463_v8, %v2464_v11  ;;  %v2076_v37 = vshrl.u32 %v6092_v26, 16  ;;  %v2078_v38 = vshll.u32 %v6092_v26, 16 }
  0x97   : > { %v1688_v24 = vrot.slane %v6087_v18, 1  ;;  %v6091_v32 = vld [vmem:[#allocation2 + $0x20] ss:$0 sps:$4 sm:$0x11]   ;;  %v2073_v35 = vrot.slane %v2071_v13, 1  ;;  %v2466_v40 = vrot.slane %v6090_v31, 1 }
  0x98   : > { %4313 = vmatmul.mubr.bf16.gmra.mrb[40].mxu1 %v1683_v2  ;;  %4176 = vmatmul.mubr.bf16.gmra.mrb[36].mxu0 %v6056_v33  ;;  %v6084_v2 = vld [vmem:[#allocation2 + $0x6c] sm:$0xff]   ;;  %v6093_v36 = vld [vmem:[#allocation2 + $0x20] ss:$0 sps:$4 sm:$0x11]   ;;  %v2069_v43 = vor.u32 %v2068_v29, %v2064_v4  ;;  %v2467_v44 = vrot.slane %v6091_v32, 1  ;;  %v6099_v51 = vld [vmem:[#allocation2 + $0x24] sm:$0xff]  }
  0x99   : > { %4320 = vmatprep.mubr.bf16.mxu1 %v6075_v19  ;;  %v6063_v46 = vld [vmem:[#allocation2 + $0x78] sm:$0xff]   ;;  %v1689_v30 = vsel %vm1662_vm11, %v1687_v22, %v1688_v24  ;;  %v2083_v45 = vshll.u32 %v6093_v36, 16  ;;  %v6096_v48 = vld [vmem:[#allocation2 + $0x74] ss:$0 sps:$4 sm:$0x11]   ;;  %v6105_v3 = vld [vmem:[%s7425_s1 + $0x1a8] sm:$0xff]  }
  0x9a   : > { %v6064_v47 = vld [vmem:[#allocation2 + $0x80] ss:$0 sps:$4 sm:$0x11]   ;;  %v1383_v53 = vshrl.u32 %v6063_v46, 16  ;;  %v1385_v54 = vshll.u32 %v6063_v46, 16  ;;  %v6065_v63 = vld [vmem:[#allocation2 + $0x78] sm:$0xff]   ;;  %v2074_v52 = vsel %vm1261_vm7, %v2069_v43, %v2073_v35 }
  0x9b   : > { %v1390_v55 = vshll.u32 %v6064_v47, 16  ;;  %v6073_v12 = vld [vmem:[#allocation2 + $0x8c] ss:$0 sps:$4 sm:$0x11]   ;;  %v6094_v42 = vld [vmem:[#allocation2 + $0x78] sm:$0xff]   ;;  %v2080_v47 = vrot.slane %v2078_v38, 1 }
  0x9c   : > { %v1387_v59 = vrot.slane %v1385_v54, 1  ;;  %v6072_v10 = vld [vmem:[#allocation2 + $0x84] sm:$0xff]   ;;  %v1402_v17 = vshll.u32 %v6073_v12, 16  ;;  %v6095_v46 = vld [vmem:[#allocation2 + $0x6c] sm:$0xfe]   ;;  %v2085_v56 = vrot.slane %v2083_v45, 1 }
  0x9d   : > { %v1392_v60 = vrot.slane %v1390_v55, 1  ;;  %v1395_v14 = vshrl.u32 %v6072_v10, 16  ;;  %v1397_v15 = vshll.u32 %v6072_v10, 16  ;;  %v6074_v21 = vld [vmem:[#allocation2 + $0x84] sm:$0xff]   ;;  %v1690_v49 = vrot.slane %v6095_v46, 1  ;;  %v6109_v11 = vld [vmem:[#allocation2 + $0x30] sm:$0xff]  }
  0x9e   : > { %v1388_v1 = vor.u32 %v1387_v59, %v1383_v53  ;;  %v1404_v23 = vrot.slane %v1402_v17, 1  ;;  %v6097_v50 = vld [vmem:[#allocation2 + $0x24] sm:$0xfe]   ;;  %v1691_v53 = vrot.slane %v6096_v48, 1  ;;  %v2468_v55 = vsel %vm1662_vm11, %v2466_v40, %v2467_v44  ;;  %v6103_v5 = vld [vmem:[#allocation2 + $0x78] sm:$0xfe]  }
  0x9f   : > { %v1399_v19 = vrot.slane %v1397_v15, 1  ;;  %v6098_v54 = vld [vmem:[#allocation2 + $0x2c] ss:$0 sps:$4 sm:$0x11]   ;;  %v2469_v57 = vrot.slane %v6097_v50, 1  ;;  %v6101_v62 = vld [vmem:[#allocation2 + $0x84] sm:$0xff]  }
  0xa0   : > { %4321 = vmatmul.mubr.bf16.gmra.mrb[44].mxu1 %v1686_v61  ;;  %v1393_v7 = vsel %vm1261_vm7, %v1388_v1, %v1392_v60  ;;  %v1692_v58 = vsel %vm1662_vm11, %v1690_v49, %v1691_v53  ;;  %v6100_v59 = vld [vmem:[#allocation2 + $0x2c] ss:$0 sps:$4 sm:$0x11]   ;;  %v2088_v60 = vshrl.u32 %v6099_v51, 16  ;;  %v2090_v61 = vshll.u32 %v6099_v51, 16  ;;  %v6118_v46 = vld [vmem:[#allocation2 + $0x9c] sm:$0xff]  }
  0xa1   : > { %4328 = vmatprep.mubr.bf16.mxu1 %v6084_v2  ;;  %4183 = vmatprep.mubr.bf16.mxu0 %v1393_v7  ;;  %v1400_v28 = vor.u32 %v1399_v19, %v1395_v14  ;;  %v2470_v0 = vrot.slane %v6098_v54, 1  ;;  %v6102_v2 = vld [vmem:[%s7425_s1 + $0x1e8] sm:$0xff]   ;;  %v2095_v4 = vshll.u32 %v6100_v59, 16  ;;  %v6104_v6 = vld [vmem:[#allocation2 + $0x80] ss:$0 sps:$4 sm:$0x11]  }
  0xa2   : > { %4184 = vmatmul.mubr.bf16.gmra.mrb[40].mxu0 %v6065_v63  ;;  %v2081_v63 = vor.u32 %v2080_v47, %v2076_v37  ;;  %v2092_v1 = vrot.slane %v2090_v61, 1  ;;  %5705 = vmatprep.subr.bf16.mxu1 %v6102_v2  ;;  %v1693_v8 = vrot.slane %v6103_v5, 1  ;;  %v1694_v9 = vrot.slane %v6104_v6, 1  ;;  %v6106_v10 = vld [vmem:[%s7425_s1 + $0x208] sm:$0xff]   ;;  %v6107_v14 = vld [vmem:[#allocation2 + $0x30] sm:$0xfe]  }
  0xa3   : > { %v1405_v33 = vsel %vm1261_vm7, %v1400_v28, %v1404_v23  ;;  %5706 = vmatpush3.bf16.msra.mxu1 %v6105_v3  ;;  %v2471_v12 = vsel %vm1662_vm11, %v2469_v57, %v2470_v0  ;;  %v6108_v15 = vld [vmem:[#allocation2 + $0x38] ss:$0 sps:$4 sm:$0x11]   ;;  %v2097_v17 = vrot.slane %v2095_v4, 1  ;;  %v2472_v18 = vrot.slane %v6107_v14, 1  ;;  %v6111_v23 = vld [vmem:[#allocation2 + $0x90] sm:$0xff]  }
  0xa4   : > { %4191 = vmatprep.mubr.bf16.mxu0 %v1405_v33  ;;  %v2086_v7 = vsel %vm1261_vm7, %v2081_v63, %v2085_v56  ;;  %v1695_v13 = vsel %vm1662_vm11, %v1693_v8, %v1694_v9  ;;  %v2093_v16 = vor.u32 %v2092_v1, %v2088_v60  ;;  %v6110_v19 = vld [vmem:[#allocation2 + $0x38] ss:$0 sps:$4 sm:$0x11]   ;;  %v2473_v22 = vrot.slane %v6108_v15, 1  ;;  %v6112_v26 = vld [vmem:[#allocation2 + $0x84] sm:$0xfe]  }
  0xa5   : > { %v2100_v24 = vshrl.u32 %v6109_v11, 16  ;;  %v1696_v32 = vrot.slane %v6112_v26, 1  ;;  %v6114_v33 = vld [vmem:[#allocation2 + $0x3c] sm:$0xfe]   ;;  %v6119_v49 = vld [vmem:[%s7425_s1 + $0x1f0] sm:$0xff]   ;;  %v6126_v59 = vld [vmem:[#allocation2 + $0x48] sm:$0xff]  }
  0xa6   : > { %v2098_v28 = vsel %vm1261_vm7, %v2093_v16, %v2097_v17  ;;  %v2474_v31 = vsel %vm1662_vm11, %v2472_v18, %v2473_v22  ;;  %v6115_v36 = vld [vmem:[#allocation2 + $0x44] ss:$0 sps:$4 sm:$0x11]   ;;  %v2475_v38 = vrot.slane %v6114_v33, 1  ;;  %v6122_v50 = vld [vmem:[%s7425_s1 + $0x1b0] sm:$0xff]   ;;  %5707 = vmatprep.subr.bf16.mxu1 %v6119_v49  ;;  %v2126_v4 = vshll.u32 %v6126_v59, 16 }
  0xa7   : > { %v2476_v43 = vrot.slane %v6115_v36, 1  ;;  %v6117_v44 = vld [vmem:[#allocation2 + $0x44] ss:$0 sps:$4 sm:$0x11]   ;;  %v6120_v53 = vld [vmem:[#allocation2 + $0x90] sm:$0xfe]   ;;  %5708 = vmatpush3.bf16.msra.mxu1 %v6122_v50 }
  0xa8   : > { %4329 = vmatmul.mubr.bf16.gmra.mrb[48].mxu1 %v1689_v30  ;;  %v6113_v30 = vld [vmem:[#allocation2 + $0x8c] ss:$0 sps:$4 sm:$0x11]   ;;  %v6121_v54 = vld [vmem:[#allocation2 + $0x98] ss:$0 sps:$4 sm:$0x11]  }
  0xa9   : > { %4336 = vmatprep.mubr.bf16.mxu1 %v6094_v42  ;;  %v1697_v35 = vrot.slane %v6113_v30, 1  ;;  %v1699_v56 = vrot.slane %v6120_v53, 1  ;;  %v1700_v57 = vrot.slane %v6121_v54, 1  ;;  %v6124_v63 = vld [vmem:[#allocation2 + $0x48] sm:$0xfe]   ;;  %v2124_v5 = vshrl.u32 %v6126_v59, 16 }
  0xaa   : > { %4192 = vmatmul.mubr.bf16.gmra.mrb[44].mxu0 %v6074_v21  ;;  %v2102_v21 = vshll.u32 %v6109_v11, 16  ;;  %v6125_v0 = vld [vmem:[#allocation2 + $0x50] ss:$0 sps:$4 sm:$0x11]   ;;  %v2478_v1 = vrot.slane %v6124_v63, 1  ;;  %v6128_v6 = vld [vmem:[#allocation2 + $0xa8] sm:$0xff]  }
  0xab   : > { %4425 = vmatprep.mubr.bf16.mxu0 %v2465_v34  ;;  %v6116_v34 = vld [vmem:[#allocation2 + $0x3c] sm:$0xff]   ;;  %v1698_v42 = vsel %vm1662_vm11, %v1696_v32, %v1697_v35  ;;  %v2479_v2 = vrot.slane %v6125_v0, 1  ;;  %v6127_v3 = vld [vmem:[#allocation2 + $0x50] ss:$0 sps:$4 sm:$0x11]   ;;  %v2128_v8 = vrot.slane %v2126_v4, 1 }
  0xac   : > { %v2104_v29 = vrot.slane %v2102_v21, 1  ;;  %v2114_v45 = vshll.u32 %v6116_v34, 16  ;;  %v2112_v47 = vshrl.u32 %v6116_v34, 16  ;;  %v2131_v9 = vshll.u32 %v6127_v3, 16  ;;  %v6129_v11 = vld [vmem:[#allocation2 + $0x9c] sm:$0xfe]  }
  0xad   : > { %v1702_v14 = vrot.slane %v6129_v11, 1  ;;  %v6131_v15 = vld [vmem:[#allocation2 + $0x54] sm:$0xfe]   ;;  %v2129_v17 = vor.u32 %v2128_v8, %v2124_v5  ;;  %v6137_v36 = vld [vmem:[#allocation2 + $0xa8] sm:$0xfe]  }
  0xae   : > { %v2105_v40 = vor.u32 %v2104_v29, %v2100_v24  ;;  %v2116_v48 = vrot.slane %v2114_v45, 1  ;;  %v6133_v16 = vld [vmem:[#allocation2 + $0x54] sm:$0xff]   ;;  %v2481_v21 = vrot.slane %v6131_v15, 1  ;;  %v226_v54 = vld [vmem:[#allocation2 + $0xc0] sm:$0x1]  ;;  %v6151_v4 = vld [vmem:[#allocation2 + $0x6c] sm:$0xff]  }
  0xaf   : > { %v2136_v22 = vshrl.u32 %v6133_v16, 16  ;;  %v2138_v26 = vshll.u32 %v6133_v16, 16  ;;  %v6136_v32 = vld [vmem:[%s7425_s1 + $0x1f8] sm:$0xff]  }
  0xb0   : > { %4337 = vmatmul.mubr.bf16.gmra.mrb[52].mxu1 %v1692_v58  ;;  %v6123_v58 = vld [vmem:[%s7425_s1 + $0x210] sm:$0xff]   ;;  %v2117_v60 = vor.u32 %v2116_v48, %v2112_v47  ;;  %v6139_v33 = vld [vmem:[%s7425_s1 + $0x1b8] sm:$0xff]   ;;  %5709 = vmatprep.subr.bf16.mxu1 %v6136_v32  ;;  %v6142_v47 = vld [vmem:[#allocation2 + $0x68] ss:$0 sps:$4 sm:$0x11]  }
  0xb1   : > { %4344 = vmatprep.mubr.bf16.mxu1 %v6101_v62  ;;  %v1701_v62 = vsel %vm1662_vm11, %v1699_v56, %v1700_v57  ;;  %v2140_v30 = vrot.slane %v2138_v26, 1  ;;  %5710 = vmatpush3.bf16.msra.mxu1 %v6139_v33  ;;  %v6145_v59 = vld [vmem:[%s6439_s5 + $0x78] sm:$0xff]   ;;  %s6265_s5 = scalar_lea.vmem %s7376_s20, 4096 }
  0xb2   : > { %4426 = vmatmul.mubr.bf16.vlgmr.msra.gmra.mrb[48].mxu0 %v2074_v52  ;;  %v2119_v52 = vshll.u32 %v6117_v44, 16  ;;  %v6143_v44 = vld [vmem:[#allocation2 + $0x60] sm:$0xff]   ;;  %v424_v63 = vsel %vm391_vm1, %v6145_v59, 0  ;;  %v6148_v0 = vld [vmem:[#allocation2 + $0xbc] ss:$0 sps:$4 sm:$0x11]   ;;  %p6266_p11 = scmp.ne.s32.totalorder %s7376_s20, %s6265_s5  ;;  %p6273_p1 = scmp.lt.s32.totalorder %s6271_s29, %s6265_s5 }
  0xb3   : > { %5832 = vmatpush3.bf16.msra.mxu0 %v6089_v25  ;;  %4433 = vmatprep.mubr.bf16.mxu0 %v2468_v55  ;;  %v2107_v25 = vshll.u32 %v6110_v19, 16  ;;  %v2477_v55 = vsel %vm1662_vm11, %v2475_v38, %v2476_v43  ;;  %v6132_v19 = vld [vmem:[#allocation2 + $0x5c] ss:$0 sps:$4 sm:$0x11]   ;;  %v2141_v38 = vor.u32 %v2140_v30, %v2136_v22  ;;  %v2148_v48 = vshrl.u32 %v6143_v44, 16 }
  0xb4   : > { %5833 = vmatprep.subr.bf16.mxu0 %v6106_v10  ;;  %v2121_v61 = vrot.slane %v2119_v52, 1  ;;  %v2482_v24 = vrot.slane %v6132_v19, 1  ;;  %v6140_v43 = vld [vmem:[%s7425_s1 + $0x218] sm:$0xff]   ;;  %v6144_v52 = vld [vmem:[#allocation2 + $0x68] ss:$0 sps:$4 sm:$0x11]   ;;  %p6267_p12 = pnand %p6266_p11, %p6391_p5  ;;  %p6274_p2 = por %p6273_p1, %p6272_p0 }
  0xb5   : > { %v2109_v37 = vrot.slane %v2107_v25, 1  ;;  %v6134_v25 = vld [vmem:[#allocation2 + $0x5c] ss:$0 sps:$4 sm:$0x11]   ;;  %v2150_v53 = vshll.u32 %v6143_v44, 16  ;;  %v2155_v57 = vshll.u32 %v6144_v52, 16 }
  0xb6   : > { %v2483_v34 = vsel %vm1662_vm11, %v2481_v21, %v2482_v24  ;;  %v1709_v5 = vrot.slane %v6148_v0, 1  ;;  %v6152_v22 = vld [vmem:[#allocation2 + $0x74] ss:$0 sps:$4 sm:$0x11]   ;;  %p6268_p13 = pneg %p6267_p12 }
  0xb7   : > { %5834 = vmatpush3.bf16.msra.mxu0 %v6106_v10  ;;  %v2110_v51 = vsel %vm1261_vm7, %v2105_v40, %v2109_v37  ;;  %v2480_v10 = vsel %vm1662_vm11, %v2478_v1, %v2479_v2  ;;  %v6138_v37 = vld [vmem:[#allocation2 + $0xb0] ss:$0 sps:$4 sm:$0x11]   ;;  %v1705_v40 = vrot.slane %v6137_v36, 1  ;;  %v2152_v56 = vrot.slane %v2150_v53, 1 }
  0xb8   : > { %4345 = vmatmul.mubr.bf16.gmra.mrb[56].mxu1 %v1695_v13  ;;  %5835 = vmatprep.subr.bf16.mxu0 %v6123_v58  ;;  %v6130_v13 = vld [vmem:[#allocation2 + $0xa4] ss:$0 sps:$4 sm:$0x11]   ;;  %v5037_v1 = vcombine.low %v424_v63, %v424_v63  ;;  %v5038_v2 = vcombine.high %v424_v63, %v424_v63  ;;  %v2167_v30 = vshll.u32 %v6152_v22, 16  ;;  %p6275_p3 = pnand %p6274_p2, %p6268_p13 }
  0xb9   : > { %4352 = vmatprep.mubr.bf16.mxu1 %v6111_v23  ;;  %v1703_v18 = vrot.slane %v6130_v13, 1  ;;  %v6150_v13 = vld [vmem:[#allocation2 + $0x74] ss:$0 sps:$4 sm:$0x11]  }
  0xba   : > { %4434 = vmatmul.mubr.bf16.gmra.mrb[52].mxu0 %v2086_v7  ;;  %v2122_v7 = vsel %vm1261_vm7, %v2117_v60, %v2121_v61  ;;  %v6868_v60 = vld [vmem:[#allocation2 + $0xb4] sm:$0xfe]   ;;  %v2153_v61 = vor.u32 %v2152_v56, %v2148_v48  ;;  %v763_v8 = vshrl.u32 %v5037_v1, 16  ;;  %v774_v11 = vshll.u32 %v5038_v2, 16 }
  0xbb   : > { %4441 = vmatprep.mubr.bf16.mxu0 %v2471_v12  ;;  %5836 = vmatpush3.bf16.msra.mxu0 %v6123_v58  ;;  %v2133_v12 = vrot.slane %v2131_v9, 1  ;;  %v1704_v23 = vsel %vm1662_vm11, %v1702_v14, %v1703_v18  ;;  %v227_v58 = vsel %vm6450_vm4, 0, %v226_v54  ;;  %v1708_v3 = vrot.slane %v6868_v60, 1  ;;  %v6158_v44 = vld [vmem:[#allocation2 + $0x80] ss:$0 sps:$4 sm:$0x11]  }
  0xbc   : > { %5837 = vmatprep.subr.bf16.mxu0 %v6140_v43  ;;  %228 = vst [vmem:[#allocation2 + $0xc0] sm:$0x1] %v227_v58  ;;  %v766_v9 = vshll.u32 %v5037_v1, 16  ;;  %v765_v15 = vrot.slane %v763_v8, 7  ;;  %v2162_v18 = vshll.u32 %v6151_v4, 16  ;;  %v2488_v21 = vrot.slane %v6150_v13, 1 }
  0xbd   : > { %v2134_v29 = vsel %vm1261_vm7, %v2129_v17, %v2133_v12  ;;  %v2160_v17 = vshrl.u32 %v6151_v4, 16  ;;  %v2491_v48 = vrot.slane %v6158_v44, 1  ;;  %v1710_v53 = vsel %vm1662_vm11, %v1708_v3, %v1709_v5  ;;  %v6162_v58 = vld [vmem:[#allocation2 + $0x2c] ss:$0 sps:$4 sm:$0x11]   ;;  %v6155_v4 = vld [vmem:[#allocation2 + $0x18] sm:$0xff]  }
  0xbe   : > { %v769_v24 = vrot.slane %v765_v15, 4  ;;  %v2884_v1 = vshll.u32 %v6162_v58, 16  ;;  %v6164_v3 = vld [vmem:[#allocation2 + $0x84] sm:$0xfe]  }
  0xbf   : > { %5838 = vmatpush3.bf16.msra.mxu0 %v6140_v43  ;;  %v6157_v43 = vld [vmem:[#allocation2 + $0x78] sm:$0xfe]   ;;  %v6165_v8 = vld [vmem:[#allocation2 + $0x8c] ss:$0 sps:$4 sm:$0x11]  }
  0xc0   : > { %4353 = vmatmul.mubr.bf16.gmra.mrb[60].mxu1 %v1698_v42  ;;  %v1706_v42 = vrot.slane %v6138_v37, 1  ;;  %v2169_v37 = vrot.slane %v2167_v30, 1  ;;  %v6163_v30 = vld [vmem:[#allocation2 + $0x24] sm:$0xff]  }
  0xc1   : > { %4360 = vmatprep.mubr.bf16.mxu1 %v6118_v46  ;;  %v6141_v46 = vld [vmem:[#allocation2 + $0x60] sm:$0xfe]  }
  0xc2   : > { %4442 = vmatmul.mubr.bf16.gmra.mrb[56].mxu0 %v2098_v28  ;;  %v6135_v28 = vld [vmem:[#allocation2 + $0xb4] sm:$0xff]   ;;  %v1707_v45 = vsel %vm1662_vm11, %v1705_v40, %v1706_v42  ;;  %v2484_v50 = vrot.slane %v6141_v46, 1  ;;  %v2490_v46 = vrot.slane %v6157_v43, 1 }
  0xc3   : > { %4449 = vmatprep.mubr.bf16.mxu0 %v2474_v31  ;;  %v2143_v31 = vshll.u32 %v6134_v25, 16  ;;  %v934_v19 = vld [vmem:[#allocation2 + $0xc0] sm:$0xf]  ;;  %v6159_v42 = vld [vmem:[#allocation2 + $0x78] sm:$0xff]  }
  0xc4   : > { %v2492_v54 = vsel %vm1662_vm11, %v2490_v46, %v2491_v48  ;;  %v6177_v48 = vld [vmem:[#allocation2 + $0x44] ss:$0 sps:$4 sm:$0x11]  }
  0xc5   : > { %v2145_v35 = vrot.slane %v2143_v31, 1 }
  0xc7   : > { %v2146_v49 = vsel %vm1261_vm7, %v2141_v38, %v2145_v35  ;;  %v6156_v35 = vld [vmem:[%s7425_s1 + $0x220] sm:$0xff]  }
  0xc8   : > { %4361 = vmatmul.mubr.bf16.gmra.mrb[64].mxu1 %v1701_v62  ;;  %v2157_v62 = vrot.slane %v2155_v57, 1  ;;  %5839 = vmatprep.subr.bf16.mxu0 %v6156_v35 }
  0xc9   : > { %4368 = vmatprep.mubr.bf16.mxu1 %v6128_v6  ;;  %v6149_v6 = vld [vmem:[#allocation2 + $0x6c] sm:$0xfe]   ;;  %5840 = vmatpush3.bf16.msra.mxu0 %v6156_v35 }
  0xca   : > { %4450 = vmatmul.mubr.bf16.gmra.mrb[60].mxu0 %v2110_v51  ;;  %v2485_v51 = vrot.slane %v6142_v47, 1  ;;  %v2158_v12 = vsel %vm1261_vm7, %v2153_v61, %v2157_v62  ;;  %v2487_v14 = vrot.slane %v6149_v6, 1  ;;  %v2172_v47 = vshrl.u32 %v6159_v42, 16 }
  0xcb   : > { %4457 = vmatprep.mubr.bf16.mxu0 %v2477_v55 }
  0xcc   : > { %v2486_v55 = vsel %vm1662_vm11, %v2484_v50, %v2485_v51  ;;  %v2174_v50 = vshll.u32 %v6159_v42, 16  ;;  %v6161_v51 = vld [vmem:[#allocation2 + $0x24] sm:$0xff]  }
  0xcd   : > { %v2877_v59 = vshrl.u32 %v6161_v51, 16  ;;  %v2879_v60 = vshll.u32 %v6161_v51, 16 }
  0xcf   : > { %v2881_v0 = vrot.slane %v2879_v60, 1 }
  0xd0   : > { %4369 = vmatmul.mubr.bf16.gmra.mrb[68].mxu1 %v1704_v23  ;;  %v768_v23 = vor.u32 %v766_v9, %v765_v15  ;;  %v2493_v9 = vrot.slane %v6164_v3, 1 }
  0xd1   : > { %4376 = vmatprep.mubr.bf16.mxu1 %v6135_v28  ;;  %v2489_v28 = vsel %vm1662_vm11, %v2487_v14, %v2488_v21  ;;  %v2882_v6 = vor.u32 %v2881_v0, %v2877_v59  ;;  %v6168_v14 = vld [vmem:[#allocation2 + $0x30] sm:$0xff]   ;;  %v6169_v21 = vld [vmem:[#allocation2 + $0x38] ss:$0 sps:$4 sm:$0x11]  }
  0xd2   : > { %4458 = vmatmul.mubr.bf16.gmra.mrb[64].mxu0 %v2122_v7  ;;  %v6153_v7 = vld [vmem:[#allocation2 + $0x18] sm:$0xff]   ;;  %v935_v33 = vsel %vm6474_vm9, %v768_v23, %v934_v19  ;;  %v2889_v22 = vshrl.u32 %v6168_v14, 16  ;;  %v2891_v23 = vshll.u32 %v6168_v14, 16 }
  0xd3   : > { %4465 = vmatprep.mubr.bf16.mxu0 %v2480_v10  ;;  %v771_v10 = vshrl.u32 %v5038_v2, 16  ;;  %v2865_v26 = vshrl.u32 %v6153_v7, 16  ;;  %v2867_v31 = vshll.u32 %v6153_v7, 16  ;;  %936 = vst [vmem:[#allocation2 + $0xc0] sm:$0xf] %v935_v33  ;;  %v6166_v2 = vld [vmem:[#allocation2 + $0x84] sm:$0xff]  }
  0xd4   : > { %v2886_v7 = vrot.slane %v2884_v1, 1  ;;  %v2186_v13 = vshll.u32 %v6166_v2, 16  ;;  %v6172_v33 = vld [vmem:[#allocation2 + $0x90] sm:$0xfe]  }
  0xd5   : > { %v6873_v16 = vrot.slane %v771_v10, 7  ;;  %v2869_v38 = vrot.slane %v2867_v31, 1  ;;  %v2184_v10 = vshrl.u32 %v6166_v2, 16  ;;  %v6182_v2 = vld [vmem:[#allocation2 + $0xa4] ss:$0 sps:$4 sm:$0x11]  }
  0xd6   : > { %v2887_v15 = vsel %vm1261_vm7, %v2882_v6, %v2886_v7 }
  0xd7   : > { %v776_v25 = vor.u32 %v774_v11, %v6873_v16  ;;  %v2494_v11 = vrot.slane %v6165_v8, 1  ;;  %v2215_v8 = vshll.u32 %v6182_v2, 16 }
  0xd8   : > { %4377 = vmatmul.mubr.bf16.gmra.mrb[72].mxu1 %v1707_v45  ;;  %v2870_v45 = vor.u32 %v2869_v38, %v2865_v26  ;;  %v2896_v26 = vshll.u32 %v6169_v21, 16  ;;  %v2496_v38 = vrot.slane %v6172_v33, 1 }
  0xd9   : > { %v777_v32 = vsel %vm6482_vm10, %v769_v24, %v776_v25 }
  0xda   : > { %4466 = vmatmul.mubr.bf16.gmra.mrb[68].mxu0 %v2134_v29  ;;  %v2164_v29 = vrot.slane %v2162_v18, 1  ;;  %937 = vst [vmem:[#allocation2 + $0xc4] sm:$0xf] %v777_v32  ;;  %v2188_v18 = vrot.slane %v2186_v13, 1  ;;  %v2898_v32 = vrot.slane %v2896_v26, 1  ;;  %v2217_v13 = vrot.slane %v2215_v8, 1 }
  0xdb   : > { %4473 = vmatprep.mubr.bf16.mxu0 %v2483_v34  ;;  %v6154_v34 = vld [vmem:[#allocation2 + $0x20] ss:$0 sps:$4 sm:$0x11]   ;;  %v6191_v26 = vld [vmem:[#allocation2 + $0x54] sm:$0xff]  }
  0xdc   : > { %v2165_v36 = vor.u32 %v2164_v29, %v2160_v17  ;;  %v2872_v40 = vshll.u32 %v6154_v34, 16  ;;  %v2495_v17 = vsel %vm1662_vm11, %v2493_v9, %v2494_v11  ;;  %v2189_v24 = vor.u32 %v2188_v18, %v2184_v10  ;;  %v6171_v29 = vld [vmem:[%s7425_s1 + $0x228] sm:$0xff]   ;;  %v6174_v34 = vld [vmem:[#allocation2 + $0x90] sm:$0xff]   ;;  %v6201_v8 = vld [vmem:[%s7425_s1 + $0x238] sm:$0xff]  }
  0xdd   : > { %5841 = vmatprep.subr.bf16.mxu0 %v6171_v29  ;;  %v2198_v43 = vshll.u32 %v6174_v34, 16  ;;  %v6184_v9 = vld [vmem:[#allocation2 + $0x50] ss:$0 sps:$4 sm:$0x11]  }
  0xde   : > { %v2170_v41 = vsel %vm1261_vm7, %v2165_v36, %v2169_v37  ;;  %v2874_v39 = vrot.slane %v2872_v40, 1  ;;  %v6173_v36 = vld [vmem:[#allocation2 + $0x98] ss:$0 sps:$4 sm:$0x11]   ;;  %v6176_v37 = vld [vmem:[#allocation2 + $0x3c] sm:$0xff]   ;;  %5842 = vmatpush3.bf16.msra.mxu0 %v6171_v29  ;;  %v2196_v40 = vshrl.u32 %v6174_v34, 16 }
  0xdf   : > { %v2497_v42 = vrot.slane %v6173_v36, 1  ;;  %v2200_v46 = vrot.slane %v2198_v43, 1  ;;  %v2920_v14 = vshll.u32 %v6184_v9, 16  ;;  %v6186_v18 = vld [vmem:[%s7425_s1 + $0x230] sm:$0xff]   ;;  %v2925_v34 = vshrl.u32 %v6191_v26, 16 }
  0xe0   : > { %v2875_v56 = vsel %vm1261_vm7, %v2870_v45, %v2874_v39  ;;  %v2901_v39 = vshrl.u32 %v6176_v37, 16  ;;  %5843 = vmatprep.subr.bf16.mxu0 %v6186_v18 }
  0xe1   : > { %v6146_v52 = vld [vmem:[#allocation2 + $0xc0] sm:$0xff]   ;;  %v2498_v45 = vsel %vm1662_vm11, %v2496_v38, %v2497_v42  ;;  %v2201_v51 = vor.u32 %v2200_v46, %v2196_v40  ;;  %v2922_v21 = vrot.slane %v2920_v14, 1  ;;  %v6192_v38 = vld [vmem:[#allocation2 + $0x5c] ss:$0 sps:$4 sm:$0x11]   ;;  %v2927_v40 = vshll.u32 %v6191_v26, 16 }
  0xe2   : > { %4474 = vmatmul.mubr.bf16.gmra.mrb[72].mxu0 %v2146_v49  ;;  %v6160_v49 = vld [vmem:[#allocation2 + $0x80] ss:$0 sps:$4 sm:$0x11]   ;;  %4384 = vmatprep.mubr.bf16.mxu1 %v6146_v52  ;;  %v6196_v46 = vld [vmem:[#allocation2 + $0xb4] sm:$0xff]   ;;  %v276_v14 = vld [vmem:[#allocation2 + $0xc8] sm:$0x1] }
  0xe3   : > { %4481 = vmatprep.mubr.bf16.mxu0 %v2486_v55  ;;  %v2176_v55 = vrot.slane %v2174_v50, 1  ;;  %v2179_v57 = vshll.u32 %v6160_v49, 16  ;;  %4385 = vmatmul.mubr.bf16.gmra.mrb[76].mxu1 %v1710_v53  ;;  %v2903_v49 = vshll.u32 %v6176_v37, 16  ;;  %v778_v26 = vrot.slane %v6873_v16, 4 }
  0xe4   : > { %4586 = vmatprep.mubr.bf16.mxu1 %v2875_v56  ;;  %v6170_v56 = vld [vmem:[#allocation2 + $0x30] sm:$0xff]   ;;  %5844 = vmatpush3.bf16.msra.mxu0 %v6186_v18  ;;  %v277_v18 = vsel %vm6461_vm6, 0, %v276_v14 }
  0xe5   : > { %v2177_v61 = vor.u32 %v2176_v55, %v2172_v47  ;;  %v2181_v63 = vrot.slane %v2179_v57, 1  ;;  %v2905_v53 = vrot.slane %v2903_v49, 1  ;;  %v6181_v55 = vld [vmem:[#allocation2 + $0x9c] sm:$0xff]   ;;  %5845 = vmatprep.subr.bf16.mxu0 %v6201_v8  ;;  %278 = vst [vmem:[#allocation2 + $0xc8] sm:$0x1] %v277_v18 }
  0xe6   : > { %v6179_v57 = vld [vmem:[#allocation2 + $0x9c] sm:$0xfe]   ;;  %v2208_v0 = vshrl.u32 %v6181_v55, 16  ;;  %v2210_v3 = vshll.u32 %v6181_v55, 16  ;;  %v2232_v55 = vshrl.u32 %v6196_v46, 16 }
  0xe7   : > { %v2182_v5 = vsel %vm1261_vm7, %v2177_v61, %v2181_v63  ;;  %v2906_v59 = vor.u32 %v2905_v53, %v2901_v39  ;;  %v6180_v61 = vld [vmem:[#allocation2 + $0xa4] ss:$0 sps:$4 sm:$0x11]   ;;  %v2499_v63 = vrot.slane %v6179_v57, 1 }
  0xe8   : > { %v2500_v1 = vrot.slane %v6180_v61, 1  ;;  %v2212_v7 = vrot.slane %v2210_v3, 1  ;;  %v6195_v53 = vld [vmem:[#allocation2 + $0xbc] ss:$0 sps:$4 sm:$0x11]   ;;  %5846 = vmatpush3.bf16.msra.mxu0 %v6201_v8 }
  0xe9   : > { %v2506_v57 = vrot.slane %v6195_v53, 1  ;;  %v6212_v18 = vld [vmem:[#allocation2 + $0x2c] ss:$0 sps:$4 sm:$0x11]  }
  0xea   : > { %4482 = vmatmul.mubr.bf16.gmra.mrb[76].mxu0 %v2158_v12  ;;  %v6167_v12 = vld [vmem:[#allocation2 + $0x8c] ss:$0 sps:$4 sm:$0x11]   ;;  %v2501_v6 = vsel %vm1662_vm11, %v2499_v63, %v2500_v1 }
  0xeb   : > { %4489 = vmatprep.mubr.bf16.mxu0 %v2489_v28  ;;  %v2191_v19 = vshll.u32 %v6167_v12, 16  ;;  %4587 = vmatmul.mubr.bf16.vlgmr.msra.gmra.mrb[80].mxu1 %v6155_v4  ;;  %v2893_v28 = vrot.slane %v2891_v23, 1  ;;  %v6183_v4 = vld [vmem:[#allocation2 + $0x48] sm:$0xff]   ;;  %v2213_v12 = vor.u32 %v2212_v7, %v2208_v0 }
  0xec   : > { %4594 = vmatprep.mubr.bf16.mxu1 %v2887_v15  ;;  %v2913_v10 = vshrl.u32 %v6183_v4, 16  ;;  %v2915_v11 = vshll.u32 %v6183_v4, 16  ;;  %v6178_v15 = vld [vmem:[#allocation2 + $0x3c] sm:$0xff]   ;;  %v6189_v23 = vld [vmem:[#allocation2 + $0xa8] sm:$0xff]  }
  0xed   : > { %v2193_v25 = vrot.slane %v2191_v19, 1  ;;  %v2894_v35 = vor.u32 %v2893_v28, %v2889_v22  ;;  %v2218_v19 = vsel %vm1261_vm7, %v2213_v12, %v2217_v13  ;;  %v6187_v22 = vld [vmem:[#allocation2 + $0xa8] sm:$0xfe]   ;;  %v2220_v29 = vshrl.u32 %v6189_v23, 16 }
  0xee   : > { %v2502_v28 = vrot.slane %v6187_v22, 1  ;;  %v2222_v33 = vshll.u32 %v6189_v23, 16  ;;  %v6199_v0 = vld [vmem:[#allocation2 + $0x68] ss:$0 sps:$4 sm:$0x11]   ;;  %v6927_v22 = vld [vmem:[#allocation2 + $0xc0] sm:$0xff]  }
  0xef   : > { %v2194_v31 = vsel %vm1261_vm7, %v2189_v24, %v2193_v25  ;;  %v2899_v44 = vsel %vm1261_vm7, %v2894_v35, %v2898_v32  ;;  %v6188_v25 = vld [vmem:[#allocation2 + $0xb0] ss:$0 sps:$4 sm:$0x11]  }
  0xf0   : > { %v6190_v32 = vld [vmem:[#allocation2 + $0xb0] ss:$0 sps:$4 sm:$0x11]   ;;  %v2224_v36 = vrot.slane %v2222_v33, 1 }
  0xf1   : > { %v2227_v37 = vshll.u32 %v6190_v32, 16  ;;  %v2246_v32 = vshll.u32 %v6927_v22, 16 }
  0xf2   : > { %4490 = vmatmul.mubr.bf16.gmra.mrb[80].mxu0 %v2170_v41  ;;  %v6175_v41 = vld [vmem:[#allocation2 + $0x98] ss:$0 sps:$4 sm:$0x11]   ;;  %v2225_v43 = vor.u32 %v2224_v36, %v2220_v29 }
  0xf3   : > { %4497 = vmatprep.mubr.bf16.mxu0 %v2492_v54  ;;  %v2203_v47 = vshll.u32 %v6175_v41, 16  ;;  %4595 = vmatmul.mubr.bf16.gmra.mrb[84].mxu1 %v6163_v30  ;;  %v2908_v54 = vshll.u32 %v6177_v48, 16  ;;  %v6185_v41 = vld [vmem:[#allocation2 + $0x48] sm:$0xff]   ;;  %v2229_v39 = vrot.slane %v2227_v37, 1 }
  0xf4   : > { %4602 = vmatprep.mubr.bf16.mxu1 %v2899_v44  ;;  %v2929_v44 = vrot.slane %v2927_v40, 1 }
  0xf5   : > { %v2205_v52 = vrot.slane %v2203_v47, 1  ;;  %v2910_v60 = vrot.slane %v2908_v54, 1  ;;  %v6194_v47 = vld [vmem:[#allocation2 + $0xb4] sm:$0xfe]   ;;  %v2230_v49 = vsel %vm1261_vm7, %v2225_v43, %v2229_v39  ;;  %v938_v39 = vld [vmem:[#allocation2 + $0xc8] sm:$0x1] }
  0xf6   : > { %v2505_v54 = vrot.slane %v6194_v47, 1  ;;  %v6213_v43 = vld [vmem:[#allocation2 + $0x78] sm:$0xff]  }
  0xf7   : > { %v2206_v58 = vsel %vm1261_vm7, %v2201_v51, %v2205_v52  ;;  %v2930_v51 = vor.u32 %v2929_v44, %v2925_v34  ;;  %v2961_v20 = vshrl.u32 %v6213_v43, 16 }
  0xf8   : > { %v2507_v61 = vsel %vm1662_vm11, %v2505_v54, %v2506_v57  ;;  %v2244_v57 = vshrl.u32 %v6927_v22, 16  ;;  %v6216_v22 = vld [vmem:[#allocation2 + $0x30] sm:$0xfe]  }
  0xfa   : > { %4498 = vmatmul.mubr.bf16.gmra.mrb[84].mxu0 %v2182_v5  ;;  %v2911_v5 = vsel %vm1261_vm7, %v2906_v59, %v2910_v60  ;;  %v2234_v59 = vshll.u32 %v6196_v46, 16  ;;  %v6198_v60 = vld [vmem:[#allocation2 + $0x60] sm:$0xff]   ;;  %v6209_v46 = vld [vmem:[#allocation2 + $0x18] sm:$0xfe]  }
  0xfb   : > { %4505 = vmatprep.mubr.bf16.mxu0 %v2495_v17  ;;  %4603 = vmatmul.mubr.bf16.gmra.mrb[88].mxu1 %v6170_v56  ;;  %v2917_v17 = vrot.slane %v2915_v11, 1  ;;  %v2937_v1 = vshrl.u32 %v6198_v60, 16  ;;  %v2939_v2 = vshll.u32 %v6198_v60, 16  ;;  %v3264_v60 = vrot.slane %v6209_v46, 1 }
  0xfc   : > { %4610 = vmatprep.mubr.bf16.mxu1 %v2911_v5  ;;  %v2236_v63 = vrot.slane %v2234_v59, 1  ;;  %v2944_v5 = vshll.u32 %v6199_v0, 16  ;;  %v6208_v59 = vld [vmem:[#allocation2 + $0x6c] sm:$0xff]  }
  0xfd   : > { %v2918_v24 = vor.u32 %v2917_v17, %v2913_v10  ;;  %v2941_v7 = vrot.slane %v2939_v2, 1 }
  0xfe   : > { %v2237_v3 = vor.u32 %v2236_v63, %v2232_v55  ;;  %v2946_v12 = vrot.slane %v2944_v5, 1  ;;  %v2963_v63 = vshll.u32 %v6213_v43, 16  ;;  %v6219_v43 = vld [vmem:[#allocation2 + $0x44] ss:$0 sps:$4 sm:$0x11]  }
  0xff   : > { %v2923_v30 = vsel %vm1261_vm7, %v2918_v24, %v2922_v21  ;;  %v2942_v17 = vor.u32 %v2941_v7, %v2937_v1  ;;  %v6946_v1 = vld [vmem:[#allocation2 + $0x24] sm:$0xfe]  }
 0x100   : > { %v2965_v2 = vrot.slane %v2963_v63, 1  ;;  %v6224_v63 = vld [vmem:[#allocation2 + $0x50] ss:$0 sps:$4 sm:$0x11]  }
 0x101   : > { %v6899_v50 = vpop.f32.mrb[0].mxu0  ;;  %v2947_v24 = vsel %vm1261_vm7, %v2942_v17, %v2946_v12 }
 0x102   : > { %4506 = vmatmul.mubr.bf16.gmra.mrb[88].mxu0 %v2194_v31  ;;  %v2503_v31 = vrot.slane %v6188_v25, 1  ;;  %v5376_v9 = vpop.f32.mrb[1].mxu0  ;;  %v6206_v25 = vld [vmem:[#allocation2 + $0x6c] sm:$0xff]  }
 0x103   : > { %4513 = vmatprep.mubr.bf16.mxu0 %v2498_v45  ;;  %4611 = vmatmul.mubr.bf16.gmra.mrb[92].mxu1 %v6178_v15  ;;  %v2932_v45 = vshll.u32 %v6192_v38, 16  ;;  %v6921_v13 = vadd.f32 %v5376_v9, %v6899_v50  ;;  %v5378_v15 = vpop.f32.mrb[2].mxu0  ;;  %v2949_v27 = vshrl.u32 %v6206_v25, 16  ;;  %v2951_v29 = vshll.u32 %v6206_v25, 16 }
 0x104   : > { %v2504_v35 = vsel %vm1662_vm11, %v2502_v28, %v2503_v31  ;;  %4618 = vmatprep.mubr.bf16.mxu1 %v2923_v30  ;;  %v5379_v23 = vpop.f32.mrb[3].mxu0  ;;  %v6207_v28 = vld [vmem:[#allocation2 + $0x74] ss:$0 sps:$4 sm:$0x11]   ;;  %v6200_v30 = vld [vmem:[#allocation2 + $0x60] sm:$0xff]  }
 0x105   : > { %v2934_v52 = vrot.slane %v2932_v45, 1  ;;  %v6930_v50 = vadd.f32 %v5379_v23, %v5378_v15  ;;  %v6202_v31 = vld [vmem:[#allocation2 + $0xc0] sm:$0xfe]   ;;  %v2956_v36 = vshll.u32 %v6207_v28, 16  ;;  %v3267_v28 = vrot.slane %v6946_v1, 1 }
 0x107   : > { %v6888_v62 = vpop.f32.mrb[0].mxu1  ;;  %v2935_v56 = vsel %vm1261_vm7, %v2930_v51, %v2934_v52  ;;  %v2958_v45 = vrot.slane %v2956_v36, 1  ;;  %v6210_v51 = vld [vmem:[#allocation2 + $0x20] ss:$0 sps:$4 sm:$0x11]  }
 0x108   : > { %v5448_v42 = vpop.f32.mrb[1].mxu1 }
 0x109   : > { %v6911_v48 = vadd.f32 %v5448_v42, %v6888_v62  ;;  %v5450_v10 = vpop.f32.mrb[2].mxu1 }
 0x10a   : > { %4514 = vmatmul.mubr.bf16.gmra.mrb[92].mxu0 %v2206_v58  ;;  %v6197_v58 = vld [vmem:[#allocation2 + $0xbc] ss:$0 sps:$4 sm:$0x11]  }
 0x10b   : > { %4521 = vmatprep.mubr.bf16.mxu0 %v2501_v6  ;;  %4619 = vmatmul.mubr.bf16.gmra.mrb[96].mxu1 %v6185_v41  ;;  %v2239_v62 = vshll.u32 %v6197_v58, 16  ;;  %v6193_v6 = vld [vmem:[#allocation2 + $0x54] sm:$0xff]   ;;  %v2248_v58 = vrot.slane %v2246_v32, 1  ;;  %v6220_v32 = vld [vmem:[#allocation2 + $0x84] sm:$0xff]  }
 0x10c   : > { %4626 = vmatprep.mubr.bf16.mxu1 %v2935_v56  ;;  %v2508_v56 = vrot.slane %v6202_v31, 1 }
 0x10d   : > { %v2241_v4 = vrot.slane %v2239_v62, 1  ;;  %v3265_v62 = vrot.slane %v6210_v51, 1  ;;  %v2249_v23 = vor.u32 %v2248_v58, %v2244_v57 }
 0x10f   : > { %v2242_v11 = vsel %vm1261_vm7, %v2237_v3, %v2241_v4 }
 0x112   : > { %4522 = vmatmul.mubr.bf16.gmra.mrb[96].mxu0 %v2218_v19  ;;  %v5451_v19 = vpop.f32.mrb[3].mxu1  ;;  %v5381_v34 = vpop.f32.mrb[4].mxu0 }
 0x113   : > { %4529 = vmatprep.mubr.bf16.mxu0 %v2504_v35  ;;  %v6925_v21 = vadd.f32 %v5451_v19, %v5450_v10  ;;  %4627 = vmatmul.mubr.bf16.gmra.mrb[100].mxu1 %v6193_v6  ;;  %v2953_v35 = vrot.slane %v2951_v29, 1  ;;  %v5382_v38 = vpop.f32.mrb[5].mxu0  ;;  %v2966_v10 = vor.u32 %v2965_v2, %v2961_v20 }
 0x114   : > { %4634 = vmatprep.mubr.bf16.mxu1 %v2947_v24  ;;  %v6936_v42 = vadd.f32 %v5382_v38, %v5381_v34  ;;  %v5384_v16 = vpop.f32.mrb[6].mxu0  ;;  %v3268_v34 = vrot.slane %v6212_v18, 1  ;;  %v3270_v38 = vrot.slane %v6216_v22, 1 }
 0x115   : > { %v5453_v33 = vpop.f32.mrb[4].mxu1  ;;  %v2954_v44 = vor.u32 %v2953_v35, %v2949_v27  ;;  %v5385_v53 = vpop.f32.mrb[7].mxu0  ;;  %v6215_v35 = vld [vmem:[#allocation2 + $0x78] sm:$0xff]  }
 0x116   : > { %v5454_v37 = vpop.f32.mrb[5].mxu1  ;;  %v6943_v55 = vadd.f32 %v5385_v53, %v5384_v16  ;;  %v6221_v16 = vld [vmem:[#allocation2 + $0x8c] ss:$0 sps:$4 sm:$0x11]   ;;  %v3269_v1 = vsel %vm1662_vm11, %v3267_v28, %v3268_v34 }
 0x117   : > { %v6934_v40 = vadd.f32 %v5454_v37, %v5453_v33  ;;  %v5456_v41 = vpop.f32.mrb[6].mxu1  ;;  %v2959_v54 = vsel %vm1261_vm7, %v2954_v44, %v2958_v45  ;;  %v3266_v33 = vsel %vm1662_vm11, %v3264_v60, %v3265_v62  ;;  %v2975_v44 = vshll.u32 %v6220_v32, 16 }
 0x118   : > { %v5457_v47 = vpop.f32.mrb[7].mxu1  ;;  %v2980_v46 = vshll.u32 %v6221_v16, 16  ;;  %v6230_v16 = vld [vmem:[#allocation2 + $0x60] sm:$0xfe]  }
 0x119   : > { %v6940_v52 = vadd.f32 %v5457_v47, %v5456_v41  ;;  %v6961_v41 = vld [vmem:[#allocation2 + $0x3c] sm:$0xfe]   ;;  %v2977_v51 = vrot.slane %v2975_v44, 1 }
 0x11a   : > { %4530 = vmatmul.mubr.bf16.gmra.mrb[100].mxu0 %v2230_v49  ;;  %v939_v49 = vsel %vm6450_vm4, %v778_v26, %v938_v39  ;;  %v2973_v39 = vshrl.u32 %v6220_v32, 16  ;;  %v2982_v57 = vrot.slane %v2980_v46, 1  ;;  %v6231_v46 = vld [vmem:[#allocation2 + $0x68] ss:$0 sps:$4 sm:$0x11]  }
 0x11b   : > { %4537 = vmatprep.mubr.bf16.mxu0 %v2507_v61  ;;  %940 = vst [vmem:[#allocation2 + $0xc8] sm:$0x1] %v939_v49  ;;  %4635 = vmatmul.mubr.bf16.gmra.mrb[104].mxu1 %v6200_v30  ;;  %v6214_v61 = vld [vmem:[#allocation2 + $0x80] ss:$0 sps:$4 sm:$0x11]  }
 0x11c   : > { %4642 = vmatprep.mubr.bf16.mxu1 %v2959_v54  ;;  %v2968_v3 = vshll.u32 %v6214_v61, 16  ;;  %v5387_v4 = vpop.f32.mrb[8].mxu0  ;;  %v6217_v30 = vld [vmem:[#allocation2 + $0x38] ss:$0 sps:$4 sm:$0x11]   ;;  %v2978_v20 = vor.u32 %v2977_v51, %v2973_v39 }
 0x11d   : > { %v5388_v7 = vpop.f32.mrb[9].mxu0  ;;  %v3271_v45 = vrot.slane %v6217_v30, 1  ;;  %v6223_v61 = vld [vmem:[#allocation2 + $0x48] sm:$0xfe]  }
 0x11e   : > { %v6950_v12 = vadd.f32 %v5388_v7, %v5387_v4  ;;  %v5390_v15 = vpop.f32.mrb[10].mxu0  ;;  %v3274_v7 = vrot.slane %v6219_v43, 1 }
 0x11f   : > { %v5391_v31 = vpop.f32.mrb[11].mxu0  ;;  %v3272_v2 = vsel %vm1662_vm11, %v3270_v38, %v3271_v45  ;;  %v6229_v38 = vld [vmem:[#allocation2 + $0x90] sm:$0xff]  }
 0x120   : > { %v6958_v36 = vadd.f32 %v5391_v31, %v5390_v15  ;;  %v6225_v15 = vld [vmem:[#allocation2 + $0x54] sm:$0xfe]  }
 0x121   : > { %v5459_v0 = vpop.f32.mrb[8].mxu1  ;;  %v3279_v30 = vrot.slane %v6225_v15, 1 }
 0x122   : > { %4538 = vmatmul.mubr.bf16.gmra.mrb[104].mxu0 %v2242_v11  ;;  %v5460_v5 = vpop.f32.mrb[9].mxu1  ;;  %v6203_v9 = vld [vmem:[#allocation2 + $0xc8] ss:$0 sps:$4 sm:$0x11]   ;;  %v2970_v11 = vrot.slane %v2968_v3, 1  ;;  %v3273_v3 = vrot.slane %v6961_v41, 1 }
 0x123   : > { %v6948_v6 = vadd.f32 %v5460_v5, %v5459_v0  ;;  %v5462_v8 = vpop.f32.mrb[10].mxu1  ;;  %v6205_v14 = vld [vmem:[#allocation2 + $0xc8] ss:$0 sps:$4 sm:$0x11]   ;;  %v2509_v17 = vrot.slane %v6203_v9, 1  ;;  %4643 = vmatmul.mubr.bf16.gmra.mrb[108].mxu1 %v6208_v59 }
 0x124   : > { %v2971_v19 = vsel %vm1261_vm7, %v2966_v10, %v2970_v11  ;;  %v2251_v24 = vshll.u32 %v6205_v14, 16  ;;  %v5463_v25 = vpop.f32.mrb[11].mxu1  ;;  %v6222_v9 = vld [vmem:[#allocation2 + $0x84] sm:$0xff]   ;;  %v6978_v14 = vld [vmem:[%s7426_s2] ss:$0 sm:$0xff] }
 0x125   : > { %4650 = vmatprep.mubr.bf16.mxu1 %v2971_v19  ;;  %v2510_v26 = vsel %vm1662_vm11, %v2508_v56, %v2509_v17  ;;  %v6955_v27 = vadd.f32 %v5463_v25, %v5462_v8  ;;  %v6227_v56 = vld [vmem:[#allocation2 + $0x90] sm:$0xff]   ;;  %v2983_v8 = vsel %vm1261_vm7, %v2978_v20, %v2982_v57  ;;  %v3276_v19 = vrot.slane %v6223_v61, 1  ;;  %v6228_v25 = vld [vmem:[#allocation2 + $0x98] ss:$0 sps:$4 sm:$0x11]  }
 0x126   : > { %4545 = vmatprep.mubr.bf16.mxu0 %v2510_v26  ;;  %v2253_v29 = vrot.slane %v2251_v24, 1  ;;  %v2987_v11 = vshll.u32 %v6227_v56, 16  ;;  %v2985_v17 = vshrl.u32 %v6227_v56, 16  ;;  %v6226_v24 = vld [vmem:[#allocation2 + $0x5c] ss:$0 sps:$4 sm:$0x11]   ;;  %v4106_v26 = vadd.f32 %v6921_v13, %v6978_v14 }
 0x127   : > { %v2992_v32 = vshll.u32 %v6228_v25, 16  ;;  %v3275_v13 = vsel %vm1662_vm11, %v3273_v3, %v3274_v7  ;;  %v6232_v57 = vld [vmem:[#allocation2 + $0x6c] sm:$0xfe]   ;;  %v3282_v20 = vrot.slane %v6230_v16, 1 }
 0x128   : > { %v2254_v37 = vsel %vm1261_vm7, %v2249_v23, %v2253_v29  ;;  %v2989_v22 = vrot.slane %v2987_v11, 1  ;;  %v3277_v23 = vrot.slane %v6224_v63, 1  ;;  %v3283_v63 = vrot.slane %v6231_v46, 1 }
 0x129   : > { %v2994_v44 = vrot.slane %v2992_v32, 1  ;;  %v6238_v32 = vld [vmem:[#allocation2 + $0x80] ss:$0 sps:$4 sm:$0x11]  }
 0x12a   : > { %4546 = vmatmul.mubr.bf16.gmra.mrb[108].mxu0 %v2254_v37  ;;  %v2990_v31 = vor.u32 %v2989_v22, %v2985_v17  ;;  %v4109_v37 = vadd.f32 %v6930_v50, %v6978_v14 }
 0x12b   : > { %5847 = vmatprep.mubr.bf16.mxu0 %v3266_v33  ;;  %4651 = vmatmul.mubr.bf16.gmra.mrb[112].mxu1 %v6215_v35 }
 0x12c   : > { %4658 = vmatprep.mubr.bf16.mxu1 %v2983_v8  ;;  %v2995_v50 = vsel %vm1261_vm7, %v2990_v31, %v2994_v44  ;;  %v6236_v31 = vld [vmem:[#allocation2 + $0x9c] sm:$0xff]  }
 0x12d   : > { %v5393_v49 = vpop.f32.mrb[12].mxu0 }
 0x12e   : > { %v5394_v54 = vpop.f32.mrb[13].mxu0 }
 0x12f   : > { %v6965_v59 = vadd.f32 %v5394_v54, %v5393_v49  ;;  %v5396_v62 = vpop.f32.mrb[14].mxu0  ;;  %v3278_v49 = vsel %vm1662_vm11, %v3276_v19, %v3277_v23  ;;  %v3280_v54 = vrot.slane %v6226_v24, 1 }
 0x130   : > { %v5397_v5 = vpop.f32.mrb[15].mxu0 }
 0x131   : > { %v6973_v10 = vadd.f32 %v5397_v5, %v5396_v62  ;;  %v3285_v62 = vrot.slane %v6232_v57, 1  ;;  %v3281_v19 = vsel %vm1662_vm11, %v3279_v30, %v3280_v54  ;;  %v6242_v54 = vld [vmem:[#allocation2 + $0xb0] ss:$0 sps:$4 sm:$0x11]  }
 0x132   : > { %5848 = vmatmul.mubr.bf16.vlgmr.msra.gmra.mrb[112].mxu0 %v3269_v1 }
 0x133   : > { %v5465_v47 = vpop.f32.mrb[12].mxu1  ;;  %5851 = vmatprep.mubr.bf16.mxu0 %v3272_v2  ;;  %4659 = vmatmul.mubr.bf16.gmra.mrb[116].mxu1 %v6222_v9  ;;  %v4114_v9 = vadd.f32 %v6936_v42, %v6978_v14  ;;  %v4117_v42 = vadd.f32 %v6943_v55, %v6978_v14  ;;  %v3289_v55 = vrot.slane %v6238_v32, 1  ;;  %v6246_v32 = vld [vmem:[#allocation2 + $0x9c] sm:$0xfe]  }
 0x134   : > { %v5466_v53 = vpop.f32.mrb[13].mxu1  ;;  %4666 = vmatprep.mubr.bf16.mxu1 %v2995_v50  ;;  %v4122_v50 = vadd.f32 %v6950_v12, %v6978_v14  ;;  %v4125_v12 = vadd.f32 %v6958_v36, %v6978_v14  ;;  %v3297_v36 = vrot.slane %v6246_v32, 1 }
 0x135   : > { %v6963_v58 = vadd.f32 %v5466_v53, %v5465_v47  ;;  %v5468_v60 = vpop.f32.mrb[14].mxu1  ;;  %v6234_v53 = vld [vmem:[#allocation2 + $0x9c] sm:$0xff]  }
 0x136   : > { %v5469_v0 = vpop.f32.mrb[15].mxu1  ;;  %v2997_v1 = vshrl.u32 %v6234_v53, 16  ;;  %v2999_v2 = vshll.u32 %v6234_v53, 16 }
 0x137   : > { %v6970_v4 = vadd.f32 %v5469_v0, %v5468_v60  ;;  %v6233_v60 = vld [vmem:[#allocation2 + $0x74] ss:$0 sps:$4 sm:$0x11]   ;;  %v6235_v0 = vld [vmem:[#allocation2 + $0xa4] ss:$0 sps:$4 sm:$0x11]  }
 0x138   : > { %v3286_v3 = vrot.slane %v6233_v60, 1  ;;  %v3004_v5 = vshll.u32 %v6235_v0, 16  ;;  %v3001_v11 = vrot.slane %v2999_v2, 1  ;;  %v6243_v2 = vld [vmem:[#allocation2 + $0xa8] sm:$0xff]  }
 0x139   : > { %v5399_v28 = vpop.f32.mrb[16].mxu0 }
 0x13a   : > { %v5400_v34 = vpop.f32.mrb[17].mxu0  ;;  %5852 = vmatmul.mubr.bf16.gmra.mrb[116].mxu0 %v3275_v13  ;;  %v3006_v22 = vrot.slane %v3004_v5, 1  ;;  %v3287_v57 = vsel %vm1662_vm11, %v3285_v62, %v3286_v3 }
 0x13b   : > { %v5487_v18 = vpop.f32.mrb[16].mxu1  ;;  %v6984_v41 = vadd.f32 %v5400_v34, %v5399_v28  ;;  %v5402_v43 = vpop.f32.mrb[18].mxu0  ;;  %5855 = vmatprep.mubr.bf16.mxu0 %v3278_v49  ;;  %4667 = vmatmul.mubr.bf16.gmra.mrb[120].mxu1 %v6229_v38  ;;  %v3284_v28 = vsel %vm1662_vm11, %v3282_v20, %v3283_v63 }
 0x13c   : > { %v5488_v29 = vpop.f32.mrb[17].mxu1  ;;  %v5403_v51 = vpop.f32.mrb[19].mxu0 }
 0x13d   : > { %v5489_v33 = vadd.f32 %v5488_v29, %v5487_v18  ;;  %v5490_v35 = vpop.f32.mrb[18].mxu1  ;;  %v6993_v61 = vadd.f32 %v5403_v51, %v5402_v43  ;;  %v6241_v18 = vld [vmem:[#allocation2 + $0xa8] sm:$0xff]   ;;  %v3002_v29 = vor.u32 %v3001_v11, %v2997_v1  ;;  %v3016_v1 = vshll.u32 %v6242_v54, 16 }
 0x13e   : > { %v5491_v39 = vpop.f32.mrb[19].mxu1  ;;  %v3009_v38 = vshrl.u32 %v6241_v18, 16  ;;  %v3011_v44 = vshll.u32 %v6241_v18, 16 }
 0x13f   : > { %v6987_v45 = vadd.f32 %v5489_v33, %v4106_v26  ;;  %v5492_v47 = vadd.f32 %v5491_v39, %v5490_v35  ;;  %v6237_v26 = vld [vmem:[#allocation2 + $0x78] sm:$0xfe]   ;;  %v3007_v16 = vsel %vm1261_vm7, %v3002_v29, %v3006_v22  ;;  %v6239_v39 = vld [vmem:[#allocation2 + $0x84] sm:$0xfe]   ;;  %v3018_v62 = vrot.slane %v3016_v1, 1 }
 0x140   : > { %v3288_v43 = vrot.slane %v6237_v26, 1  ;;  %4674 = vmatprep.mubr.bf16.mxu1 %v3007_v16  ;;  %v3013_v51 = vrot.slane %v3011_v44, 1  ;;  %v3291_v53 = vrot.slane %v6239_v39, 1  ;;  %v6245_v22 = vld [vmem:[#allocation2 + $0x98] ss:$0 sps:$4 sm:$0x11]  }
 0x141   : > { %v6991_v56 = vadd.f32 %v5492_v47, %v4109_v37  ;;  %v5405_v8 = vpop.f32.mrb[20].mxu0  ;;  %v6240_v47 = vld [vmem:[#allocation2 + $0x8c] ss:$0 sps:$4 sm:$0x11]   ;;  %v3295_v29 = vrot.slane %v6245_v22, 1 }
 0x142   : > { %v5406_v17 = vpop.f32.mrb[21].mxu0  ;;  %5856 = vmatmul.mubr.bf16.gmra.mrb[120].mxu0 %v3281_v19  ;;  %v3292_v63 = vrot.slane %v6240_v47, 1  ;;  %v3014_v0 = vor.u32 %v3013_v51, %v3009_v38  ;;  %v6248_v19 = vld [vmem:[#allocation2 + $0xb4] sm:$0xff]  }
 0x143   : > { %v5493_v7 = vpop.f32.mrb[20].mxu1  ;;  %v6998_v24 = vadd.f32 %v5406_v17, %v5405_v8  ;;  %v5408_v33 = vpop.f32.mrb[22].mxu0  ;;  %5859 = vmatprep.mubr.bf16.mxu0 %v3284_v28  ;;  %4675 = vmatmul.mubr.bf16.gmra.mrb[124].mxu1 %v6236_v31 }
 0x144   : > { %v5494_v15 = vpop.f32.mrb[21].mxu1  ;;  %v5409_v30 = vpop.f32.mrb[23].mxu0  ;;  %v3019_v28 = vsel %vm1261_vm7, %v3014_v0, %v3018_v62  ;;  %v3293_v38 = vsel %vm1662_vm11, %v3291_v53, %v3292_v63  ;;  %v6251_v53 = vld [vmem:[#allocation2 + $0xa8] sm:$0xfe]   ;;  %v6253_v62 = vld [vmem:[#allocation2 + $0xb4] sm:$0xfe]  }
 0x145   : > { %v5495_v23 = vadd.f32 %v5494_v15, %v5493_v7  ;;  %v5496_v25 = vpop.f32.mrb[22].mxu1  ;;  %v7006_v13 = vadd.f32 %v5409_v30, %v5408_v33  ;;  %v6244_v15 = vld [vmem:[#allocation2 + $0x90] sm:$0xfe]   ;;  %v6247_v33 = vld [vmem:[#allocation2 + $0xa4] ss:$0 sps:$4 sm:$0x11]   ;;  %4682 = vmatprep.mubr.bf16.mxu1 %v3019_v28 }
 0x146   : > { %v5497_v34 = vpop.f32.mrb[23].mxu1  ;;  %v3023_v30 = vshll.u32 %v6248_v19, 16  ;;  %v3298_v16 = vrot.slane %v6247_v33, 1  ;;  %v3303_v32 = vrot.slane %v6253_v62, 1 }
 0x147   : > { %v7003_v35 = vadd.f32 %v5495_v23, %v4114_v9  ;;  %v5498_v37 = vadd.f32 %v5497_v34, %v5496_v25  ;;  %v3290_v9 = vsel %vm1662_vm11, %v3288_v43, %v3289_v55  ;;  %v3294_v25 = vrot.slane %v6244_v15, 1  ;;  %v6250_v55 = vld [vmem:[#allocation2 + $0xb4] sm:$0xff]   ;;  %v6256_v33 = vld [vmem:[#allocation2 + $0xc8] ss:$0 sps:$4 sm:$0x11]  }
 0x149   : > { %v7008_v46 = vadd.f32 %v5498_v37, %v4117_v42  ;;  %v6249_v42 = vld [vmem:[#allocation2 + $0xbc] ss:$0 sps:$4 sm:$0x11]   ;;  %v3021_v37 = vshrl.u32 %v6248_v19, 16  ;;  %v3296_v47 = vsel %vm1662_vm11, %v3294_v25, %v3295_v29  ;;  %v3299_v29 = vsel %vm1662_vm11, %v3297_v36, %v3298_v16  ;;  %v6258_v36 = vld [vmem:[#allocation2 + $0xc0] sm:$0xfe]  }
 0x14a   : > { %5860 = vmatmul.mubr.bf16.gmra.mrb[124].mxu0 %v3287_v57  ;;  %v3028_v43 = vshll.u32 %v6249_v42, 16  ;;  %v4130_v57 = vadd.f32 %v6965_v59, %v6978_v14  ;;  %v4138_v42 = vadd.f32 %v6984_v41, %v6978_v14  ;;  %v4141_v41 = vadd.f32 %v6993_v61, %v6978_v14  ;;  %v6261_v61 = vld [vmem:[#allocation2 + $0xd4] ss:$0 sps:$4 sm:$0x11]  }
 0x14b   : > { %v5499_v49 = vpop.f32.mrb[24].mxu1  ;;  %v5411_v60 = vpop.f32.mrb[24].mxu0  ;;  %5863 = vmatprep.mubr.bf16.mxu0 %v3290_v9  ;;  %4683 = vmatmul.mubr.bf16.gmra.mrb[128].mxu1 %v6243_v2  ;;  %v6252_v2 = vld [vmem:[#allocation2 + $0xb0] ss:$0 sps:$4 sm:$0x11]   ;;  %v4133_v9 = vadd.f32 %v6973_v10, %v6978_v14 }
 0x14c   : > { %v5500_v20 = vpop.f32.mrb[25].mxu1  ;;  %v5412_v7 = vpop.f32.mrb[25].mxu0 }
 0x14d   : > { %v5501_v5 = vadd.f32 %v5500_v20, %v5499_v49  ;;  %v5502_v8 = vpop.f32.mrb[26].mxu1  ;;  %v7014_v11 = vadd.f32 %v5412_v7, %v5411_v60  ;;  %v5414_v17 = vpop.f32.mrb[26].mxu0  ;;  %v3025_v49 = vrot.slane %v3023_v30, 1  ;;  %v3030_v60 = vrot.slane %v3028_v43, 1 }
 0x14e   : > { %v5503_v18 = vpop.f32.mrb[27].mxu1  ;;  %v5415_v26 = vpop.f32.mrb[27].mxu0 }
 0x14f   : > { %v7018_v3 = vadd.f32 %v5501_v5, %v4122_v50  ;;  %v5504_v23 = vadd.f32 %v5503_v18, %v5502_v8  ;;  %v7023_v34 = vadd.f32 %v5415_v26, %v5414_v17  ;;  %v6255_v50 = vld [vmem:[#allocation2 + $0xc0] sm:$0xff]   ;;  %v3026_v63 = vor.u32 %v3025_v49, %v3021_v37  ;;  %v6254_v26 = vld [vmem:[#allocation2 + $0xbc] ss:$0 sps:$4 sm:$0x11]  }
 0x150   : > { %v3033_v8 = vshrl.u32 %v6255_v50, 16  ;;  %v3300_v17 = vrot.slane %v6251_v53, 1  ;;  %v3304_v43 = vrot.slane %v6254_v26, 1 }
 0x151   : > { %v7021_v31 = vadd.f32 %v5504_v23, %v4125_v12  ;;  %v3031_v19 = vsel %vm1261_vm7, %v3026_v63, %v3030_v60  ;;  %v3301_v12 = vrot.slane %v6252_v2, 1  ;;  %v3035_v23 = vshll.u32 %v6255_v50, 16 }
 0x152   : > { %5864 = vmatmul.mubr.bf16.gmra.mrb[128].mxu0 %v3293_v38  ;;  %4690 = vmatprep.mubr.bf16.mxu1 %v3031_v19  ;;  %v3306_v63 = vrot.slane %v6258_v36, 1 }
 0x153   : > { %v5505_v39 = vpop.f32.mrb[28].mxu1  ;;  %5867 = vmatprep.mubr.bf16.mxu0 %v3296_v47  ;;  %4691 = vmatmul.mubr.bf16.gmra.mrb[132].mxu1 %v6250_v55  ;;  %v3037_v10 = vrot.slane %v3035_v23, 1  ;;  %v3302_v37 = vsel %vm1662_vm11, %v3300_v17, %v3301_v12  ;;  %v6257_v47 = vld [vmem:[#allocation2 + $0xc0] sm:$0xff]  }
 0x154   : > { %v5506_v51 = vpop.f32.mrb[29].mxu1 }
 0x155   : > { %v5507_v20 = vadd.f32 %v5506_v51, %v5505_v39  ;;  %v5508_v1 = vpop.f32.mrb[30].mxu1  ;;  %v3038_v39 = vor.u32 %v3037_v10, %v3033_v8  ;;  %v4146_v10 = vadd.f32 %v6998_v24, %v6978_v14  ;;  %v4149_v24 = vadd.f32 %v7006_v13, %v6978_v14 }
 0x156   : > { %v5509_v7 = vpop.f32.mrb[31].mxu1 }
 0x157   : > { %v7033_v15 = vadd.f32 %v5507_v20, %v4130_v57  ;;  %v5510_v59 = vadd.f32 %v5509_v7, %v5508_v1  ;;  %v6262_v57 = vld [vmem:[#allocation2 + $0xcc] sm:$0xff]   ;;  %v6259_v1 = vld [vmem:[#allocation2 + $0xc8] ss:$0 sps:$4 sm:$0x11]  }
 0x158   : > { %v3307_v7 = vrot.slane %v6259_v1, 1  ;;  %v3045_v12 = vshrl.u32 %v6262_v57, 16  ;;  %v3047_v62 = vshll.u32 %v6262_v57, 16 }
 0x159   : > { %v7038_v25 = vadd.f32 %v5510_v59, %v4133_v9  ;;  %v6260_v9 = vld [vmem:[#allocation2 + $0xcc] sm:$0xfe]   ;;  %v3305_v59 = vsel %vm1662_vm11, %v3303_v32, %v3304_v43  ;;  %v3310_v32 = vrot.slane %v6261_v61, 1 }
 0x15a   : > { %5868 = vmatmul.mubr.bf16.gmra.mrb[132].mxu0 %v3299_v29  ;;  %v3308_v19 = vsel %vm1662_vm11, %v3306_v63, %v3307_v7  ;;  %v3309_v29 = vrot.slane %v6260_v9, 1 }
 0x15b   : > { %v5417_v44 = vpop.f32.mrb[28].mxu0  ;;  %v5511_v28 = vpop.f32.mrb[32].mxu1  ;;  %5871 = vmatprep.mubr.bf16.mxu0 %v3302_v37 }
 0x15c   : > { %v5418_v54 = vpop.f32.mrb[29].mxu0  ;;  %v5512_v38 = vpop.f32.mrb[33].mxu1 }
 0x15d   : > { %v7029_v0 = vadd.f32 %v5418_v54, %v5417_v44  ;;  %v5420_v5 = vpop.f32.mrb[30].mxu0  ;;  %v3040_v44 = vshll.u32 %v6256_v33, 16  ;;  %v5513_v49 = vadd.f32 %v5512_v38, %v5511_v28  ;;  %v5514_v54 = vpop.f32.mrb[34].mxu1  ;;  %v3049_v33 = vrot.slane %v3047_v62, 1 }
 0x15e   : > { %v5421_v18 = vpop.f32.mrb[31].mxu0  ;;  %v5515_v50 = vpop.f32.mrb[35].mxu1 }
 0x15f   : > { %v7036_v22 = vadd.f32 %v5421_v18, %v5420_v5  ;;  %v3042_v60 = vrot.slane %v3040_v44, 1  ;;  %v7048_v20 = vadd.f32 %v5513_v49, %v4138_v42  ;;  %v5516_v53 = vadd.f32 %v5515_v50, %v5514_v54  ;;  %v6263_v18 = vld [vmem:[#allocation2 + $0xd4] ss:$0 sps:$4 sm:$0x11]   ;;  %v6264_v49 = vld [vmem:[#allocation2 + $0xcc] sm:$0xff]  }
 0x160   : > { %v3052_v23 = vshll.u32 %v6263_v18, 16 }
 0x161   : > { %v3043_v5 = vsel %vm1261_vm7, %v3038_v39, %v3042_v60  ;;  %v7051_v8 = vadd.f32 %v5516_v53, %v4141_v41  ;;  %v4154_v60 = vadd.f32 %v7014_v11, %v6978_v14 }
 0x162   : > { %4698 = vmatprep.mubr.bf16.mxu1 %v3043_v5  ;;  %5872 = vmatmul.mubr.bf16.gmra.mrb[136].mxu0 %v3305_v59 }
 0x163   : > { %v5423_v30 = vpop.f32.mrb[32].mxu0  ;;  %4699 = vmatmul.mubr.bf16.gmra.mrb[136].mxu1 %v6257_v47  ;;  %v5517_v26 = vpop.f32.mrb[36].mxu1  ;;  %5875 = vmatprep.mubr.bf16.mxu0 %v3308_v19  ;;  %v3050_v47 = vor.u32 %v3049_v33, %v3045_v12  ;;  %v4157_v19 = vadd.f32 %v7023_v34, %v6978_v14  ;;  %v4165_v34 = vadd.f32 %v7036_v22, %v6978_v14 }
 0x164   : > { %v5424_v51 = vpop.f32.mrb[33].mxu0  ;;  %v5518_v42 = vpop.f32.mrb[37].mxu1 }
 0x165   : > { %v7044_v55 = vadd.f32 %v5424_v51, %v5423_v30  ;;  %v5426_v16 = vpop.f32.mrb[34].mxu0  ;;  %v3054_v30 = vrot.slane %v3052_v23, 1  ;;  %v5519_v38 = vadd.f32 %v5518_v42, %v5517_v26  ;;  %v5520_v39 = vpop.f32.mrb[38].mxu1 }
 0x166   : > { %v5427_v2 = vpop.f32.mrb[35].mxu0  ;;  %v5521_v51 = vpop.f32.mrb[39].mxu1 }
 0x167   : > { %v7053_v17 = vadd.f32 %v5427_v2, %v5426_v16  ;;  %v7063_v36 = vadd.f32 %v5519_v38, %v4146_v10  ;;  %v5522_v16 = vadd.f32 %v5521_v51, %v5520_v39  ;;  %v3055_v1 = vsel %vm1261_vm7, %v3050_v47, %v3054_v30 }
 0x168   : > { %v3311_v2 = vsel %vm1662_vm11, %v3309_v29, %v3310_v32  ;;  %4706 = vmatprep.mubr.bf16.mxu1 %v3055_v1  ;;  %v4162_v10 = vadd.f32 %v7029_v0, %v6978_v14  ;;  %v4170_v0 = vadd.f32 %v7044_v55, %v6978_v14 }
 0x169   : > { %v7069_v5 = vadd.f32 %v5522_v16, %v4149_v24 }
 0x16a   : > { %5876 = vmatmul.mubr.bf16.gmra.mrb[140].mxu0 %v3311_v2 }
 0x16b   : > { %v5429_v28 = vpop.f32.mrb[36].mxu0  ;;  %v5523_v57 = vpop.f32.mrb[40].mxu1  ;;  %4707 = vmatmul.mubr.bf16.gmra.mrb[140].mxu1 %v6264_v49 }
 0x16c   : > { %v5430_v37 = vpop.f32.mrb[37].mxu0  ;;  %v5524_v53 = vpop.f32.mrb[41].mxu1 }
 0x16d   : > { %v7059_v43 = vadd.f32 %v5430_v37, %v5429_v28  ;;  %v5432_v44 = vpop.f32.mrb[38].mxu0  ;;  %v5525_v7 = vadd.f32 %v5524_v53, %v5523_v57  ;;  %v5526_v9 = vpop.f32.mrb[42].mxu1 }
 0x16e   : > { %v5433_v54 = vpop.f32.mrb[39].mxu0  ;;  %v5527_v61 = vpop.f32.mrb[43].mxu1 }
 0x16f   : > { %v5434_v50 = vadd.f32 %v5433_v54, %v5432_v44  ;;  %v7073_v11 = vadd.f32 %v5525_v7, %v4154_v60  ;;  %v5528_v12 = vadd.f32 %v5527_v61, %v5526_v9  ;;  %v4173_v60 = vadd.f32 %v7053_v17, %v6978_v14 }
 0x170   : > { %v4178_v55 = vadd.f32 %v7059_v43, %v6978_v14 }
 0x171   : > { %v7077_v29 = vadd.f32 %v5528_v12, %v4157_v19  ;;  %v4181_v12 = vadd.f32 %v5434_v50, %v6978_v14 }
 0x173   : > { %v5529_v23 = vpop.f32.mrb[44].mxu1 }
 0x174   : > { %v5530_v28 = vpop.f32.mrb[45].mxu1 }
 0x175   : > { %v5435_v41 = vpop.f32.mrb[40].mxu0  ;;  %v5531_v33 = vadd.f32 %v5530_v28, %v5529_v23  ;;  %v5532_v37 = vpop.f32.mrb[46].mxu1 }
 0x176   : > { %v5436_v63 = vpop.f32.mrb[41].mxu0  ;;  %v5533_v38 = vpop.f32.mrb[47].mxu1 }
 0x177   : > { %v5437_v13 = vadd.f32 %v5436_v63, %v5435_v41  ;;  %v5438_v59 = vpop.f32.mrb[42].mxu0  ;;  %v7081_v39 = vadd.f32 %v5531_v33, %v4162_v10  ;;  %v5534_v44 = vadd.f32 %v5533_v38, %v5532_v37 }
 0x178   : > { %v5439_v18 = vpop.f32.mrb[43].mxu0 }
 0x179   : > { %v5440_v62 = vadd.f32 %v5439_v18, %v5438_v59  ;;  %v7085_v24 = vadd.f32 %v5534_v44, %v4165_v34  ;;  %v4186_v50 = vadd.f32 %v5437_v13, %v6978_v14 }
 0x17b   : > { %v5535_v49 = vpop.f32.mrb[48].mxu1 }
 0x17c   : > { %v5536_v54 = vpop.f32.mrb[49].mxu1 }
 0x17d   : > { %v5441_v26 = vpop.f32.mrb[44].mxu0  ;;  %v5537_v16 = vadd.f32 %v5536_v54, %v5535_v49  ;;  %v5538_v57 = vpop.f32.mrb[50].mxu1  ;;  %v4189_v54 = vadd.f32 %v5440_v62, %v6978_v14 }
 0x17e   : > { %v5442_v42 = vpop.f32.mrb[45].mxu0  ;;  %v5539_v41 = vpop.f32.mrb[51].mxu1 }
 0x17f   : > { %v5443_v32 = vadd.f32 %v5442_v42, %v5441_v26  ;;  %v5444_v30 = vpop.f32.mrb[46].mxu0  ;;  %v7089_v1 = vadd.f32 %v5537_v16, %v4170_v0  ;;  %v5540_v22 = vadd.f32 %v5539_v41, %v5538_v57 }
 0x180   : > { %v5445_v47 = vpop.f32.mrb[47].mxu0 }
 0x181   : > { %v5446_v51 = vadd.f32 %v5445_v47, %v5444_v30  ;;  %v7091_v7 = vadd.f32 %v5540_v22, %v4173_v60 }
 0x183   : > { %v5541_v63 = vpop.f32.mrb[52].mxu1 }
 0x184   : > { %v5542_v9 = vpop.f32.mrb[53].mxu1 }
 0x185   : > { %v5599_v53 = vpop.f32.mrb[48].mxu0  ;;  %v5543_v18 = vadd.f32 %v5542_v9, %v5541_v63  ;;  %v5544_v19 = vpop.f32.mrb[54].mxu1 }
 0x186   : > { %v5600_v2 = vpop.f32.mrb[49].mxu0  ;;  %v5545_v17 = vpop.f32.mrb[55].mxu1 }
 0x187   : > { %v5601_v59 = vadd.f32 %v5600_v2, %v5599_v53  ;;  %v5602_v61 = vpop.f32.mrb[50].mxu0  ;;  %v7099_v10 = vadd.f32 %v5543_v18, %v4178_v55  ;;  %v5546_v33 = vadd.f32 %v5545_v17, %v5544_v19 }
 0x188   : > { %v5603_v23 = vpop.f32.mrb[51].mxu0 }
 0x189   : > { %v7097_v26 = vadd.f32 %v5601_v59, %v6987_v45  ;;  %v5604_v28 = vadd.f32 %v5603_v23, %v5602_v61  ;;  %v7104_v37 = vadd.f32 %v5546_v33, %v4181_v12  ;;  %v4194_v61 = vadd.f32 %v5443_v32, %v6978_v14 }
 0x18b   : > { %v7102_v42 = vadd.f32 %v5604_v28, %v6991_v56  ;;  %v5547_v30 = vpop.f32.mrb[56].mxu1 }
 0x18c   : > { %v5548_v34 = vpop.f32.mrb[57].mxu1 }
 0x18d   : > { %v5605_v43 = vpop.f32.mrb[52].mxu0  ;;  %v5549_v49 = vadd.f32 %v5548_v34, %v5547_v30  ;;  %v5550_v45 = vpop.f32.mrb[58].mxu1 }
 0x18e   : > { %v5606_v38 = vpop.f32.mrb[53].mxu0  ;;  %v5551_v16 = vpop.f32.mrb[59].mxu1 }
 0x18f   : > { %v5607_v44 = vadd.f32 %v5606_v38, %v5605_v43  ;;  %v5608_v47 = vpop.f32.mrb[54].mxu0  ;;  %v7111_v41 = vadd.f32 %v5549_v49, %v4186_v50  ;;  %v5552_v60 = vadd.f32 %v5551_v16, %v5550_v45 }
 0x190   : > { %v5609_v0 = vpop.f32.mrb[55].mxu0 }
 0x191   : > { %v7109_v57 = vadd.f32 %v5607_v44, %v7003_v35  ;;  %v5610_v56 = vadd.f32 %v5609_v0, %v5608_v47  ;;  %v7116_v53 = vadd.f32 %v5552_v60, %v4189_v54  ;;  %v4202_v47 = vadd.f32 %v6911_v48, %v6978_v14 }
 0x192   : > { %v4205_v0 = vadd.f32 %v6925_v21, %v6978_v14  ;;  %v4210_v21 = vadd.f32 %v6934_v40, %v6978_v14 }
 0x193   : > { %v7114_v22 = vadd.f32 %v5610_v56, %v7008_v46  ;;  %v5553_v55 = vpop.f32.mrb[60].mxu1  ;;  %v4197_v46 = vadd.f32 %v5446_v51, %v6978_v14 }
 0x194   : > { %v5554_v59 = vpop.f32.mrb[61].mxu1 }
 0x195   : > { %v5611_v13 = vpop.f32.mrb[56].mxu0  ;;  %v5555_v19 = vadd.f32 %v5554_v59, %v5553_v55  ;;  %v5556_v12 = vpop.f32.mrb[62].mxu1 }
 0x196   : > { %v5612_v63 = vpop.f32.mrb[57].mxu0  ;;  %v5557_v23 = vpop.f32.mrb[63].mxu1 }
 0x197   : > { %v5613_v2 = vadd.f32 %v5612_v63, %v5611_v13  ;;  %v5614_v9 = vpop.f32.mrb[58].mxu0  ;;  %v7126_v28 = vadd.f32 %v5555_v19, %v4194_v61  ;;  %v5558_v33 = vadd.f32 %v5557_v23, %v5556_v12  ;;  %v4213_v23 = vadd.f32 %v6940_v52, %v6978_v14 }
 0x198   : > { %v5615_v62 = vpop.f32.mrb[59].mxu0 }
 0x199   : > { %v7120_v35 = vadd.f32 %v5613_v2, %v7018_v3  ;;  %v5616_v18 = vadd.f32 %v5615_v62, %v5614_v9  ;;  %v7128_v30 = vadd.f32 %v5558_v33, %v4197_v46 }
 0x19b   : > { %v7124_v17 = vadd.f32 %v5616_v18, %v7021_v31  ;;  %v5559_v3 = vpop.f32.mrb[64].mxu1 }
 0x19c   : > { %v5560_v44 = vpop.f32.mrb[65].mxu1 }
 0x19d   : > { %v5617_v43 = vpop.f32.mrb[60].mxu0  ;;  %v5561_v49 = vadd.f32 %v5560_v44, %v5559_v3  ;;  %v5562_v45 = vpop.f32.mrb[66].mxu1 }
 0x19e   : > { %v5618_v38 = vpop.f32.mrb[61].mxu0  ;;  %v5563_v54 = vpop.f32.mrb[67].mxu1 }
 0x19f   : > { %v5619_v32 = vadd.f32 %v5618_v38, %v5617_v43  ;;  %v5620_v34 = vpop.f32.mrb[62].mxu0  ;;  %v7140_v56 = vadd.f32 %v5561_v49, %v4202_v47  ;;  %v5564_v60 = vadd.f32 %v5563_v54, %v5562_v45  ;;  %v4218_v47 = vadd.f32 %v6948_v6, %v6978_v14 }
 0x1a0   : > { %v5621_v50 = vpop.f32.mrb[63].mxu0  ;;  %v4221_v54 = vadd.f32 %v6955_v27, %v6978_v14 }
 0x1a1   : > { %v7133_v51 = vadd.f32 %v5619_v32, %v7033_v15  ;;  %v5622_v31 = vadd.f32 %v5621_v50, %v5620_v34  ;;  %v7142_v63 = vadd.f32 %v5564_v60, %v4205_v0 }
 0x1a3   : > { %v7138_v16 = vadd.f32 %v5622_v31, %v7038_v25  ;;  %v5565_v59 = vpop.f32.mrb[68].mxu1 }
 0x1a4   : > { %v5566_v61 = vpop.f32.mrb[69].mxu1 }
 0x1a5   : > { %v5623_v13 = vpop.f32.mrb[64].mxu0  ;;  %v5567_v18 = vadd.f32 %v5566_v61, %v5565_v59  ;;  %v5568_v19 = vpop.f32.mrb[70].mxu1 }
 0x1a6   : > { %v5624_v48 = vpop.f32.mrb[65].mxu0  ;;  %v5569_v12 = vpop.f32.mrb[71].mxu1 }
 0x1a7   : > { %v5625_v2 = vadd.f32 %v5624_v48, %v5623_v13  ;;  %v5626_v15 = vpop.f32.mrb[66].mxu0  ;;  %v7154_v33 = vadd.f32 %v5567_v18, %v4210_v21 }
 0x1a8   : > { %v5627_v9 = vpop.f32.mrb[67].mxu0 }
 0x1a9   : > { %v7145_v55 = vadd.f32 %v5625_v2, %v7048_v20  ;;  %v5628_v62 = vadd.f32 %v5627_v9, %v5626_v15  ;;  %v5570_v20 = vadd.f32 %v5569_v12, %v5568_v19 }
 0x1ab   : > { %v7150_v25 = vadd.f32 %v5628_v62, %v7051_v8  ;;  %v7156_v34 = vadd.f32 %v5570_v20, %v4213_v23  ;;  %v5571_v50 = vpop.f32.mrb[72].mxu1 }
 0x1ac   : > { %v5572_v44 = vpop.f32.mrb[73].mxu1 }
 0x1ad   : > { %v5629_v46 = vpop.f32.mrb[68].mxu0  ;;  %v5573_v31 = vadd.f32 %v5572_v44, %v5571_v50  ;;  %v5574_v49 = vpop.f32.mrb[74].mxu1 }
 0x1ae   : > { %v5630_v43 = vpop.f32.mrb[69].mxu0  ;;  %v5575_v45 = vpop.f32.mrb[75].mxu1 }
 0x1af   : > { %v5631_v38 = vadd.f32 %v5630_v43, %v5629_v46  ;;  %v5632_v32 = vpop.f32.mrb[70].mxu0  ;;  %v7168_v60 = vadd.f32 %v5573_v31, %v4218_v47 }
 0x1b0   : > { %v5633_v3 = vpop.f32.mrb[71].mxu0 }
 0x1b1   : > { %v7159_v40 = vadd.f32 %v5631_v38, %v7063_v36  ;;  %v5634_v8 = vadd.f32 %v5633_v3, %v5632_v32  ;;  %v5576_v36 = vadd.f32 %v5575_v45, %v5574_v49  ;;  %v4229_v49 = vadd.f32 %v6970_v4, %v6978_v14 }
 0x1b3   : > { %v7164_v52 = vadd.f32 %v5634_v8, %v7069_v5  ;;  %v7170_v15 = vadd.f32 %v5576_v36, %v4221_v54 }
 0x1b5   : > { %v5635_v0 = vpop.f32.mrb[72].mxu0 }
 0x1b6   : > { %v5636_v13 = vpop.f32.mrb[73].mxu0  ;;  %v5577_v3 = vpop.f32.mrb[76].mxu1 }
 0x1b7   : > { %v5637_v48 = vadd.f32 %v5636_v13, %v5635_v0  ;;  %v5638_v2 = vpop.f32.mrb[74].mxu0  ;;  %v5578_v8 = vpop.f32.mrb[77].mxu1 }
 0x1b8   : > { %v5639_v9 = vpop.f32.mrb[75].mxu0  ;;  %v5579_v44 = vadd.f32 %v5578_v8, %v5577_v3 }
 0x1b9   : > { %v7173_v6 = vadd.f32 %v5637_v48, %v7073_v11  ;;  %v5640_v5 = vadd.f32 %v5639_v9, %v5638_v2 }
 0x1bb   : > { %v7176_v62 = vadd.f32 %v5640_v5, %v7077_v29 }
 0x1bd   : > { %v5641_v59 = vpop.f32.mrb[76].mxu0 }
 0x1be   : > { %v5642_v61 = vpop.f32.mrb[77].mxu0 }
 0x1bf   : > { %v5643_v27 = vadd.f32 %v5642_v61, %v5641_v59  ;;  %v5644_v21 = vpop.f32.mrb[78].mxu0 }
 0x1c0   : > { %v5645_v18 = vpop.f32.mrb[79].mxu0 }
 0x1c1   : > { %v7179_v19 = vadd.f32 %v5643_v27, %v7081_v39  ;;  %v5646_v12 = vadd.f32 %v5645_v18, %v5644_v21  ;;  %v4226_v39 = vadd.f32 %v6963_v58, %v6978_v14 }
 0x1c3   : > { %v7182_v23 = vadd.f32 %v5646_v12, %v7085_v24  ;;  %v5580_v24 = vpop.f32.mrb[78].mxu1  ;;  %v7194_v45 = vadd.f32 %v5579_v44, %v4226_v39 }
 0x1c4   : > { %v5581_v47 = vpop.f32.mrb[79].mxu1 }
 0x1c5   : > { %v5647_v46 = vpop.f32.mrb[80].mxu0  ;;  %v5711_v2 = vpop.f32.mrb[80].mxu1 }
 0x1c6   : > { %v5648_v20 = vpop.f32.mrb[81].mxu0  ;;  %v5712_v9 = vpop.f32.mrb[81].mxu1 }
 0x1c7   : > { %v5649_v11 = vadd.f32 %v5648_v20, %v5647_v46  ;;  %v5650_v43 = vpop.f32.mrb[82].mxu0  ;;  %v5713_v59 = vadd.f32 %v5712_v9, %v5711_v2  ;;  %v5714_v4 = vpop.f32.mrb[82].mxu1 }
 0x1c8   : > { %v5651_v38 = vpop.f32.mrb[83].mxu0  ;;  %v5715_v14 = vpop.f32.mrb[83].mxu1 }
 0x1c9   : > { %v7185_v29 = vadd.f32 %v5649_v11, %v7089_v1  ;;  %v5652_v32 = vadd.f32 %v5651_v38, %v5650_v43  ;;  %v5582_v1 = vadd.f32 %v5581_v47, %v5580_v24  ;;  %v5716_v27 = vadd.f32 %v5715_v14, %v5714_v4  ;;  %v5717_v43 = vpop.f32.mrb[84].mxu1 }
 0x1ca   : > { %v7205_v18 = vadd.f32 %v5713_v59, %v7097_v26  ;;  %v5718_v38 = vpop.f32.mrb[85].mxu1 }
 0x1cb   : > { %v7188_v50 = vadd.f32 %v5652_v32, %v7091_v7  ;;  %v7196_v13 = vadd.f32 %v5582_v1, %v4229_v49  ;;  %v5719_v3 = vadd.f32 %v5718_v38, %v5717_v43  ;;  %v5720_v8 = vpop.f32.mrb[86].mxu1 }
 0x1cc   : > { %v5721_v39 = vpop.f32.mrb[87].mxu1 }
 0x1cd   : > { %v5653_v31 = vpop.f32.mrb[84].mxu0  ;;  %v5722_v26 = vadd.f32 %v5721_v39, %v5720_v8  ;;  %v7217_v24 = vadd.f32 %v5719_v3, %v7109_v57 }
 0x1ce   : > { %v5654_v54 = vpop.f32.mrb[85].mxu0  ;;  %v5723_v1 = vpop.f32.mrb[88].mxu1 }
 0x1cf   : > { %v5655_v0 = vadd.f32 %v5654_v54, %v5653_v31  ;;  %v5656_v36 = vpop.f32.mrb[86].mxu0 }
 0x1d0   : > { %v5657_v7 = vpop.f32.mrb[87].mxu0 }
 0x1d1   : > { %v7199_v48 = vadd.f32 %v5655_v0, %v7099_v10  ;;  %v5658_v58 = vadd.f32 %v5657_v7, %v5656_v36  ;;  %v7208_v10 = vadd.f32 %v5716_v27, %v7102_v42  ;;  %v5724_v0 = vpop.f32.mrb[89].mxu1 }
 0x1d2   : > { %v5725_v36 = vadd.f32 %v5724_v0, %v5723_v1  ;;  %v5726_v7 = vpop.f32.mrb[90].mxu1 }
 0x1d3   : > { %v7202_v5 = vadd.f32 %v5658_v58, %v7104_v37  ;;  %v5727_v57 = vpop.f32.mrb[91].mxu1 }
 0x1d4   : > { %v5728_v2 = vadd.f32 %v5727_v57, %v5726_v7  ;;  %v7229_v59 = vadd.f32 %v5725_v36, %v7120_v35 }
 0x1d5   : > { %v5659_v61 = vpop.f32.mrb[88].mxu0 }
 0x1d6   : > { %v5660_v21 = vpop.f32.mrb[89].mxu0  ;;  %v5729_v27 = vpop.f32.mrb[92].mxu1 }
 0x1d7   : > { %v5661_v12 = vadd.f32 %v5660_v21, %v5659_v61  ;;  %v5662_v46 = vpop.f32.mrb[90].mxu0  ;;  %v7232_v61 = vadd.f32 %v5728_v2, %v7124_v17 }
 0x1d8   : > { %v5663_v20 = vpop.f32.mrb[91].mxu0 }
 0x1d9   : > { %v7211_v11 = vadd.f32 %v5661_v12, %v7111_v41  ;;  %v5664_v37 = vadd.f32 %v5663_v20, %v5662_v46  ;;  %v7220_v41 = vadd.f32 %v5722_v26, %v7114_v22 }
 0x1db   : > { %v7214_v32 = vadd.f32 %v5664_v37, %v7116_v53 }
 0x1dd   : > { %v5665_v44 = vpop.f32.mrb[92].mxu0 }
 0x1de   : > { %v5666_v47 = vpop.f32.mrb[93].mxu0 }
 0x1df   : > { %v5667_v42 = vadd.f32 %v5666_v47, %v5665_v44  ;;  %v5668_v31 = vpop.f32.mrb[94].mxu0 }
 0x1e0   : > { %v5669_v49 = vpop.f32.mrb[95].mxu0 }
 0x1e1   : > { %v7223_v54 = vadd.f32 %v5667_v42, %v7126_v28  ;;  %v5670_v53 = vadd.f32 %v5669_v49, %v5668_v31 }
 0x1e3   : > { %v7226_v58 = vadd.f32 %v5670_v53, %v7128_v30  ;;  %v5730_v30 = vpop.f32.mrb[93].mxu1 }
 0x1e4   : > { %v5731_v46 = vadd.f32 %v5730_v30, %v5729_v27  ;;  %v5732_v20 = vpop.f32.mrb[94].mxu1 }
 0x1e5   : > { %v5671_v9 = vpop.f32.mrb[96].mxu0  ;;  %v5733_v35 = vpop.f32.mrb[95].mxu1 }
 0x1e6   : > { %v5672_v22 = vpop.f32.mrb[97].mxu0  ;;  %v5734_v43 = vadd.f32 %v5733_v35, %v5732_v20  ;;  %v7241_v38 = vadd.f32 %v5731_v46, %v7133_v51  ;;  %v5735_v26 = vpop.f32.mrb[96].mxu1 }
 0x1e7   : > { %v5673_v4 = vadd.f32 %v5672_v22, %v5671_v9  ;;  %v5674_v14 = vpop.f32.mrb[98].mxu0  ;;  %v5736_v47 = vpop.f32.mrb[97].mxu1 }
 0x1e8   : > { %v5675_v28 = vpop.f32.mrb[99].mxu0  ;;  %v7244_v8 = vadd.f32 %v5734_v43, %v7138_v16  ;;  %v5737_v31 = vadd.f32 %v5736_v47, %v5735_v26  ;;  %v5738_v49 = vpop.f32.mrb[98].mxu1 }
 0x1e9   : > { %v7235_v21 = vadd.f32 %v5673_v4, %v7140_v56  ;;  %v5676_v12 = vadd.f32 %v5675_v28, %v5674_v14  ;;  %v5739_v1 = vpop.f32.mrb[99].mxu1 }
 0x1ea   : > { %v5740_v53 = vadd.f32 %v5739_v1, %v5738_v49  ;;  %v7253_v0 = vadd.f32 %v5737_v31, %v7145_v55 }
 0x1eb   : > { %v7238_v37 = vadd.f32 %v5676_v12, %v7142_v63 }
 0x1ec   : > { %v7256_v7 = vadd.f32 %v5740_v53, %v7150_v25 }
 0x1ed   : > { %v5677_v3 = vpop.f32.mrb[100].mxu0 }
 0x1ee   : > { %v5678_v17 = vpop.f32.mrb[101].mxu0 }
 0x1ef   : > { %v5679_v39 = vadd.f32 %v5678_v17, %v5677_v3  ;;  %v5680_v56 = vpop.f32.mrb[102].mxu0 }
 0x1f0   : > { %v5681_v44 = vpop.f32.mrb[103].mxu0 }
 0x1f1   : > { %v7247_v42 = vadd.f32 %v5679_v39, %v7154_v33  ;;  %v5682_v63 = vadd.f32 %v5681_v44, %v5680_v56  ;;  %v5741_v33 = vpop.f32.mrb[100].mxu1 }
 0x1f2   : > { %v5742_v22 = vpop.f32.mrb[101].mxu1 }
 0x1f3   : > { %v7250_v51 = vadd.f32 %v5682_v63, %v7156_v34  ;;  %v5743_v34 = vadd.f32 %v5742_v22, %v5741_v33  ;;  %v5744_v28 = vpop.f32.mrb[102].mxu1 }
 0x1f4   : > { %v5745_v27 = vpop.f32.mrb[103].mxu1 }
 0x1f5   : > { %v5683_v16 = vpop.f32.mrb[104].mxu0  ;;  %v5746_v12 = vadd.f32 %v5745_v27, %v5744_v28  ;;  %v7265_v30 = vadd.f32 %v5743_v34, %v7159_v40  ;;  %v5747_v46 = vpop.f32.mrb[104].mxu1 }
 0x1f6   : > { %v5684_v36 = vpop.f32.mrb[105].mxu0  ;;  %v5748_v20 = vpop.f32.mrb[105].mxu1 }
 0x1f7   : > { %v5685_v57 = vadd.f32 %v5684_v36, %v5683_v16  ;;  %v5686_v2 = vpop.f32.mrb[106].mxu0  ;;  %v7268_v25 = vadd.f32 %v5746_v12, %v7164_v52  ;;  %v5749_v35 = vadd.f32 %v5748_v20, %v5747_v46  ;;  %v5750_v43 = vpop.f32.mrb[106].mxu1 }
 0x1f8   : > { %v5687_v9 = vpop.f32.mrb[107].mxu0 }
 0x1f9   : > { %v7259_v4 = vadd.f32 %v5685_v57, %v7168_v60  ;;  %v5688_v14 = vadd.f32 %v5687_v9, %v5686_v2  ;;  %v5751_v60 = vpop.f32.mrb[107].mxu1  ;;  %v7271_v17 = vadd.f32 %v5749_v35, %v7173_v6 }
 0x1fa   : > { %v5752_v3 = vadd.f32 %v5751_v60, %v5750_v43  ;;  %v5753_v39 = vpop.f32.mrb[108].mxu1 }
 0x1fb   : > { %v7262_v55 = vadd.f32 %v5688_v14, %v7170_v15  ;;  %v5754_v56 = vpop.f32.mrb[109].mxu1 }
 0x1fc   : > { %v7274_v15 = vadd.f32 %v5752_v3, %v7176_v62  ;;  %v5755_v40 = vadd.f32 %v5754_v56, %v5753_v39  ;;  %v5756_v26 = vpop.f32.mrb[110].mxu1 }
 0x1fd   : > { %v5757_v44 = vpop.f32.mrb[111].mxu1  ;;  %v5689_v63 = vpop.f32.mrb[108].mxu0 }
 0x1fe   : > { %v5758_v52 = vadd.f32 %v5757_v44, %v5756_v26  ;;  %v7277_v47 = vadd.f32 %v5755_v40, %v7179_v19  ;;  %v5690_v49 = vpop.f32.mrb[109].mxu0  ;;  %v5759_v62 = vpop.f32.mrb[112].mxu1 }
 0x1ff   : > { %v5691_v6 = vadd.f32 %v5690_v49, %v5689_v63  ;;  %v5692_v1 = vpop.f32.mrb[110].mxu0  ;;  %v5760_v16 = vpop.f32.mrb[113].mxu1 }
 0x200   : > { %v7280_v31 = vadd.f32 %v5758_v52, %v7182_v23  ;;  %v5693_v53 = vpop.f32.mrb[111].mxu0  ;;  %v5761_v2 = vadd.f32 %v5760_v16, %v5759_v62  ;;  %v5762_v33 = vpop.f32.mrb[114].mxu1 }
 0x201   : > { %v7284_v36 = vadd.f32 %v5691_v6, %v7194_v45  ;;  %v5694_v57 = vadd.f32 %v5693_v53, %v5692_v1  ;;  %v5763_v19 = vpop.f32.mrb[115].mxu1 }
 0x202   : > { %v5764_v23 = vadd.f32 %v5763_v19, %v5762_v33  ;;  %v7292_v22 = vadd.f32 %v5761_v2, %v7185_v29 }
 0x203   : > { %v7289_v9 = vadd.f32 %v5694_v57, %v7196_v13 }
 0x204   : > { %v7295_v34 = vadd.f32 %v5764_v23, %v7188_v50 }
 0x205   : > { %v5849_v14 = vpop.f32.mrb[112].mxu0 }
 0x206   : > { %v4758_v45 = vadd.f32 %v5849_v14, %v7217_v24  ;;  %v4749_v28 = vpop.f32.mrb[113].mxu0  ;;  %v5765_v46 = vpop.f32.mrb[116].mxu1 }
 0x207   : > { %v4750_v27 = vadd.f32 %v4749_v28, %v7205_v18  ;;  %v5850_v12 = vpop.f32.mrb[114].mxu0  ;;  %v5766_v20 = vpop.f32.mrb[117].mxu1 }
 0x208   : > { %4878 = vst [vmem:[%s7299_s17 + $0x10] sm:$0xff] %v4758_v45  ;;  %v4761_v29 = vadd.f32 %v5850_v12, %v7220_v41  ;;  %v4752_v13 = vpop.f32.mrb[115].mxu0  ;;  %v5767_v24 = vadd.f32 %v5766_v20, %v5765_v46  ;;  %v5768_v35 = vpop.f32.mrb[118].mxu1 }
 0x209   : > { %4876 = vst [vmem:[%s7299_s17] sm:$0xff] %v4750_v27  ;;  %v4753_v50 = vadd.f32 %v4752_v13, %v7208_v10  ;;  %v5769_v18 = vpop.f32.mrb[119].mxu1 }
 0x20a   : > { %4879 = vst [vmem:[%s7299_s17 + $0x18] sm:$0xff] %v4761_v29  ;;  %v5770_v43 = vadd.f32 %v5769_v18, %v5768_v35  ;;  %v4661_v60 = vadd.f32 %v5767_v24, %v7199_v48 }
 0x20b   : > { %4877 = vst [vmem:[%s7299_s17 + $0x8] sm:$0xff] %v4753_v50 }
 0x20c   : > { %v7309_v39 = vadd.f32 %v5770_v43, %v7202_v5 }
 0x20d   : > { %v5853_v3 = vpop.f32.mrb[116].mxu0 }
 0x20e   : > { %v4774_v41 = vadd.f32 %v5853_v3, %v7241_v38  ;;  %v4765_v56 = vpop.f32.mrb[117].mxu0  ;;  %v5771_v26 = vpop.f32.mrb[120].mxu1 }
 0x20f   : > { %v4766_v10 = vadd.f32 %v4765_v56, %v7229_v59  ;;  %v5854_v40 = vpop.f32.mrb[118].mxu0  ;;  %v5772_v63 = vpop.f32.mrb[121].mxu1 }
 0x210   : > { %4882 = vst [vmem:[%s7299_s17 + $0x30] sm:$0xff] %v4774_v41  ;;  %v4777_v44 = vadd.f32 %v5854_v40, %v7244_v8  ;;  %v4768_v52 = vpop.f32.mrb[119].mxu0  ;;  %v5773_v49 = vadd.f32 %v5772_v63, %v5771_v26  ;;  %v5774_v5 = vpop.f32.mrb[122].mxu1 }
 0x211   : > { %4880 = vst [vmem:[%s7299_s17 + $0x20] sm:$0xff] %v4766_v10  ;;  %v4769_v48 = vadd.f32 %v4768_v52, %v7232_v61  ;;  %v5775_v6 = vpop.f32.mrb[123].mxu1 }
 0x212   : > { %4883 = vst [vmem:[%s7299_s17 + $0x38] sm:$0xff] %v4777_v44  ;;  %v5776_v38 = vadd.f32 %v5775_v6, %v5774_v5  ;;  %v7320_v59 = vadd.f32 %v5773_v49, %v7211_v11 }
 0x213   : > { %4881 = vst [vmem:[%s7299_s17 + $0x28] sm:$0xff] %v4769_v48 }
 0x214   : > { %v7323_v8 = vadd.f32 %v5776_v38, %v7214_v32 }
 0x215   : > { %v5857_v1 = vpop.f32.mrb[120].mxu0 }
 0x216   : > { %v4790_v62 = vadd.f32 %v5857_v1, %v7265_v30  ;;  %v4781_v53 = vpop.f32.mrb[121].mxu0  ;;  %v5777_v57 = vpop.f32.mrb[124].mxu1 }
 0x217   : > { %v4782_v61 = vadd.f32 %v4781_v53, %v7253_v0  ;;  %v5858_v16 = vpop.f32.mrb[122].mxu0  ;;  %v5778_v19 = vpop.f32.mrb[125].mxu1 }
 0x218   : > { %4886 = vst [vmem:[%s7299_s17 + $0x50] sm:$0xff] %v4790_v62  ;;  %v4793_v2 = vadd.f32 %v5858_v16, %v7268_v25  ;;  %v4784_v33 = vpop.f32.mrb[123].mxu0  ;;  %v5779_v23 = vadd.f32 %v5778_v19, %v5777_v57  ;;  %v5780_v32 = vpop.f32.mrb[126].mxu1 }
 0x219   : > { %4884 = vst [vmem:[%s7299_s17 + $0x40] sm:$0xff] %v4782_v61  ;;  %v4785_v11 = vadd.f32 %v4784_v33, %v7256_v7  ;;  %v5781_v14 = vpop.f32.mrb[127].mxu1 }
 0x21a   : > { %4887 = vst [vmem:[%s7299_s17 + $0x58] sm:$0xff] %v4793_v2  ;;  %v5782_v30 = vadd.f32 %v5781_v14, %v5780_v32  ;;  %v4677_v0 = vadd.f32 %v5779_v23, %v7223_v54 }
 0x21b   : > { %4885 = vst [vmem:[%s7299_s17 + $0x48] sm:$0xff] %v4785_v11 }
 0x21c   : > { %v4680_v25 = vadd.f32 %v5782_v30, %v7226_v58 }
 0x21d   : > { %v5861_v45 = vpop.f32.mrb[124].mxu0 }
 0x21e   : > { %v4806_v28 = vadd.f32 %v5861_v45, %v7277_v47  ;;  %v4797_v27 = vpop.f32.mrb[125].mxu0  ;;  %v5783_v13 = vpop.f32.mrb[128].mxu1 }
 0x21f   : > { %v4798_v12 = vadd.f32 %v4797_v27, %v7271_v17  ;;  %v5862_v7 = vpop.f32.mrb[126].mxu0  ;;  %v5784_v54 = vpop.f32.mrb[129].mxu1 }
 0x220   : > { %4890 = vst [vmem:[%s7299_s17 + $0x70] sm:$0xff] %v4806_v28  ;;  %v4809_v46 = vadd.f32 %v5862_v7, %v7280_v31  ;;  %v4800_v29 = vpop.f32.mrb[127].mxu0  ;;  %v5785_v50 = vadd.f32 %v5784_v54, %v5783_v13  ;;  %v5786_v58 = vpop.f32.mrb[130].mxu1 }
 0x221   : > { %4888 = vst [vmem:[%s7299_s17 + $0x60] sm:$0xff] %v4798_v12  ;;  %v4801_v20 = vadd.f32 %v4800_v29, %v7274_v15  ;;  %v5787_v47 = vpop.f32.mrb[131].mxu1 }
 0x222   : > { %4891 = vst [vmem:[%s7299_s17 + $0x78] sm:$0xff] %v4809_v46  ;;  %v5788_v24 = vadd.f32 %v5787_v47, %v5786_v58  ;;  %v4685_v17 = vadd.f32 %v5785_v50, %v7235_v21 }
 0x223   : > { %4889 = vst [vmem:[%s7299_s17 + $0x68] sm:$0xff] %v4801_v20 }
 0x224   : > { %v4688_v43 = vadd.f32 %v5788_v24, %v7238_v37 }
 0x225   : > { %v5865_v35 = vpop.f32.mrb[128].mxu0 }
 0x226   : > { %v4822_v31 = vadd.f32 %v5865_v35, %v4661_v60  ;;  %v4813_v18 = vpop.f32.mrb[129].mxu0  ;;  %v5789_v40 = vpop.f32.mrb[132].mxu1 }
 0x227   : > { %v4814_v3 = vadd.f32 %v4813_v18, %v7292_v22  ;;  %v5866_v15 = vpop.f32.mrb[130].mxu0  ;;  %v5790_v26 = vpop.f32.mrb[133].mxu1 }
 0x228   : > { %4894 = vst [vmem:[%s7299_s17 + $0x90] sm:$0xff] %v4822_v31  ;;  %v4825_v41 = vadd.f32 %v5866_v15, %v7309_v39  ;;  %v4816_v56 = vpop.f32.mrb[131].mxu0  ;;  %v5791_v21 = vadd.f32 %v5790_v26, %v5789_v40  ;;  %v5792_v60 = vpop.f32.mrb[134].mxu1 }
 0x229   : > { %4892 = vst [vmem:[%s7299_s17 + $0x80] sm:$0xff] %v4814_v3  ;;  %v4817_v10 = vadd.f32 %v4816_v56, %v7295_v34  ;;  %v5793_v37 = vpop.f32.mrb[135].mxu1 }
 0x22a   : > { %4895 = vst [vmem:[%s7299_s17 + $0x98] sm:$0xff] %v4825_v41  ;;  %v5794_v44 = vadd.f32 %v5793_v37, %v5792_v60  ;;  %v4693_v52 = vadd.f32 %v5791_v21, %v7247_v42 }
 0x22b   : > { %4893 = vst [vmem:[%s7299_s17 + $0x88] sm:$0xff] %v4817_v10 }
 0x22c   : > { %v4696_v49 = vadd.f32 %v5794_v44, %v7250_v51 }
 0x22d   : > { %v5869_v22 = vpop.f32.mrb[132].mxu0 }
 0x22e   : > { %v4838_v39 = vadd.f32 %v5869_v22, %v4677_v0  ;;  %v4829_v63 = vpop.f32.mrb[133].mxu0 }
 0x22f   : > { %v4830_v48 = vadd.f32 %v4829_v63, %v7320_v59  ;;  %v5870_v34 = vpop.f32.mrb[134].mxu0 }
 0x230   : > { %4898 = vst [vmem:[%s7299_s17 + $0xb0] sm:$0xff] %v4838_v39  ;;  %v4841_v5 = vadd.f32 %v5870_v34, %v4680_v25  ;;  %v4832_v6 = vpop.f32.mrb[135].mxu0 }
 0x231   : > { %4896 = vst [vmem:[%s7299_s17 + $0xa0] sm:$0xff] %v4830_v48  ;;  %v4833_v38 = vadd.f32 %v4832_v6, %v7323_v8 }
 0x232   : > { %4899 = vst [vmem:[%s7299_s17 + $0xb8] sm:$0xff] %v4841_v5 }
 0x233   : > { %4897 = vst [vmem:[%s7299_s17 + $0xa8] sm:$0xff] %v4833_v38 }
 0x235   : > { %v5873_v59 = vpop.f32.mrb[136].mxu0 }
 0x236   : > { %v5795_v1 = vpop.f32.mrb[136].mxu1  ;;  %v4854_v16 = vadd.f32 %v5873_v59, %v4693_v52  ;;  %v4845_v51 = vpop.f32.mrb[137].mxu0 }
 0x237   : > { %v5796_v62 = vpop.f32.mrb[137].mxu1  ;;  %v4846_v33 = vadd.f32 %v4845_v51, %v4685_v17  ;;  %v5874_v19 = vpop.f32.mrb[138].mxu0 }
 0x238   : > { %v5797_v42 = vadd.f32 %v5796_v62, %v5795_v1  ;;  %v5798_v53 = vpop.f32.mrb[138].mxu1  ;;  %4902 = vst [vmem:[%s7299_s17 + $0xd0] sm:$0xff] %v4854_v16  ;;  %v4857_v8 = vadd.f32 %v5874_v19, %v4696_v49  ;;  %v4848_v11 = vpop.f32.mrb[139].mxu0 }
 0x239   : > { %v5799_v61 = vpop.f32.mrb[139].mxu1  ;;  %4900 = vst [vmem:[%s7299_s17 + $0xc0] sm:$0xff] %v4846_v33  ;;  %v4849_v32 = vadd.f32 %v4848_v11, %v4688_v43 }
 0x23a   : > { %v5800_v57 = vadd.f32 %v5799_v61, %v5798_v53  ;;  %v4701_v2 = vadd.f32 %v5797_v42, %v7259_v4  ;;  %4903 = vst [vmem:[%s7299_s17 + $0xd8] sm:$0xff] %v4857_v8 }
 0x23b   : > { %4901 = vst [vmem:[%s7299_s17 + $0xc8] sm:$0xff] %v4849_v32 }
 0x23c   : > { %v4704_v23 = vadd.f32 %v5800_v57, %v7262_v55 }
 0x23d   : > { %v5877_v0 = vpop.f32.mrb[140].mxu0 }
 0x23e   : > { %v5801_v14 = vpop.f32.mrb[140].mxu1  ;;  %v4861_v4 = vpop.f32.mrb[141].mxu0 }
 0x23f   : > { %v5802_v30 = vpop.f32.mrb[141].mxu1  ;;  %v4862_v27 = vadd.f32 %v4861_v4, %v4701_v2  ;;  %v5878_v12 = vpop.f32.mrb[142].mxu0 }
 0x240   : > { %v5803_v45 = vadd.f32 %v5802_v30, %v5801_v14  ;;  %v5804_v25 = vpop.f32.mrb[142].mxu1  ;;  %v4864_v46 = vpop.f32.mrb[143].mxu0 }
 0x241   : > { %v5805_v28 = vpop.f32.mrb[143].mxu1  ;;  %4904 = vst [vmem:[%s7299_s17 + $0xe0] sm:$0xff] %v4862_v27  ;;  %v4865_v13 = vadd.f32 %v4864_v46, %v4704_v23 }
 0x242   : > { %v4709_v55 = vadd.f32 %v5803_v45, %v7284_v36  ;;  %v5806_v7 = vadd.f32 %v5805_v28, %v5804_v25 }
 0x243   : > { %4905 = vst [vmem:[%s7299_s17 + $0xe8] sm:$0xff] %v4865_v13 }
 0x244   : > { %v4870_v29 = vadd.f32 %v5877_v0, %v4709_v55  ;;  %v4712_v20 = vadd.f32 %v5806_v7, %v7289_v9 }
 0x246   : > { %4906 = vst [vmem:[%s7299_s17 + $0xf0] sm:$0xff] %v4870_v29  ;;  %v4873_v36 = vadd.f32 %v5878_v12, %v4712_v20 }
 0x248   : > { %4907 = vst [vmem:[%s7299_s17 + $0xf8] sm:$0xff] %v4873_v36 }
 0x249   : > { %6278 = shalt.err (!%p6275_p3)
}
 0x24a   : > { %s6279_s30 = scalar_lea.hbm %s7374_s26, 4096  ;;  %s6283_s7 = scalar_lea.hbm %s7427_s3, 8192 }
 0x24b   : > { %p6280_p4 = scmp.ne.s32.totalorder %s7374_s26, %s6279_s30  ;;  %p6284_p9 = scmp.lt.u32.totalorder %s7374_s26, %s7427_s3 }
 0x24c   : > { %p6285_p10 = scmp.lt.u32.totalorder %s6283_s7, %s6279_s30  ;;  %p6287_p12 = scmp.lt.u32.totalorder %s6279_s30, %s7374_s26 }
 0x24d   : > { %p6281_p7 = pnand %p6280_p4, %p6391_p5 }
 0x24e   : > { %p6286_p11 = por %p6285_p10, %p6284_p9 }
 0x24f   : > { %p6282_p8 = pneg %p6281_p7 }
 0x250   : > { %p6288_p13 = por %p6287_p12, %p6286_p11 }
 0x252   : > { %p6289_p0 = pnand %p6288_p13, %p6282_p8 }
 0x254   : > { %6292 = shalt.err (!%p6289_p0)
}
 0x255   : > { %s6331_s10 = smov 128   ;;  %s6332_s11 = smov 8  }
 0x256   : > { %5895 = dma.vmem_to_hbm [thread:$0]  (%p6391_p5), %s7376_s20, 4096, %s7374_s26, %s7383_s16, %s6331_s10, %s6331_s10, %s6332_s11  }
 0x257 PF: > { %p5901_p1 = scmp.ge.s32.totalorder %s6327_s15, 2  ;;  %s4937_s17 = sand.u32 1, %s6315_s12  }
 0x258   : > { %s4938_s19 = scalar_lea.sflag [#allocation5], %s4937_s17 }
 0x259   : > { %p5898_p2 = pnand %p5901_p1, %p6395_p6 }
 0x25b   : > { %6310 = dma.done.wait (!%p5898_p2), %s4938_s19, 4096  }
 0x25c   : > { %6312 = vsyncadd (!%p5898_p2), %s4938_s19, 4294963200  ;;  %p13_p3 = scmp.ge.s32.totalorder %s6378_s18, 4   ;;  %s7438_s12 = smov %s6319_s13 }
 0x25d   : > { %s7439_s13 = smov %s6323_s14  ;;  %s7440_s14 = smov %s6389_s21 }
 0x25e   : > { %s7441_s15 = smov %s6378_s18  ;;  %15 = sbr.rel (!%p13_p3) target bundleno = 3 (0x3), region = 70 }
 0x265   :  { %4943 = vsyncpa [#allocation5], 1 }
 0x266   :  { %4945 = vsyncpa [#allocation5 + $0x1], 1 }

</bundles_post_ra>
